<compile_context>
chip_gen: v7x
topology: tpu7x:2x2x1
jax: 0.10.0
libtpu: 0.0.40
codegen_flags: <defaults>
</compile_context>

<pallas_src>
import jax
import jax.numpy as jnp
from jax import lax
from jax.experimental import pallas as pl
from jax.experimental.pallas import tpu as pltpu


def _round_up(x, m):
    return (x + m - 1) // m * m


def _pick_row_tile(H, W):
    """Row tile: multiple of 8, lane-dense output (TR*W % 128 == 0), >=2 tiles."""
    best = None
    for tr in range(8, H, 8):
        if H % tr or (tr * W) % 128:
            continue
        best = tr
        if tr * W >= 256:        # v6e/v7x MXU-height target
            break
    return best if best is not None else H


def conv_block_kernel(xp_ref, w1_ref, s1_ref, t1_ref, w2_ref, s2_ref, t2_ref,
                      out_ref, mid_ref):
    """One (batch, row-tile) step.

    xp_ref : (H+4, W+2, Cin) bf16  wrapper-padded input (2 rows, 1 col each side)
    w1_ref : (9*Cin, Cm)     bf16  conv1 taps stacked along rows (ky, kx, cin)
    s1/t1  : (1, Cm)         f32   fused conv-bias + eval-BN scale / shift
    w2_ref : (9*Cm, Cm)      bf16
    s2/t2  : (1, Cm)         f32
    out_ref: (Cm, TR*W)      f32   lane-dense NC(HW) output tile
    mid_ref: (TR+2, WM, Cm)  bf16  scratch: zero-padded intermediate (interior at col 8)
    """
    f32 = jnp.float32
    TRm, WM, Cm = mid_ref.shape
    TR = TRm - 2
    _, WP, Cin = xp_ref.shape
    W = WP - 2

    t = pl.program_id(1)
    n_tiles = pl.num_programs(1)
    r0 = t * TR                       # first padded-input row of this tile's window

    # ---- conv1 (+bias) + BN1 + ReLU over TR+2 intermediate rows (1-row halo) ----
    # 9 accumulating MXU matmuls (K = Cin per tap); bf16 operands, f32 accumulation.
    P1 = TRm * W
    acc1 = jnp.zeros((P1, Cm), f32)
    for ky in range(3):
        for kx in range(3):
            win = xp_ref[pl.ds(r0 + ky, TRm), kx:kx + W, :].reshape(P1, Cin)
            tap = ky * 3 + kx
            acc1 = acc1 + jnp.dot(win, w1_ref[tap * Cin:(tap + 1) * Cin, :],
                                  preferred_element_type=f32)
    h1 = jnp.maximum(acc1 * s1_ref[...] + t1_ref[...], 0.0)       # (P1, Cm) f32

    # ---- stage intermediate into the zero-padded scratch (conv2's SAME padding) ----
    # Full-granule zero init, then one sublane-aligned interior store at column 8.
    mid_ref[...] = jnp.zeros_like(mid_ref)
    mid_ref[:, 8:8 + W, :] = h1.reshape(TRm, W, Cm).astype(mid_ref.dtype)

    # Halo rows outside the image are conv2 zero-padding, not conv1 output.
    @pl.when(t == 0)
    def _():
        mid_ref[0:1, :, :] = jnp.zeros((1, WM, Cm), mid_ref.dtype)

    @pl.when(t == n_tiles - 1)
    def _():
        mid_ref[TRm - 1:TRm, :, :] = jnp.zeros((1, WM, Cm), mid_ref.dtype)

    # ---- conv2 (+bias) + BN2 + ReLU: 9 accumulating matmuls (K = Cm per tap) ----
    P2 = TR * W
    acc2 = jnp.zeros((P2, Cm), f32)
    for ky in range(3):
        for kx in range(3):
            win = mid_ref[ky:ky + TR, 7 + kx:7 + kx + W, :].reshape(P2, Cm)
            tap = ky * 3 + kx
            acc2 = acc2 + jnp.dot(win, w2_ref[tap * Cm:(tap + 1) * Cm, :],
                                  preferred_element_type=f32)
    h2 = jnp.maximum(acc2 * s2_ref[...] + t2_ref[...], 0.0)       # (P2, Cm) f32

    # Lane-dense NCHW store: (pixels, C) -> (C, pixels), pixels = TR*W >= 128.
    out_ref[...] = jnp.transpose(h2, (1, 0)).astype(out_ref.dtype)


def conv_block(x_nchw, params, row_tile=None):
    """x_nchw: (N, Cin, H, W) f32 -> (N, Cout, H, W) f32 (eval-mode BatchNorm)."""
    (w1, c1, g1, b1, m1, v1, w2, c2, g2, b2, m2, v2) = params
    eps = 1e-5

    N, Cin, H, W = x_nchw.shape
    Cout = w1.shape[0]
    Cm = _round_up(Cout, 8)           # sublane-rounded real channel count (no 128 pad)
    pad_c = Cm - Cout

    TR = _pick_row_tile(H, W) if row_tile is None else row_tile
    assert H % TR == 0, (H, TR)
    T = H // TR
    assert (TR * W) % 128 == 0 or T == 1, "output tile must be lane-dense"

    # Fold conv bias + eval-mode BN into per-channel scale/shift (f32 epilogue).
    s1 = g1 / jnp.sqrt(v1 + eps)
    t1 = b1 + s1 * (c1 - m1)
    s2 = g2 / jnp.sqrt(v2 + eps)
    t2 = b2 + s2 * (c2 - m2)

    def cpad(v):
        return jnp.pad(v, (0, pad_c)).reshape(1, Cm).astype(jnp.float32)

    # OIHW -> (ky, kx, cin)-major tap matrices, bf16 MXU operands, channels -> Cm.
    w1_mat = jnp.transpose(w1, (2, 3, 1, 0)).reshape(9 * Cin, Cout)
    w1_mat = jnp.pad(w1_mat, ((0, 0), (0, pad_c))).astype(jnp.bfloat16)
    w2_hwio = jnp.pad(jnp.transpose(w2, (2, 3, 1, 0)),
                      ((0, 0), (0, 0), (0, pad_c), (0, pad_c)))
    w2_mat = w2_hwio.reshape(9 * Cm, Cm).astype(jnp.bfloat16)

    # NCHW -> NHWC + spatial pre-pad: 2 rows top/bottom (row-tile halo of the fused
    # 2-conv stack), 1 col left/right (conv1 SAME padding).  bf16 halves the DMA.
    xp = jnp.transpose(x_nchw, (0, 2, 3, 1))
    xp = jnp.pad(xp, ((0, 0), (2, 2), (1, 1), (0, 0))).astype(jnp.bfloat16)

    WM = _round_up(W + 9, 8)          # padded-intermediate width, interior at col 8

    flops = int(2 * N * H * W * 9 * (Cin * Cm + Cm * Cm))
    bytes_accessed = int(xp.size * 2 + (w1_mat.size + w2_mat.size) * 2
                         + 4 * Cm * 4 + N * Cm * H * W * 4)

    out = pl.pallas_call(
        conv_block_kernel,
        out_shape=jax.ShapeDtypeStruct((N, Cm, H * W), jnp.float32),
        grid=(N, T),
        in_specs=[
            pl.BlockSpec((None, H + 4, W + 2, Cin), lambda n, t: (n, 0, 0, 0)),
            pl.BlockSpec((9 * Cin, Cm), lambda n, t: (0, 0)),
            pl.BlockSpec((1, Cm), lambda n, t: (0, 0)),
            pl.BlockSpec((1, Cm), lambda n, t: (0, 0)),
            pl.BlockSpec((9 * Cm, Cm), lambda n, t: (0, 0)),
            pl.BlockSpec((1, Cm), lambda n, t: (0, 0)),
            pl.BlockSpec((1, Cm), lambda n, t: (0, 0)),
        ],
        out_specs=pl.BlockSpec((None, Cm, TR * W), lambda n, t: (n, 0, t)),
        scratch_shapes=[pltpu.VMEM((TR + 2, WM, Cm), jnp.bfloat16)],
        compiler_params=pltpu.CompilerParams(
            dimension_semantics=("parallel", "parallel"),
            vmem_limit_bytes=32 * 1024 * 1024,
        ),
        cost_estimate=pl.CostEstimate(flops=flops, transcendentals=0,
                                      bytes_accessed=bytes_accessed),
    )(xp, w1_mat, cpad(s1), cpad(t1), w2_mat, cpad(s2), cpad(t2))

    # (N, Cm, H*W) is already NCHW modulo a free reshape + channel un-pad.
    return out.reshape(N, Cm, H, W)[:, :Cout]


def conv_block_ref(x_nchw, params):
    """Pure-JAX reference mirroring the PyTorch forward (eval-mode BN)."""
    (w1, c1, g1, b1, m1, v1, w2, c2, g2, b2, m2, v2) = params
    eps = 1e-5
    dn = ('NCHW', 'OIHW', 'NCHW')

    def bn_relu(y, g, b, m, v):
        y = (y - m[None, :, None, None]) / jnp.sqrt(v[None, :, None, None] + eps)
        y = y * g[None, :, None, None] + b[None, :, None, None]
        return jnp.maximum(y, 0.0)

    y = lax.conv_general_dilated(x_nchw, w1, (1, 1), 'SAME', dimension_numbers=dn)
    y = y + c1[None, :, None, None]
    y = bn_relu(y, g1, b1, m1, v1)
    y = lax.conv_general_dilated(y, w2, (1, 1), 'SAME', dimension_numbers=dn)
    y = y + c2[None, :, None, None]
    y = bn_relu(y, g2, b2, m2, v2)
    return y


def init_params(key, in_ch, out_ch):
    ks = jax.random.split(key, 8)
    w1 = jax.random.normal(ks[0], (out_ch, in_ch, 3, 3), jnp.float32) * 0.1
    c1 = jax.random.normal(ks[1], (out_ch,), jnp.float32) * 0.1
    g1 = 1.0 + 0.1 * jax.random.normal(ks[2], (out_ch,), jnp.float32)
    b1 = 0.1 * jax.random.normal(ks[3], (out_ch,), jnp.float32)
    m1 = 0.1 * jax.random.normal(ks[4], (out_ch,), jnp.float32)
    v1 = jnp.abs(1.0 + 0.1 * jax.random.normal(ks[5], (out_ch,), jnp.float32))
    w2 = jax.random.normal(ks[6], (out_ch, out_ch, 3, 3), jnp.float32) * 0.1
    c2 = jax.random.normal(ks[7], (out_ch,), jnp.float32) * 0.1
    g2 = jnp.linspace(0.9, 1.1, out_ch, dtype=jnp.float32)
    b2 = jnp.linspace(-0.05, 0.05, out_ch, dtype=jnp.float32)
    m2 = jnp.linspace(-0.1, 0.1, out_ch, dtype=jnp.float32)
    v2 = jnp.linspace(0.9, 1.2, out_ch, dtype=jnp.float32)
    return (w1, c1, g1, b1, m1, v1, w2, c2, g2, b2, m2, v2)


if __name__ == "__main__":
    key = jax.random.PRNGKey(0)
    k_x, k_p = jax.random.split(key)

    N, Cin, Cout, H, W = 2, 4, 8, 16, 16
    x = jax.random.normal(k_x, (N, Cin, H, W), jnp.float32)
    params = init_params(k_p, Cin, Cout)

    out = jax.block_until_ready(conv_block(x, params))
    ref = conv_block_ref(x, params)

    assert out.shape == (N, Cout, H, W), out.shape
    err = float(jnp.max(jnp.abs(out - ref)))
    # bf16 MXU operands with f32 accumulation: tolerance loosened vs the pure-f32 v2.
    assert err < 4e-2, f"max |err| = {err}"

    print("KERNEL_OK")
</pallas_src>

<mosaic_0001>
module attributes {stable_mosaic.version = 11 : i64} {
  func.func @conv_block_kernel(%arg0: i32, %arg1: i32, %arg2: memref<1x20x18x4xbf16, #tpu.memory_space<vmem>>, %arg3: memref<36x8xbf16, #tpu.memory_space<vmem>>, %arg4: memref<1x8xf32, #tpu.memory_space<vmem>>, %arg5: memref<1x8xf32, #tpu.memory_space<vmem>>, %arg6: memref<72x8xbf16, #tpu.memory_space<vmem>>, %arg7: memref<1x8xf32, #tpu.memory_space<vmem>>, %arg8: memref<1x8xf32, #tpu.memory_space<vmem>>, %arg9: memref<1x8x128xf32, #tpu.memory_space<vmem>>, %arg10: memref<10x32x8xbf16, #tpu.memory_space<vmem>>) attributes {dimension_semantics = [#tpu.dimension_semantics<parallel>, #tpu.dimension_semantics<parallel>], iteration_bounds = array<i64: 2, 2>, scalar_prefetch = 0 : i64, scratch_operands = 1 : i64, tpu.core_type = #tpu.core_type<tc>, window_params = [{transform_indices = @transform_0, window_bounds = array<i64: 1, 20, 18, 4>}, {pipeline_mode = #tpu.pipeline_mode<synchronous>, transform_indices = @transform_1, window_bounds = array<i64: 36, 8>}, {pipeline_mode = #tpu.pipeline_mode<synchronous>, transform_indices = @transform_2, window_bounds = array<i64: 1, 8>}, {pipeline_mode = #tpu.pipeline_mode<synchronous>, transform_indices = @transform_3, window_bounds = array<i64: 1, 8>}, {pipeline_mode = #tpu.pipeline_mode<synchronous>, transform_indices = @transform_4, window_bounds = array<i64: 72, 8>}, {pipeline_mode = #tpu.pipeline_mode<synchronous>, transform_indices = @transform_5, window_bounds = array<i64: 1, 8>}, {pipeline_mode = #tpu.pipeline_mode<synchronous>, transform_indices = @transform_6, window_bounds = array<i64: 1, 8>}, {transform_indices = @transform_7, window_bounds = array<i64: 1, 8, 128>}]} {
    %c8_i32 = arith.constant 8 : i32
    %0 = arith.muli %arg1, %c8_i32 : i32
    %cst = arith.constant 0.000000e+00 : f32
    %1 = vector.broadcast %cst : f32 to vector<160x8xf32>
    %c0_i32 = arith.constant 0 : i32
    %2 = arith.addi %0, %c0_i32 : i32
    %c0 = arith.constant 0 : index
    %3 = arith.index_cast %2 : i32 to index
    %c0_0 = arith.constant 0 : index
    %c0_1 = arith.constant 0 : index
    %4 = vector.load %arg2[%c0, %3, %c0_0, %c0_1] : memref<1x20x18x4xbf16, #tpu.memory_space<vmem>>, vector<1x10x16x4xbf16>
    %5 = vector.shape_cast %4 : vector<1x10x16x4xbf16> to vector<10x16x4xbf16>
    %6 = vector.shape_cast %5 : vector<10x16x4xbf16> to vector<160x4xbf16>
    %c0_2 = arith.constant 0 : index
    %c0_3 = arith.constant 0 : index
    %7 = vector.load %arg3[%c0_2, %c0_3] : memref<36x8xbf16, #tpu.memory_space<vmem>>, vector<4x8xbf16>
    %cst_4 = arith.constant dense<0.000000e+00> : vector<160x8xf32>
    %8 = tpu.matmul %6, %7, %cst_4 {dimension_numbers = #tpu.dot_dimension_numbers<[1], [0], [0], [1], [0, 0, 1, 1], [], []>} : vector<160x4xbf16>, vector<4x8xbf16>, vector<160x8xf32> -> vector<160x8xf32>
    %9 = arith.addf %1, %8 : vector<160x8xf32>
    %c0_i32_5 = arith.constant 0 : i32
    %10 = arith.addi %0, %c0_i32_5 : i32
    %c0_6 = arith.constant 0 : index
    %11 = arith.index_cast %10 : i32 to index
    %c1 = arith.constant 1 : index
    %c0_7 = arith.constant 0 : index
    %12 = vector.load %arg2[%c0_6, %11, %c1, %c0_7] : memref<1x20x18x4xbf16, #tpu.memory_space<vmem>>, vector<1x10x16x4xbf16>
    %13 = vector.shape_cast %12 : vector<1x10x16x4xbf16> to vector<10x16x4xbf16>
    %14 = vector.shape_cast %13 : vector<10x16x4xbf16> to vector<160x4xbf16>
    %c4 = arith.constant 4 : index
    %c0_8 = arith.constant 0 : index
    %15 = vector.load %arg3[%c4, %c0_8] : memref<36x8xbf16, #tpu.memory_space<vmem>>, vector<4x8xbf16>
    %cst_9 = arith.constant dense<0.000000e+00> : vector<160x8xf32>
    %16 = tpu.matmul %14, %15, %cst_9 {dimension_numbers = #tpu.dot_dimension_numbers<[1], [0], [0], [1], [0, 0, 1, 1], [], []>} : vector<160x4xbf16>, vector<4x8xbf16>, vector<160x8xf32> -> vector<160x8xf32>
    %17 = arith.addf %9, %16 : vector<160x8xf32>
    %c0_i32_10 = arith.constant 0 : i32
    %18 = arith.addi %0, %c0_i32_10 : i32
    %c0_11 = arith.constant 0 : index
    %19 = arith.index_cast %18 : i32 to index
    %c2 = arith.constant 2 : index
    %c0_12 = arith.constant 0 : index
    %20 = vector.load %arg2[%c0_11, %19, %c2, %c0_12] : memref<1x20x18x4xbf16, #tpu.memory_space<vmem>>, vector<1x10x16x4xbf16>
    %21 = vector.shape_cast %20 : vector<1x10x16x4xbf16> to vector<10x16x4xbf16>
    %22 = vector.shape_cast %21 : vector<10x16x4xbf16> to vector<160x4xbf16>
    %c8 = arith.constant 8 : index
    %c0_13 = arith.constant 0 : index
    %23 = vector.load %arg3[%c8, %c0_13] : memref<36x8xbf16, #tpu.memory_space<vmem>>, vector<4x8xbf16>
    %cst_14 = arith.constant dense<0.000000e+00> : vector<160x8xf32>
    %24 = tpu.matmul %22, %23, %cst_14 {dimension_numbers = #tpu.dot_dimension_numbers<[1], [0], [0], [1], [0, 0, 1, 1], [], []>} : vector<160x4xbf16>, vector<4x8xbf16>, vector<160x8xf32> -> vector<160x8xf32>
    %25 = arith.addf %17, %24 : vector<160x8xf32>
    %c1_i32 = arith.constant 1 : i32
    %26 = arith.addi %0, %c1_i32 : i32
    %c0_15 = arith.constant 0 : index
    %27 = arith.index_cast %26 : i32 to index
    %c0_16 = arith.constant 0 : index
    %c0_17 = arith.constant 0 : index
    %28 = vector.load %arg2[%c0_15, %27, %c0_16, %c0_17] : memref<1x20x18x4xbf16, #tpu.memory_space<vmem>>, vector<1x10x16x4xbf16>
    %29 = vector.shape_cast %28 : vector<1x10x16x4xbf16> to vector<10x16x4xbf16>
    %30 = vector.shape_cast %29 : vector<10x16x4xbf16> to vector<160x4xbf16>
    %c12 = arith.constant 12 : index
    %c0_18 = arith.constant 0 : index
    %31 = vector.load %arg3[%c12, %c0_18] : memref<36x8xbf16, #tpu.memory_space<vmem>>, vector<4x8xbf16>
    %cst_19 = arith.constant dense<0.000000e+00> : vector<160x8xf32>
    %32 = tpu.matmul %30, %31, %cst_19 {dimension_numbers = #tpu.dot_dimension_numbers<[1], [0], [0], [1], [0, 0, 1, 1], [], []>} : vector<160x4xbf16>, vector<4x8xbf16>, vector<160x8xf32> -> vector<160x8xf32>
    %33 = arith.addf %25, %32 : vector<160x8xf32>
    %c1_i32_20 = arith.constant 1 : i32
    %34 = arith.addi %0, %c1_i32_20 : i32
    %c0_21 = arith.constant 0 : index
    %35 = arith.index_cast %34 : i32 to index
    %c1_22 = arith.constant 1 : index
    %c0_23 = arith.constant 0 : index
    %36 = vector.load %arg2[%c0_21, %35, %c1_22, %c0_23] : memref<1x20x18x4xbf16, #tpu.memory_space<vmem>>, vector<1x10x16x4xbf16>
    %37 = vector.shape_cast %36 : vector<1x10x16x4xbf16> to vector<10x16x4xbf16>
    %38 = vector.shape_cast %37 : vector<10x16x4xbf16> to vector<160x4xbf16>
    %c16 = arith.constant 16 : index
    %c0_24 = arith.constant 0 : index
    %39 = vector.load %arg3[%c16, %c0_24] : memref<36x8xbf16, #tpu.memory_space<vmem>>, vector<4x8xbf16>
    %cst_25 = arith.constant dense<0.000000e+00> : vector<160x8xf32>
    %40 = tpu.matmul %38, %39, %cst_25 {dimension_numbers = #tpu.dot_dimension_numbers<[1], [0], [0], [1], [0, 0, 1, 1], [], []>} : vector<160x4xbf16>, vector<4x8xbf16>, vector<160x8xf32> -> vector<160x8xf32>
    %41 = arith.addf %33, %40 : vector<160x8xf32>
    %c1_i32_26 = arith.constant 1 : i32
    %42 = arith.addi %0, %c1_i32_26 : i32
    %c0_27 = arith.constant 0 : index
    %43 = arith.index_cast %42 : i32 to index
    %c2_28 = arith.constant 2 : index
    %c0_29 = arith.constant 0 : index
    %44 = vector.load %arg2[%c0_27, %43, %c2_28, %c0_29] : memref<1x20x18x4xbf16, #tpu.memory_space<vmem>>, vector<1x10x16x4xbf16>
    %45 = vector.shape_cast %44 : vector<1x10x16x4xbf16> to vector<10x16x4xbf16>
    %46 = vector.shape_cast %45 : vector<10x16x4xbf16> to vector<160x4xbf16>
    %c20 = arith.constant 20 : index
    %c0_30 = arith.constant 0 : index
    %47 = vector.load %arg3[%c20, %c0_30] : memref<36x8xbf16, #tpu.memory_space<vmem>>, vector<4x8xbf16>
    %cst_31 = arith.constant dense<0.000000e+00> : vector<160x8xf32>
    %48 = tpu.matmul %46, %47, %cst_31 {dimension_numbers = #tpu.dot_dimension_numbers<[1], [0], [0], [1], [0, 0, 1, 1], [], []>} : vector<160x4xbf16>, vector<4x8xbf16>, vector<160x8xf32> -> vector<160x8xf32>
    %49 = arith.addf %41, %48 : vector<160x8xf32>
    %c2_i32 = arith.constant 2 : i32
    %50 = arith.addi %0, %c2_i32 : i32
    %c0_32 = arith.constant 0 : index
    %51 = arith.index_cast %50 : i32 to index
    %c0_33 = arith.constant 0 : index
    %c0_34 = arith.constant 0 : index
    %52 = vector.load %arg2[%c0_32, %51, %c0_33, %c0_34] : memref<1x20x18x4xbf16, #tpu.memory_space<vmem>>, vector<1x10x16x4xbf16>
    %53 = vector.shape_cast %52 : vector<1x10x16x4xbf16> to vector<10x16x4xbf16>
    %54 = vector.shape_cast %53 : vector<10x16x4xbf16> to vector<160x4xbf16>
    %c24 = arith.constant 24 : index
    %c0_35 = arith.constant 0 : index
    %55 = vector.load %arg3[%c24, %c0_35] : memref<36x8xbf16, #tpu.memory_space<vmem>>, vector<4x8xbf16>
    %cst_36 = arith.constant dense<0.000000e+00> : vector<160x8xf32>
    %56 = tpu.matmul %54, %55, %cst_36 {dimension_numbers = #tpu.dot_dimension_numbers<[1], [0], [0], [1], [0, 0, 1, 1], [], []>} : vector<160x4xbf16>, vector<4x8xbf16>, vector<160x8xf32> -> vector<160x8xf32>
    %57 = arith.addf %49, %56 : vector<160x8xf32>
    %c2_i32_37 = arith.constant 2 : i32
    %58 = arith.addi %0, %c2_i32_37 : i32
    %c0_38 = arith.constant 0 : index
    %59 = arith.index_cast %58 : i32 to index
    %c1_39 = arith.constant 1 : index
    %c0_40 = arith.constant 0 : index
    %60 = vector.load %arg2[%c0_38, %59, %c1_39, %c0_40] : memref<1x20x18x4xbf16, #tpu.memory_space<vmem>>, vector<1x10x16x4xbf16>
    %61 = vector.shape_cast %60 : vector<1x10x16x4xbf16> to vector<10x16x4xbf16>
    %62 = vector.shape_cast %61 : vector<10x16x4xbf16> to vector<160x4xbf16>
    %c28 = arith.constant 28 : index
    %c0_41 = arith.constant 0 : index
    %63 = vector.load %arg3[%c28, %c0_41] : memref<36x8xbf16, #tpu.memory_space<vmem>>, vector<4x8xbf16>
    %cst_42 = arith.constant dense<0.000000e+00> : vector<160x8xf32>
    %64 = tpu.matmul %62, %63, %cst_42 {dimension_numbers = #tpu.dot_dimension_numbers<[1], [0], [0], [1], [0, 0, 1, 1], [], []>} : vector<160x4xbf16>, vector<4x8xbf16>, vector<160x8xf32> -> vector<160x8xf32>
    %65 = arith.addf %57, %64 : vector<160x8xf32>
    %c2_i32_43 = arith.constant 2 : i32
    %66 = arith.addi %0, %c2_i32_43 : i32
    %c0_44 = arith.constant 0 : index
    %67 = arith.index_cast %66 : i32 to index
    %c2_45 = arith.constant 2 : index
    %c0_46 = arith.constant 0 : index
    %68 = vector.load %arg2[%c0_44, %67, %c2_45, %c0_46] : memref<1x20x18x4xbf16, #tpu.memory_space<vmem>>, vector<1x10x16x4xbf16>
    %69 = vector.shape_cast %68 : vector<1x10x16x4xbf16> to vector<10x16x4xbf16>
    %70 = vector.shape_cast %69 : vector<10x16x4xbf16> to vector<160x4xbf16>
    %c32 = arith.constant 32 : index
    %c0_47 = arith.constant 0 : index
    %71 = vector.load %arg3[%c32, %c0_47] : memref<36x8xbf16, #tpu.memory_space<vmem>>, vector<4x8xbf16>
    %cst_48 = arith.constant dense<0.000000e+00> : vector<160x8xf32>
    %72 = tpu.matmul %70, %71, %cst_48 {dimension_numbers = #tpu.dot_dimension_numbers<[1], [0], [0], [1], [0, 0, 1, 1], [], []>} : vector<160x4xbf16>, vector<4x8xbf16>, vector<160x8xf32> -> vector<160x8xf32>
    %73 = arith.addf %65, %72 : vector<160x8xf32>
    %c0_49 = arith.constant 0 : index
    %c0_50 = arith.constant 0 : index
    %74 = vector.load %arg4[%c0_49, %c0_50] : memref<1x8xf32, #tpu.memory_space<vmem>>, vector<1x8xf32>
    %75 = vector.broadcast %74 : vector<1x8xf32> to vector<160x8xf32>
    %76 = arith.mulf %73, %75 : vector<160x8xf32>
    %c0_51 = arith.constant 0 : index
    %c0_52 = arith.constant 0 : index
    %77 = vector.load %arg5[%c0_51, %c0_52] : memref<1x8xf32, #tpu.memory_space<vmem>>, vector<1x8xf32>
    %78 = vector.broadcast %77 : vector<1x8xf32> to vector<160x8xf32>
    %79 = arith.addf %76, %78 : vector<160x8xf32>
    %cst_53 = arith.constant 0.000000e+00 : f32
    %80 = vector.broadcast %cst_53 : f32 to vector<160x8xf32>
    %81 = arith.maximumf %79, %80 : vector<160x8xf32>
    %cst_54 = arith.constant 0.000000e+00 : bf16
    %82 = vector.broadcast %cst_54 : bf16 to vector<10x32x8xbf16>
    %c0_55 = arith.constant 0 : index
    %c0_56 = arith.constant 0 : index
    %c0_57 = arith.constant 0 : index
    %83 = vector.load %arg10[%c0_55, %c0_56, %c0_57] : memref<10x32x8xbf16, #tpu.memory_space<vmem>>, vector<10x32x8xbf16>
    tpu.vector_store %arg10[%c0_55, %c0_56, %c0_57], %82 {strides = array<i32>} : memref<10x32x8xbf16, #tpu.memory_space<vmem>>, vector<10x32x8xbf16>,
    %84 = vector.shape_cast %81 : vector<160x8xf32> to vector<10x16x8xf32>
    %85 = arith.truncf %84 : vector<10x16x8xf32> to vector<10x16x8xbf16>
    %c0_58 = arith.constant 0 : index
    %c8_59 = arith.constant 8 : index
    %c0_60 = arith.constant 0 : index
    %86 = vector.load %arg10[%c0_58, %c8_59, %c0_60] : memref<10x32x8xbf16, #tpu.memory_space<vmem>>, vector<10x16x8xbf16>
    tpu.vector_store %arg10[%c0_58, %c8_59, %c0_60], %85 {strides = array<i32>} : memref<10x32x8xbf16, #tpu.memory_space<vmem>>, vector<10x16x8xbf16>,
    %c0_i32_61 = arith.constant 0 : i32
    %87 = arith.cmpi eq, %arg1, %c0_i32_61 : i32
    %88 = arith.extui %87 : i1 to i32
    %c0_i32_62 = arith.constant 0 : i32
    %89 = arith.cmpi ne, %88, %c0_i32_62 : i32
    scf.if %89 {
      %cst_122 = arith.constant 0.000000e+00 : bf16
      %151 = vector.broadcast %cst_122 : bf16 to vector<1x32x8xbf16>
      %c0_123 = arith.constant 0 : index
      %c0_124 = arith.constant 0 : index
      %c0_125 = arith.constant 0 : index
      %152 = vector.load %arg10[%c0_123, %c0_124, %c0_125] : memref<10x32x8xbf16, #tpu.memory_space<vmem>>, vector<1x32x8xbf16>
      tpu.vector_store %arg10[%c0_123, %c0_124, %c0_125], %151 {strides = array<i32>} : memref<10x32x8xbf16, #tpu.memory_space<vmem>>, vector<1x32x8xbf16>,
    } else {
    }
    %c1_i32_63 = arith.constant 1 : i32
    %90 = arith.cmpi eq, %arg1, %c1_i32_63 : i32
    %91 = arith.extui %90 : i1 to i32
    %c0_i32_64 = arith.constant 0 : i32
    %92 = arith.cmpi ne, %91, %c0_i32_64 : i32
    scf.if %92 {
      %cst_122 = arith.constant 0.000000e+00 : bf16
      %151 = vector.broadcast %cst_122 : bf16 to vector<1x32x8xbf16>
      %c9_123 = arith.constant 9 : index
      %c0_124 = arith.constant 0 : index
      %c0_125 = arith.constant 0 : index
      %152 = vector.load %arg10[%c9_123, %c0_124, %c0_125] : memref<10x32x8xbf16, #tpu.memory_space<vmem>>, vector<1x32x8xbf16>
      tpu.vector_store %arg10[%c9_123, %c0_124, %c0_125], %151 {strides = array<i32>} : memref<10x32x8xbf16, #tpu.memory_space<vmem>>, vector<1x32x8xbf16>,
    } else {
    }
    %cst_65 = arith.constant 0.000000e+00 : f32
    %93 = vector.broadcast %cst_65 : f32 to vector<128x8xf32>
    %c0_66 = arith.constant 0 : index
    %c7 = arith.constant 7 : index
    %c0_67 = arith.constant 0 : index
    %94 = vector.load %arg10[%c0_66, %c7, %c0_67] : memref<10x32x8xbf16, #tpu.memory_space<vmem>>, vector<8x16x8xbf16>
    %95 = vector.shape_cast %94 : vector<8x16x8xbf16> to vector<128x8xbf16>
    %c0_68 = arith.constant 0 : index
    %c0_69 = arith.constant 0 : index
    %96 = vector.load %arg6[%c0_68, %c0_69] : memref<72x8xbf16, #tpu.memory_space<vmem>>, vector<8x8xbf16>
    %cst_70 = arith.constant dense<0.000000e+00> : vector<128x8xf32>
    %97 = tpu.matmul %95, %96, %cst_70 {dimension_numbers = #tpu.dot_dimension_numbers<[1], [0], [0], [1], [0, 0, 1, 1], [], []>} : vector<128x8xbf16>, vector<8x8xbf16>, vector<128x8xf32> -> vector<128x8xf32>
    %98 = arith.addf %93, %97 : vector<128x8xf32>
    %c0_71 = arith.constant 0 : index
    %c8_72 = arith.constant 8 : index
    %c0_73 = arith.constant 0 : index
    %99 = vector.load %arg10[%c0_71, %c8_72, %c0_73] : memref<10x32x8xbf16, #tpu.memory_space<vmem>>, vector<8x16x8xbf16>
    %100 = vector.shape_cast %99 : vector<8x16x8xbf16> to vector<128x8xbf16>
    %c8_74 = arith.constant 8 : index
    %c0_75 = arith.constant 0 : index
    %101 = vector.load %arg6[%c8_74, %c0_75] : memref<72x8xbf16, #tpu.memory_space<vmem>>, vector<8x8xbf16>
    %cst_76 = arith.constant dense<0.000000e+00> : vector<128x8xf32>
    %102 = tpu.matmul %100, %101, %cst_76 {dimension_numbers = #tpu.dot_dimension_numbers<[1], [0], [0], [1], [0, 0, 1, 1], [], []>} : vector<128x8xbf16>, vector<8x8xbf16>, vector<128x8xf32> -> vector<128x8xf32>
    %103 = arith.addf %98, %102 : vector<128x8xf32>
    %c0_77 = arith.constant 0 : index
    %c9 = arith.constant 9 : index
    %c0_78 = arith.constant 0 : index
    %104 = vector.load %arg10[%c0_77, %c9, %c0_78] : memref<10x32x8xbf16, #tpu.memory_space<vmem>>, vector<8x16x8xbf16>
    %105 = vector.shape_cast %104 : vector<8x16x8xbf16> to vector<128x8xbf16>
    %c16_79 = arith.constant 16 : index
    %c0_80 = arith.constant 0 : index
    %106 = vector.load %arg6[%c16_79, %c0_80] : memref<72x8xbf16, #tpu.memory_space<vmem>>, vector<8x8xbf16>
    %cst_81 = arith.constant dense<0.000000e+00> : vector<128x8xf32>
    %107 = tpu.matmul %105, %106, %cst_81 {dimension_numbers = #tpu.dot_dimension_numbers<[1], [0], [0], [1], [0, 0, 1, 1], [], []>} : vector<128x8xbf16>, vector<8x8xbf16>, vector<128x8xf32> -> vector<128x8xf32>
    %108 = arith.addf %103, %107 : vector<128x8xf32>
    %c1_82 = arith.constant 1 : index
    %c7_83 = arith.constant 7 : index
    %c0_84 = arith.constant 0 : index
    %109 = vector.load %arg10[%c1_82, %c7_83, %c0_84] : memref<10x32x8xbf16, #tpu.memory_space<vmem>>, vector<8x16x8xbf16>
    %110 = vector.shape_cast %109 : vector<8x16x8xbf16> to vector<128x8xbf16>
    %c24_85 = arith.constant 24 : index
    %c0_86 = arith.constant 0 : index
    %111 = vector.load %arg6[%c24_85, %c0_86] : memref<72x8xbf16, #tpu.memory_space<vmem>>, vector<8x8xbf16>
    %cst_87 = arith.constant dense<0.000000e+00> : vector<128x8xf32>
    %112 = tpu.matmul %110, %111, %cst_87 {dimension_numbers = #tpu.dot_dimension_numbers<[1], [0], [0], [1], [0, 0, 1, 1], [], []>} : vector<128x8xbf16>, vector<8x8xbf16>, vector<128x8xf32> -> vector<128x8xf32>
    %113 = arith.addf %108, %112 : vector<128x8xf32>
    %c1_88 = arith.constant 1 : index
    %c8_89 = arith.constant 8 : index
    %c0_90 = arith.constant 0 : index
    %114 = vector.load %arg10[%c1_88, %c8_89, %c0_90] : memref<10x32x8xbf16, #tpu.memory_space<vmem>>, vector<8x16x8xbf16>
    %115 = vector.shape_cast %114 : vector<8x16x8xbf16> to vector<128x8xbf16>
    %c32_91 = arith.constant 32 : index
    %c0_92 = arith.constant 0 : index
    %116 = vector.load %arg6[%c32_91, %c0_92] : memref<72x8xbf16, #tpu.memory_space<vmem>>, vector<8x8xbf16>
    %cst_93 = arith.constant dense<0.000000e+00> : vector<128x8xf32>
    %117 = tpu.matmul %115, %116, %cst_93 {dimension_numbers = #tpu.dot_dimension_numbers<[1], [0], [0], [1], [0, 0, 1, 1], [], []>} : vector<128x8xbf16>, vector<8x8xbf16>, vector<128x8xf32> -> vector<128x8xf32>
    %118 = arith.addf %113, %117 : vector<128x8xf32>
    %c1_94 = arith.constant 1 : index
    %c9_95 = arith.constant 9 : index
    %c0_96 = arith.constant 0 : index
    %119 = vector.load %arg10[%c1_94, %c9_95, %c0_96] : memref<10x32x8xbf16, #tpu.memory_space<vmem>>, vector<8x16x8xbf16>
    %120 = vector.shape_cast %119 : vector<8x16x8xbf16> to vector<128x8xbf16>
    %c40 = arith.constant 40 : index
    %c0_97 = arith.constant 0 : index
    %121 = vector.load %arg6[%c40, %c0_97] : memref<72x8xbf16, #tpu.memory_space<vmem>>, vector<8x8xbf16>
    %cst_98 = arith.constant dense<0.000000e+00> : vector<128x8xf32>
    %122 = tpu.matmul %120, %121, %cst_98 {dimension_numbers = #tpu.dot_dimension_numbers<[1], [0], [0], [1], [0, 0, 1, 1], [], []>} : vector<128x8xbf16>, vector<8x8xbf16>, vector<128x8xf32> -> vector<128x8xf32>
    %123 = arith.addf %118, %122 : vector<128x8xf32>
    %c2_99 = arith.constant 2 : index
    %c7_100 = arith.constant 7 : index
    %c0_101 = arith.constant 0 : index
    %124 = vector.load %arg10[%c2_99, %c7_100, %c0_101] : memref<10x32x8xbf16, #tpu.memory_space<vmem>>, vector<8x16x8xbf16>
    %125 = vector.shape_cast %124 : vector<8x16x8xbf16> to vector<128x8xbf16>
    %c48 = arith.constant 48 : index
    %c0_102 = arith.constant 0 : index
    %126 = vector.load %arg6[%c48, %c0_102] : memref<72x8xbf16, #tpu.memory_space<vmem>>, vector<8x8xbf16>
    %cst_103 = arith.constant dense<0.000000e+00> : vector<128x8xf32>
    %127 = tpu.matmul %125, %126, %cst_103 {dimension_numbers = #tpu.dot_dimension_numbers<[1], [0], [0], [1], [0, 0, 1, 1], [], []>} : vector<128x8xbf16>, vector<8x8xbf16>, vector<128x8xf32> -> vector<128x8xf32>
    %128 = arith.addf %123, %127 : vector<128x8xf32>
    %c2_104 = arith.constant 2 : index
    %c8_105 = arith.constant 8 : index
    %c0_106 = arith.constant 0 : index
    %129 = vector.load %arg10[%c2_104, %c8_105, %c0_106] : memref<10x32x8xbf16, #tpu.memory_space<vmem>>, vector<8x16x8xbf16>
    %130 = vector.shape_cast %129 : vector<8x16x8xbf16> to vector<128x8xbf16>
    %c56 = arith.constant 56 : index
    %c0_107 = arith.constant 0 : index
    %131 = vector.load %arg6[%c56, %c0_107] : memref<72x8xbf16, #tpu.memory_space<vmem>>, vector<8x8xbf16>
    %cst_108 = arith.constant dense<0.000000e+00> : vector<128x8xf32>
    %132 = tpu.matmul %130, %131, %cst_108 {dimension_numbers = #tpu.dot_dimension_numbers<[1], [0], [0], [1], [0, 0, 1, 1], [], []>} : vector<128x8xbf16>, vector<8x8xbf16>, vector<128x8xf32> -> vector<128x8xf32>
    %133 = arith.addf %128, %132 : vector<128x8xf32>
    %c2_109 = arith.constant 2 : index
    %c9_110 = arith.constant 9 : index
    %c0_111 = arith.constant 0 : index
    %134 = vector.load %arg10[%c2_109, %c9_110, %c0_111] : memref<10x32x8xbf16, #tpu.memory_space<vmem>>, vector<8x16x8xbf16>
    %135 = vector.shape_cast %134 : vector<8x16x8xbf16> to vector<128x8xbf16>
    %c64 = arith.constant 64 : index
    %c0_112 = arith.constant 0 : index
    %136 = vector.load %arg6[%c64, %c0_112] : memref<72x8xbf16, #tpu.memory_space<vmem>>, vector<8x8xbf16>
    %cst_113 = arith.constant dense<0.000000e+00> : vector<128x8xf32>
    %137 = tpu.matmul %135, %136, %cst_113 {dimension_numbers = #tpu.dot_dimension_numbers<[1], [0], [0], [1], [0, 0, 1, 1], [], []>} : vector<128x8xbf16>, vector<8x8xbf16>, vector<128x8xf32> -> vector<128x8xf32>
    %138 = arith.addf %133, %137 : vector<128x8xf32>
    %c0_114 = arith.constant 0 : index
    %c0_115 = arith.constant 0 : index
    %139 = vector.load %arg7[%c0_114, %c0_115] : memref<1x8xf32, #tpu.memory_space<vmem>>, vector<1x8xf32>
    %140 = vector.broadcast %139 : vector<1x8xf32> to vector<128x8xf32>
    %141 = arith.mulf %138, %140 : vector<128x8xf32>
    %c0_116 = arith.constant 0 : index
    %c0_117 = arith.constant 0 : index
    %142 = vector.load %arg8[%c0_116, %c0_117] : memref<1x8xf32, #tpu.memory_space<vmem>>, vector<1x8xf32>
    %143 = vector.broadcast %142 : vector<1x8xf32> to vector<128x8xf32>
    %144 = arith.addf %141, %143 : vector<128x8xf32>
    %cst_118 = arith.constant 0.000000e+00 : f32
    %145 = vector.broadcast %cst_118 : f32 to vector<128x8xf32>
    %146 = arith.maximumf %144, %145 : vector<128x8xf32>
    %147 = tpu.transpose %146, [1, 0] : vector<128x8xf32> -> vector<8x128xf32>
    %c0_119 = arith.constant 0 : index
    %c0_120 = arith.constant 0 : index
    %c0_121 = arith.constant 0 : index
    %148 = vector.load %arg9[%c0_119, %c0_120, %c0_121] : memref<1x8x128xf32, #tpu.memory_space<vmem>>, vector<1x8x128xf32>
    %149 = vector.shape_cast %148 : vector<1x8x128xf32> to vector<8x128xf32>
    %150 = vector.shape_cast %147 : vector<8x128xf32> to vector<1x8x128xf32>
    tpu.vector_store %arg9[%c0_119, %c0_120, %c0_121], %150 {strides = array<i32>} : memref<1x8x128xf32, #tpu.memory_space<vmem>>, vector<1x8x128xf32>,
    return
  }
  func.func @transform_0(%arg0: i32, %arg1: i32) -> (i32, i32, i32, i32) {
    %c0_i32 = arith.constant 0 : i32
    %c0_i32_0 = arith.constant 0 : i32
    %c0_i32_1 = arith.constant 0 : i32
    %c0_i32_2 = arith.constant 0 : i32
    return %arg0, %c0_i32, %c0_i32_0, %c0_i32_1 : i32, i32, i32, i32
  }
  func.func @transform_1(%arg0: i32, %arg1: i32) -> (i32, i32) {
    %c0_i32 = arith.constant 0 : i32
    %c0_i32_0 = arith.constant 0 : i32
    %c0_i32_1 = arith.constant 0 : i32
    return %c0_i32, %c0_i32_0 : i32, i32
  }
  func.func @transform_2(%arg0: i32, %arg1: i32) -> (i32, i32) {
    %c0_i32 = arith.constant 0 : i32
    %c0_i32_0 = arith.constant 0 : i32
    %c0_i32_1 = arith.constant 0 : i32
    return %c0_i32, %c0_i32_0 : i32, i32
  }
  func.func @transform_3(%arg0: i32, %arg1: i32) -> (i32, i32) {
    %c0_i32 = arith.constant 0 : i32
    %c0_i32_0 = arith.constant 0 : i32
    %c0_i32_1 = arith.constant 0 : i32
    return %c0_i32, %c0_i32_0 : i32, i32
  }
  func.func @transform_4(%arg0: i32, %arg1: i32) -> (i32, i32) {
    %c0_i32 = arith.constant 0 : i32
    %c0_i32_0 = arith.constant 0 : i32
    %c0_i32_1 = arith.constant 0 : i32
    return %c0_i32, %c0_i32_0 : i32, i32
  }
  func.func @transform_5(%arg0: i32, %arg1: i32) -> (i32, i32) {
    %c0_i32 = arith.constant 0 : i32
    %c0_i32_0 = arith.constant 0 : i32
    %c0_i32_1 = arith.constant 0 : i32
    return %c0_i32, %c0_i32_0 : i32, i32
  }
  func.func @transform_6(%arg0: i32, %arg1: i32) -> (i32, i32) {
    %c0_i32 = arith.constant 0 : i32
    %c0_i32_0 = arith.constant 0 : i32
    %c0_i32_1 = arith.constant 0 : i32
    return %c0_i32, %c0_i32_0 : i32, i32
  }
  func.func @transform_7(%arg0: i32, %arg1: i32) -> (i32, i32, i32) {
    %c0_i32 = arith.constant 0 : i32
    %c0_i32_0 = arith.constant 0 : i32
    return %arg0, %c0_i32, %arg1 : i32, i32, i32
  }
}

</mosaic_0001>

<bundles_post_ra>
// kernel: tpu_custom_call.1
= control target key start
LH: loop header
LB: loop body
LE: loop exit
PB: predicated region body
PF: predicated region fallthrough
CT: control target
= control target key end

     0   :  { %s9283_s0 = inlined_call_operand.vmem [shape: bf16[2,20,18,4], index: 0, kind: input, shape index: {}]   ;;  %s9284_s1 = inlined_call_operand.vmem [shape: bf16[36,8], index: 1, kind: input, shape index: {}]   ;;  %s9285_s2 = inlined_call_operand.vmem [shape: f32[1,8], index: 2, kind: input, shape index: {}]   ;;  %s9286_s3 = inlined_call_operand.vmem [shape: f32[1,8], index: 3, kind: input, shape index: {}]   ;;  %s9287_s4 = inlined_call_operand.vmem [shape: bf16[72,8], index: 4, kind: input, shape index: {}]   ;;  %s9288_s5 = inlined_call_operand.vmem [shape: f32[1,8], index: 5, kind: input, shape index: {}]   ;;  %s9289_s6 = inlined_call_operand.vmem [shape: f32[1,8], index: 6, kind: input, shape index: {}]   ;;  %s9290_s7 = inlined_call_operand.hbm [shape: f32[2,8,256], index: 7, kind: output, shape index: {}]  }
   0x1   :  { %9308 = sst [smem:[#allocation31_spill]] %s9283_s0 }
   0x2   :  { %12 = vsyncpa [#allocation4], 0 }
   0x3   :  { %14 = vsyncpa [#allocation4 + $0x1], 0  ;;  %s7468_s24 = smov 0   ;;  %s7470_s25 = smov 0  }
   0x4   :  { %s7472_s26 = smov 0   ;;  %s7474_s27 = smov 0  }
   0x5   :  { %s7476_s28 = smov 0   ;;  %s7478_s29 = smov 0  }
   0x6   :  { %s7480_s30 = smov 0   ;;  %s7482_s8 = smov 0  }
   0x7 LB: > { %s5928_s9 = sadd.s32 4294967295, %s7422_s8   ;;  %s5929_s10 = sadd.s32 4294967294, %s7422_s8   ;;  %s7422_s8 = sphi %s7482_s8, %s20_s8   ;;  %s7418_s30 = sphi %s7480_s30, %s9384_s30   ;;  %s7414_s29 = sphi %s7478_s29, %s9383_s29   ;;  %s7410_s28 = sphi %s7476_s28, %s9382_s28   ;;  %s7406_s27 = sphi %s7474_s27, %s9381_s27   ;;  %s7402_s26 = sphi %s7472_s26, %s9380_s26   ;;  %s7398_s25 = sphi %s7470_s25, %s9379_s25   ;;  %s7394_s24 = sphi %s7468_s24, %s9378_s24  }
   0x8   : > { %s29_s11 = sadd.s32 1, %s7414_s29  ;;  %s32_s12 = sadd.s32 1, %s7418_s30 }
   0x9   : > { %p30_p0 = scmp.ge.s32.totalorder %s29_s11, 2  ;;  %p203_p1 = scmp.ne.s32.totalorder %s7402_s26, %s7398_s25 }
   0xa   : > { %p204_p2 = scmp.eq.s32.totalorder %s5928_s9, 3  ;;  %p209_p5 = scmp.ne.s32.totalorder %s7398_s25, %s7394_s24 }
   0xb   : > { %s9386_s11 = smov (%p30_p0, %s29_s11), 0  ;;  %s9388_s12 = smov (!%p30_p0, %s32_s12), %s7418_s30 }
   0xc   : > { %s189_s13 = ssub.s32 %s7414_s29, %s9386_s11  ;;  %p7519_p3 = por %p204_p2, %p203_p1 }
   0xd   : > { %p34_p4 = scmp.ge.s32.totalorder %s9388_s12, 2  ;;  %p210_p6 = scmp.eq.s32.totalorder %s5929_s10, 3 }
   0xe   : > { %p5932_p7 = scmp.ge.s32.totalorder %s7422_s8, 1  ;;  %p254_p9 = scmp.lt.s32.totalorder %s7422_s8, 5 }
   0xf   : > { %s9390_s12 = smov (%p34_p4, %s9388_s12), 0  ;;  %p7528_p8 = por %p210_p6, %p209_p5 }
  0x10   : > { %s188_s16 = ssub.s32 %s7418_s30, %s9390_s12  ;;  %s193_s17 = sadd.s32 1, %s7402_s26 }
  0x11   : > { %s190_s18 = sor.u32 %s189_s13, %s188_s16  ;;  %p255_p10 = pnand %p5932_p7, %p254_p9 }
  0x12   : > { %p191_p11 = scmp.eq.s32.totalorder %s190_s18, 0 }
  0x13   : > { %258 = sbr.rel (%p255_p10) target bundleno = 1213 (0x4bd), region = 48 }
  0x14   : > { %s7537_s19 = scalar_select %p191_p11, %s7402_s26, %s193_s17  }
  0x1a   : > { %v316_v0 = vld [vmem:[%s9284_s1] sm:$0x3]  ;;  %vm636_vm0 = vcmask 1041408   ;;  %p286_p12 = scmp.lt.s32.totalorder %s7410_s28, 1  ;;  %v1052_v2 = vld [vmem:[%s9284_s1 + $0x4] sm:$0x3] }
  0x1b   : > { %7189 = vmatprep.subr.msk.bf16.mxu0 %vm636_vm0, %v316_v0  ;;  %v834_v1 = vsel %vm636_vm0, %v316_v0, 0  ;;  %s6359_s10 = smul.u32 96, %s7406_s27  ;;  %s9311_s0 = sld [smem:[#allocation31_spill]]  ;;  %vm605_vm1 = vcmask 31744   ;;  %v1114_v11 = vsel %vm636_vm0, %v1052_v2, 0  ;;  %vm979_vm2 = vcmask 1042432  }
  0x1c   : > { %6563 = vmatpush3.bf16.msra.mxu0 %v834_v1  ;;  %s287_s9 = scalar_select %p286_p12, %s7410_s28, 1  ;;  %v7559_v3 = vld [vmem:[%s9284_s1 + $0x4] ss:$0 sps:$4 sm:$0xcc]   ;;  %vm980_vm3 = vcmask 1046532   ;;  %vm3365_vm8 = vcmask 64512  }
  0x1d   : > { %7190 = vmatprep.subr.msk.bf16.mxu0 %vm636_vm0, %v1052_v2  ;;  %v1327_v13 = vrot.slane %v7559_v3, 2  ;;  %vm7651_vm4 = vmor %vm979_vm2, %vm980_vm3  ;;  %vm327_vm5 = vsmask.f32 3328  ;;  %vm328_vm6 = vsmask.f32 7440  ;;  %s283_s22 = sand.u32 1, %s7398_s25  }
  0x1e   : > { %s7206_s13 = smul.u32 240, %s287_s9  ;;  %vm7882_vm7 = vmor %vm327_vm5, %vm328_vm6  ;;  %s8116_s23 = sshll.u32 %s283_s22, 3  ;;  %vm3426_vm9 = vcmask 64516   ;;  %vm3428_vm10 = vcmask 60416  }
  0x1f   : > { %s285_s9 = scalar_lea.vmem [#allocation3], %s8116_s23  ;;  %p6278_p13 = scmp.ne.s32.totalorder %s7406_s27, 0 }
  0x21   : > { %s290_s18 = scalar_lea.vmem %s9311_s0, %s7206_s13 }
  0x22   : > { %s7554_s20 = scalar_lea.vmem %s290_s18, %s6359_s10 }
  0x23   : > { %v7562_v4 = vld [vmem:[%s7554_s20] sm:$0xf]  ;;  %v7565_v5 = vld [vmem:[%s7554_s20 + $0x4] sm:$0xf]  ;;  %v7568_v6 = vld [vmem:[%s7554_s20 + $0xc] sm:$0xf] }
  0x24   : > { %v5959_v7 = vcombine.low %v7562_v4, %v7565_v5  ;;  %v7573_v8 = vld [vmem:[%s7554_s20 + $0x10] sm:$0xf]  ;;  %v7576_v9 = vld [vmem:[%s7554_s20 + $0x18] sm:$0xf]  ;;  %v7583_v12 = vld [vmem:[%s7554_s20 + $0x1c] sm:$0xf] }
  0x25   : > { %v5960_v10 = vcombine.low %v7568_v6, %v7573_v8  ;;  %9312 = vst [vmem:[#allocation6_spill] sm:$0xff] %v7583_v12  ;;  %v5961_v14 = vcombine.low %v7576_v9, %v7583_v12  ;;  %v7590_v15 = vld [vmem:[%s7554_s20 + $0x24] sm:$0xf]  ;;  %v7593_v16 = vld [vmem:[%s7554_s20 + $0x28] sm:$0xf]  ;;  %v984_v29 = vrot.slane %v7565_v5, 5 }
  0x26   : > { %6564 = vmatprep.mubr.msk.bf16.mxu0 %vm605_vm1, %v5959_v7  ;;  %9313 = vst [vmem:[#allocation7_spill] sm:$0xff] %v7593_v16  ;;  %v7597_v17 = vld [vmem:[%s7554_s20 + $0x30] sm:$0xf]  ;;  %v7600_v18 = vld [vmem:[%s7554_s20 + $0x34] sm:$0xf]  ;;  %v5962_v19 = vcombine.low %v7590_v15, %v7593_v16  ;;  %v991_v35 = vrot.slane %v7573_v8, 5 }
  0x27   : > { %6565 = vmatmul.mubr.msk.bf16.vlgmr.msra.gmra.mrb[0].mxu0 %vm605_vm1, %v5960_v10  ;;  %9314 = vst [vmem:[#allocation8_spill] sm:$0xff] %v7600_v18  ;;  %v5963_v20 = vcombine.low %v7597_v17, %v7600_v18  ;;  %v7612_v21 = vld [vmem:[%s7554_s20 + $0x3c] sm:$0xf]  ;;  %v7615_v22 = vld [vmem:[%s7554_s20 + $0x40] sm:$0xf]  ;;  %v986_v37 = vrot.slane %v984_v29, 4 }
  0x28   : > { %6585 = vmatpush3.bf16.msra.mxu0 %v1114_v11  ;;  %6568 = vmatprep.mubr.msk.bf16.mxu0 %vm605_vm1, %v5961_v14  ;;  %9315 = vst [vmem:[#allocation9_spill] sm:$0xff] %v7615_v22  ;;  %v7618_v23 = vld [vmem:[%s7554_s20 + $0x48] sm:$0xf]  ;;  %v7621_v24 = vld [vmem:[%s7554_s20 + $0x4c] sm:$0xf]  ;;  %v5964_v25 = vcombine.low %v7612_v21, %v7615_v22  ;;  %v998_v41 = vrot.slane %v7583_v12, 5 }
  0x29   : > { %7191 = vmatprep.subr.msk.bf16.mxu0 %vm636_vm0, %v1327_v13  ;;  %9316 = vst [vmem:[#allocation10_spill] sm:$0xff] %v7621_v24  ;;  %v5965_v26 = vcombine.low %v7618_v23, %v7621_v24  ;;  %v7630_v27 = vld [vmem:[%s7554_s20 + $0x54] sm:$0xf]  ;;  %v7633_v28 = vld [vmem:[%s7554_s20 + $0x58] sm:$0xf]  ;;  %v993_v48 = vrot.slane %v991_v35, 4 }
  0x2a   : > { %v7637_v30 = vld [vmem:[%s7554_s20 + $0x60] sm:$0xf]  ;;  %v7640_v31 = vld [vmem:[%s7554_s20 + $0x64] sm:$0xf]  ;;  %v7643_v32 = vld [vmem:[%s7554_s20 + $0x8] sm:$0x1]  ;;  %v5966_v34 = vcombine.low %v7630_v27, %v7633_v28 }
  0x2b   : > { %v949_v33 = vld [vmem:[%s7554_s20] sm:$0xe]  ;;  %v5967_v36 = vcombine.low %v7637_v30, %v7640_v31  ;;  %v987_v40 = vrot.slane %v7643_v32, 5  ;;  %v7658_v42 = vld [vmem:[%s7554_s20 + $0x6c] sm:$0xf]  ;;  %v1000_v51 = vrot.slane %v998_v41, 4 }
  0x2c   : > { %v5979_v39 = vrot.slane %v949_v33, 9  ;;  %v7661_v43 = vld [vmem:[%s7554_s20 + $0x70] sm:$0xf]  ;;  %v7664_v44 = vld [vmem:[%s7554_s20 + $0x14] sm:$0x1]  ;;  %v1005_v60 = vrot.slane %v7593_v16, 5 }
  0x2d   : > { %v950_v45 = vld [vmem:[%s7554_s20 + $0xc] sm:$0xe]  ;;  %v7670_v46 = vld [vmem:[%s7554_s20 + $0x20] sm:$0x1]  ;;  %v951_v47 = vld [vmem:[%s7554_s20 + $0x18] sm:$0xe]  ;;  %v988_v50 = vsel %vm7651_vm4, %v986_v37, %v987_v40  ;;  %v5968_v54 = vcombine.low %v7658_v42, %v7661_v43 }
  0x2e   : > { %9319 = vst [vmem:[#allocation11_spill] sm:$0xff] %v7670_v46  ;;  %v985_v49 = vsel %vm7651_vm4, %v5979_v39, %v984_v29  ;;  %v5980_v52 = vrot.slane %v950_v45, 9  ;;  %v994_v53 = vrot.slane %v7664_v44, 5  ;;  %v5981_v55 = vrot.slane %v951_v47, 9  ;;  %v7693_v63 = vld [vmem:[%s7554_s20 + $0x2c] sm:$0x1] }
  0x2f   : > { %6569 = vmatmul.mubr.msk.bf16.gmra.mrb[4].mxu0 %vm605_vm1, %v5962_v19  ;;  %v1001_v56 = vrot.slane %v7670_v46, 5  ;;  %v5989_v57 = vcombine.low %v985_v49, %v988_v50  ;;  %9320 = vst [vmem:[#allocation12_spill] sm:$0xff] %v7693_v63  ;;  %v952_v0 = vld [vmem:[%s7554_s20 + $0x24] sm:$0xe]  ;;  %v1012_v1 = vrot.slane %v7600_v18, 5  ;;  %v1007_v19 = vrot.slane %v1005_v60, 4 }
  0x30   : > { %6572 = vmatprep.mubr.msk.bf16.mxu0 %vm605_vm1, %v5963_v20  ;;  %v992_v58 = vsel %vm7651_vm4, %v5980_v52, %v991_v35  ;;  %v995_v59 = vsel %vm7651_vm4, %v993_v48, %v994_v53  ;;  %v999_v61 = vsel %vm7651_vm4, %v5981_v55, %v998_v41  ;;  %v7698_v2 = vld [vmem:[%s7554_s20 + $0x38] sm:$0x1]  ;;  %v953_v7 = vld [vmem:[%s7554_s20 + $0x30] sm:$0xe]  ;;  %v5982_v14 = vrot.slane %v952_v0, 9 }
  0x31   : > { %v1002_v62 = vsel %vm7651_vm4, %v1000_v51, %v1001_v56  ;;  %9321 = vst [vmem:[#allocation13_spill] sm:$0xff] %v7698_v2  ;;  %v5990_v10 = vcombine.low %v992_v58, %v995_v59  ;;  %v1008_v20 = vrot.slane %v7693_v63, 5  ;;  %v1014_v29 = vrot.slane %v1012_v1, 4  ;;  %v7723_v39 = vld [vmem:[%s7554_s20 + $0x44] sm:$0x1] }
  0x32   : > { %v5991_v11 = vcombine.low %v999_v61, %v1002_v62  ;;  %v1015_v33 = vrot.slane %v7698_v2, 5  ;;  %v1006_v3 = vsel %vm7651_vm4, %v5982_v14, %v1005_v60  ;;  %v1019_v35 = vrot.slane %v7615_v22, 5  ;;  %9322 = vst [vmem:[#allocation14_spill] sm:$0xff] %v7723_v39  ;;  %v954_v40 = vld [vmem:[%s7554_s20 + $0x3c] sm:$0xe] }
  0x33   : > { %v1026_v41 = vrot.slane %v7621_v24, 5  ;;  %v323_v45 = vld [vmem:[%s7554_s20 + $0x50] sm:$0x1]  ;;  %v955_v47 = vld [vmem:[%s7554_s20 + $0x48] sm:$0xe]  ;;  %v5984_v50 = vrot.slane %v954_v40, 9 }
  0x34   : > { %v1016_v37 = vsel %vm7651_vm4, %v1014_v29, %v1015_v33  ;;  %v1021_v51 = vrot.slane %v1019_v35, 4  ;;  %v1022_v52 = vrot.slane %v7723_v39, 5  ;;  %v5985_v53 = vrot.slane %v955_v47, 9  ;;  %v324_v61 = vld [vmem:[%s7554_s20 + $0x5c] sm:$0x1] }
  0x35   : > { %v1029_v55 = vrot.slane %v323_v45, 5  ;;  %v1020_v56 = vsel %vm7651_vm4, %v5984_v50, %v1019_v35  ;;  %v1033_v58 = vrot.slane %v7633_v28, 5  ;;  %v956_v62 = vld [vmem:[%s7554_s20 + $0x54] sm:$0xe]  ;;  %v1040_v0 = vrot.slane %v7640_v31, 5 }
  0x36   : > { %v1027_v59 = vsel %vm7651_vm4, %v5985_v53, %v1026_v41  ;;  %v5986_v14 = vrot.slane %v956_v62, 9  ;;  %v958_v40 = vld [vmem:[%s7554_s20 + $0x6c] sm:$0xe]  ;;  %v358_v62 = vshll.u32 %v7568_v6, 16 }
  0x37   : > { %6573 = vmatmul.mubr.msk.bf16.gmra.mrb[8].mxu0 %vm605_vm1, %v5964_v25  ;;  %v1359_v25 = vsel %vm636_vm0, %v1327_v13, 0  ;;  %v1009_v13 = vsel %vm7651_vm4, %v1007_v19, %v1008_v20  ;;  %v1035_v19 = vrot.slane %v1033_v58, 4  ;;  %v1036_v20 = vrot.slane %v324_v61, 5  ;;  %v7292_v53 = vld [vmem:[%s7554_s20 + $0xc] sm:$0xff]  }
  0x38   : > { %6576 = vmatprep.mubr.msk.bf16.mxu0 %vm605_vm1, %v5965_v26  ;;  %v5983_v26 = vrot.slane %v953_v7, 9  ;;  %v5992_v48 = vcombine.low %v1006_v3, %v1009_v13  ;;  %v957_v7 = vld [vmem:[%s7554_s20 + $0x60] sm:$0xe]  ;;  %v1034_v33 = vsel %vm7651_vm4, %v5986_v14, %v1033_v58  ;;  %v1047_v13 = vrot.slane %v7661_v43, 5  ;;  %v7797_v14 = vld [vmem:[%s7554_s20 + $0x10] sm:$0xf] }
  0x39   : > { %v1037_v3 = vsel %vm7651_vm4, %v1035_v19, %v1036_v20  ;;  %v5988_v47 = vrot.slane %v958_v40, 9  ;;  %v355_v61 = vshrl.u32 %v7568_v6, 16 }
  0x3b   : > { %v1048_v50 = vsel %vm7651_vm4, %v5988_v47, %v1047_v13  ;;  %v7803_v20 = vrot.slane %v355_v61, 4  ;;  %v7297_v61 = vld [vmem:[%s7554_s20 + $0x48] sm:$0xff]  }
  0x3f   : > { %6577 = vmatmul.mubr.msk.bf16.gmra.mrb[12].mxu0 %vm605_vm1, %v5966_v34  ;;  %v7709_v34 = vld [vmem:[%s9284_s1 + $0x8] sm:$0x3] }
  0x40   : > { %6580 = vmatprep.mubr.msk.bf16.mxu0 %vm605_vm1, %v5967_v36  ;;  %v1013_v36 = vsel %vm7651_vm4, %v5983_v26, %v1012_v1  ;;  %v325_v1 = vld [vmem:[%s7554_s20 + $0x68] sm:$0x1]  ;;  %v1042_v26 = vrot.slane %v1040_v0, 4 }
  0x41   : > { %v5993_v49 = vcombine.low %v1013_v36, %v1016_v37  ;;  %v1043_v29 = vrot.slane %v325_v1, 5  ;;  %v326_v37 = vld [vmem:[%s7554_s20 + $0x74] sm:$0x1] }
  0x43   : > { %v1044_v36 = vsel %vm7651_vm4, %v1042_v26, %v1043_v29  ;;  %v7296_v26 = vld [vmem:[%s7554_s20 + $0x3c] sm:$0xff]   ;;  %v7807_v29 = vrot.slane %v358_v62, 5 }
  0x47   : > { %6581 = vmatmul.mubr.msk.bf16.gmra.mrb[16].mxu0 %vm605_vm1, %v5968_v54  ;;  %v1028_v54 = vrot.slane %v1026_v41, 4  ;;  %v5996_v41 = vcombine.low %v1034_v33, %v1037_v3 }
  0x48   : > { %6586 = vmatprep.mubr.msk.bf16.mxu0 %vm605_vm1, %v5989_v57  ;;  %v1023_v57 = vsel %vm7651_vm4, %v1021_v51, %v1022_v52 }
  0x49   : > { %v1030_v60 = vsel %vm7651_vm4, %v1028_v54, %v1029_v55  ;;  %v7773_v54 = vld [vmem:[%s9284_s1 + $0x8] ss:$0 sps:$4 sm:$0xcc]   ;;  %v7293_v55 = vld [vmem:[%s7554_s20 + $0x18] sm:$0xff]  }
  0x4a   : > { %v9291_v58 = vrot.slane %v7773_v54, 2 }
  0x4f   : > { %6587 = vmatmul.mubr.msk.bf16.vlgmr.msra.gmra.mrb[0].mxu0 %vm605_vm1, %v5990_v10  ;;  %v5994_v10 = vcombine.low %v1020_v56, %v1023_v57  ;;  %v7294_v56 = vld [vmem:[%s7554_s20 + $0x24] sm:$0xff]   ;;  %v1826_v57 = vsel %vm636_vm0, %v7709_v34, 0 }
  0x50   : > { %6607 = vmatpush3.bf16.msra.mxu0 %v1359_v25  ;;  %6590 = vmatprep.mubr.msk.bf16.mxu0 %vm605_vm1, %v5991_v11  ;;  %v5995_v11 = vcombine.low %v1027_v59, %v1030_v60  ;;  %v5987_v25 = vrot.slane %v957_v7, 9  ;;  %v331_v59 = vshrl.u32 %v7562_v4, 16  ;;  %v334_v60 = vshll.u32 %v7562_v4, 16 }
  0x51   : > { %7192 = vmatprep.subr.msk.bf16.mxu0 %vm636_vm0, %v7709_v34  ;;  %v379_v34 = vshrl.u32 %v7576_v9, 16  ;;  %v382_v4 = vshll.u32 %v7576_v9, 16  ;;  %v403_v7 = vshrl.u32 %v7590_v15, 16  ;;  %v7860_v9 = vld [vmem:[%s7554_s20 + $0x20] sm:$0x1] }
  0x52   : > { %v1041_v35 = vsel %vm7651_vm4, %v5987_v25, %v1040_v0  ;;  %v7799_v19 = vrot.slane %v331_v59, 4  ;;  %v7801_v6 = vrot.slane %v334_v60, 5  ;;  %v406_v25 = vshll.u32 %v7590_v15, 16 }
  0x53   : > { %v5997_v45 = vcombine.low %v1041_v35, %v1044_v36  ;;  %v7809_v33 = vrot.slane %v379_v34, 4  ;;  %v1534_v36 = vshll.u32 %v7797_v14, 16  ;;  %v7815_v15 = vrot.slane %v382_v4, 5 }
  0x54   : > { %v7817_v40 = vrot.slane %v403_v7, 4  ;;  %v7822_v47 = vrot.slane %v406_v25, 5 }
  0x55   : > { %9323 = vst [vmem:[#allocation15_spill] sm:$0xff] %v7809_v33  ;;  %9324 = vst [vmem:[#allocation16_spill] sm:$0xff] %v7815_v15  ;;  %v7839_v59 = vrot.slane %v1534_v36, 5  ;;  %v8006_v15 = vld [vmem:[%s7554_s20 + $0x7c] sm:$0xf] }
  0x56   : > { %9325 = vst [vmem:[#allocation17_spill] sm:$0xff] %v7817_v40  ;;  %9326 = vst [vmem:[#allocation18_spill] sm:$0xff] %v7822_v47  ;;  %v8009_v33 = vld [vmem:[%s7554_s20 + $0x74] sm:$0x1] }
  0x57   : > { %6591 = vmatmul.mubr.msk.bf16.gmra.mrb[4].mxu0 %vm605_vm1, %v5992_v48  ;;  %v1049_v48 = vrot.slane %v1047_v13, 4 }
  0x58   : > { %6594 = vmatprep.mubr.msk.bf16.mxu0 %vm605_vm1, %v5993_v49  ;;  %v1050_v49 = vrot.slane %v326_v37, 5  ;;  %v1538_v37 = vshrl.u32 %v7797_v14, 16 }
  0x5a   : > { %v1051_v51 = vsel %vm7651_vm4, %v1049_v48, %v1050_v49  ;;  %v6055_v49 = vld [vmem:[%s7554_s20 + $0x18] sm:$0xf]  ;;  %v1540_v60 = vrot.slane %v1538_v37, 4 }
  0x5b   : > { %v5998_v52 = vcombine.low %v1048_v50, %v1051_v51  ;;  %v7828_v50 = vld [vmem:[%s7554_s20 + $0x1c] sm:$0xf]  ;;  %v451_v51 = vshrl.u32 %v7612_v21, 16  ;;  %v1549_v62 = vshrl.u32 %v6055_v49, 16  ;;  %v1552_v34 = vshll.u32 %v6055_v49, 16 }
  0x5c   : > { %v1558_v4 = vshll.u32 %v7828_v50, 16  ;;  %v1562_v7 = vshrl.u32 %v7828_v50, 16 }
  0x5d   : > { %v7853_v49 = vrot.slane %v451_v51, 4  ;;  %v1554_v1 = vrot.slane %v1552_v34, 5  ;;  %v7866_v51 = vld [vmem:[%s7554_s20 + $0x2c] sm:$0x1]  ;;  %v7889_v34 = vld [vmem:[%s7554_s20 + $0x40] sm:$0xf] }
  0x5e   : > { %v1564_v36 = vrot.slane %v1562_v7, 4  ;;  %v6061_v7 = vld [vmem:[%s7554_s20 + $0x30] sm:$0xf] }
  0x5f   : > { %6595 = vmatmul.mubr.msk.bf16.gmra.mrb[8].mxu0 %vm605_vm1, %v5994_v10  ;;  %v7295_v10 = vld [vmem:[%s7554_s20 + $0x30] sm:$0xff]   ;;  %9329 = vst [vmem:[#allocation21_spill] sm:$0xff] %v7853_v49  ;;  %v1597_v22 = vshrl.u32 %v6061_v7, 16 }
  0x60   : > { %6598 = vmatprep.mubr.msk.bf16.mxu0 %vm605_vm1, %v5995_v11  ;;  %v6052_v11 = vld [vmem:[%s7554_s20 + $0xc] sm:$0xf] }
  0x61   : > { %v1525_v13 = vshrl.u32 %v6052_v11, 16  ;;  %v1528_v35 = vshll.u32 %v6052_v11, 16 }
  0x67   : > { %6599 = vmatmul.mubr.msk.bf16.gmra.mrb[12].mxu0 %vm605_vm1, %v5996_v41  ;;  %v427_v41 = vshrl.u32 %v7597_v17, 16 }
  0x68   : > { %6602 = vmatprep.mubr.msk.bf16.mxu0 %vm605_vm1, %v5997_v45  ;;  %v430_v45 = vshll.u32 %v7597_v17, 16  ;;  %v6058_v17 = vld [vmem:[%s7554_s20 + $0x24] sm:$0xf] }
  0x69   : > { %v1576_v11 = vshll.u32 %v6058_v17, 16 }
  0x6f   : > { %6603 = vmatmul.mubr.msk.bf16.gmra.mrb[16].mxu0 %vm605_vm1, %v5998_v52  ;;  %v454_v52 = vshll.u32 %v7612_v21, 16  ;;  %v1573_v21 = vshrl.u32 %v6058_v17, 16  ;;  %v1541_v17 = vor.u32 %v1540_v60, %v7839_v59 }
  0x70   : > { %6608 = vmatprep.mubr.msk.bf16.mxu0 %vm605_vm1, %v7292_v53  ;;  %v7834_v53 = vld [vmem:[%s7554_s20 + $0x28] sm:$0xf] }
  0x71   : > { %v1582_v25 = vshll.u32 %v7834_v53, 16  ;;  %v7855_v48 = vrot.slane %v454_v52, 5  ;;  %v1575_v52 = vrot.slane %v1573_v21, 4  ;;  %v6064_v21 = vld [vmem:[%s7554_s20 + $0x3c] sm:$0xf] }
  0x72   : > { %v1621_v18 = vshrl.u32 %v6064_v21, 16 }
  0x73   : > { %9330 = vst [vmem:[#allocation22_spill] sm:$0xff] %v7855_v48  ;;  %v1600_v48 = vshll.u32 %v6061_v7, 16 }
  0x74   : > { %v1623_v16 = vrot.slane %v1621_v18, 4 }
  0x77   : > { %6609 = vmatmul.mubr.msk.bf16.vlgmr.msra.gmra.mrb[0].mxu0 %vm605_vm1, %v7293_v55  ;;  %v7837_v55 = vld [vmem:[%s7554_s20 + $0x14] sm:$0x1] }
  0x78   : > { %6629 = vmatpush3.bf16.msra.mxu0 %v1826_v57  ;;  %6612 = vmatprep.mubr.msk.bf16.mxu0 %vm605_vm1, %v7294_v56  ;;  %v1527_v56 = vrot.slane %v1525_v13, 4  ;;  %v1530_v57 = vrot.slane %v1528_v35, 5  ;;  %v7847_v13 = vrot.slane %v427_v41, 4  ;;  %v7849_v35 = vrot.slane %v430_v45, 5 }
  0x79   : > { %7193 = vmatprep.subr.msk.bf16.mxu0 %vm636_vm0, %v9291_v58  ;;  %v1544_v37 = vshll.u32 %v7837_v55, 16  ;;  %v1551_v41 = vrot.slane %v1549_v62, 4  ;;  %v7862_v45 = vrot.slane %v1558_v4, 5  ;;  %v7876_v58 = vld [vmem:[%s7554_s20 + $0x34] sm:$0xf] }
  0x7a   : > { %9327 = vst [vmem:[#allocation19_spill] sm:$0xff] %v7847_v13  ;;  %9328 = vst [vmem:[#allocation20_spill] sm:$0xff] %v7849_v35  ;;  %v1531_v3 = vor.u32 %v1530_v57, %v1527_v56  ;;  %v1578_v56 = vrot.slane %v1576_v11, 5  ;;  %v7868_v57 = vrot.slane %v1582_v25, 5  ;;  %v7299_v11 = vld [vmem:[%s7554_s20 + $0x60] sm:$0xff]   ;;  %v1606_v49 = vshll.u32 %v7876_v58, 16 }
  0x7b   : > { %v1546_v4 = vrot.slane %v1544_v37, 5  ;;  %v1565_v62 = vor.u32 %v1564_v36, %v7862_v45  ;;  %v1592_v37 = vshll.u32 %v7866_v51, 16  ;;  %v1610_v2 = vshrl.u32 %v7876_v58, 16  ;;  %v7905_v13 = vld [vmem:[%s7554_s20 + $0x38] sm:$0x1] }
  0x7c   : > { %v1532_v0 = vrot.slane %v1531_v3, 4  ;;  %v7300_v3 = vld [vmem:[%s7554_s20 + $0x6c] sm:$0xff]   ;;  %v1579_v24 = vor.u32 %v1578_v56, %v1575_v52  ;;  %v1634_v52 = vshrl.u32 %v7889_v34, 16  ;;  %v7907_v63 = vrot.slane %v1606_v49, 5 }
  0x7d   : > { %v1566_v7 = vrot.slane %v1565_v62, 4  ;;  %v1594_v35 = vrot.slane %v1592_v37, 5  ;;  %v6067_v37 = vld [vmem:[%s7554_s20 + $0x48] sm:$0xf] }
  0x7f   : > { %6613 = vmatmul.mubr.msk.bf16.gmra.mrb[4].mxu0 %vm605_vm1, %v7295_v10  ;;  %v7298_v10 = vld [vmem:[%s7554_s20 + $0x54] sm:$0xff]  }
  0x80   : > { %6616 = vmatprep.mubr.msk.bf16.mxu0 %vm605_vm1, %v7296_v26  ;;  %v1586_v26 = vshrl.u32 %v7834_v53, 16 }
  0x82   : > { %v1588_v60 = vrot.slane %v1586_v26, 4  ;;  %v1542_v26 = vrot.slane %v1541_v17, 4  ;;  %v1624_v17 = vshll.u32 %v6064_v21, 16  ;;  %v1580_v21 = vrot.slane %v1579_v24, 4 }
  0x83   : > { %v1648_v24 = vshll.u32 %v6067_v37, 16 }
  0x84   : > { %v1589_v39 = vor.u32 %v1588_v60, %v7868_v57  ;;  %v1547_v56 = vsel %vm7882_vm7, %v1542_v26, %v1546_v4  ;;  %v1626_v4 = vrot.slane %v1624_v17, 5  ;;  %v1636_v26 = vrot.slane %v1634_v52, 4  ;;  %v7933_v52 = vld [vmem:[%s7554_s20 + $0x58] sm:$0xf] }
  0x85   : > { %v1585_v49 = vsel %vm7882_vm7, %v1580_v21, %v7868_v57  ;;  %9335 = vst [vmem:[#allocation25_spill] sm:$0xff] %v7933_v52 }
  0x87   : > { %6617 = vmatmul.mubr.msk.bf16.gmra.mrb[8].mxu0 %vm605_vm1, %v7297_v61  ;;  %v1555_v61 = vor.u32 %v1554_v1, %v1551_v41  ;;  %v1537_v1 = vsel %vm7882_vm7, %v1532_v0, %v7839_v59  ;;  %v1630_v41 = vshll.u32 %v7889_v34, 16  ;;  %v1590_v0 = vrot.slane %v1589_v39, 4 }
  0x88   : > { %6620 = vmatprep.mubr.msk.bf16.mxu0 %vm605_vm1, %v7298_v10  ;;  %v1568_v10 = vshll.u32 %v7860_v9, 16  ;;  %v1599_v59 = vrot.slane %v1597_v22, 4  ;;  %v7301_v22 = vld [vmem:[%s7554_s20 + $0x78] sm:$0xff]   ;;  %v6082_v39 = vcombine.low %v1537_v1, %v1547_v56  ;;  %v6070_v1 = vld [vmem:[%s7554_s20 + $0x54] sm:$0xf]  ;;  %v1627_v56 = vor.u32 %v1626_v4, %v1623_v16 }
  0x89   : > { %v1556_v60 = vrot.slane %v1555_v61, 4  ;;  %v7910_v61 = vld [vmem:[%s7554_s20 + $0x44] sm:$0x1]  ;;  %v7912_v62 = vrot.slane %v1630_v41, 5  ;;  %v1616_v41 = vshll.u32 %v7905_v13, 16 }
  0x8a   : > { %v1570_v36 = vrot.slane %v1568_v10, 5  ;;  %v1602_v10 = vrot.slane %v1600_v48, 5  ;;  %9333 = vst [vmem:[#allocation23_spill] sm:$0xff] %v7910_v61  ;;  %v1628_v40 = vrot.slane %v1627_v56, 4 }
  0x8b   : > { %v1561_v48 = vsel %vm7882_vm7, %v1556_v60, %v7862_v45  ;;  %v1645_v60 = vshrl.u32 %v6067_v37, 16  ;;  %v1618_v4 = vrot.slane %v1616_v41, 5  ;;  %v6073_v37 = vld [vmem:[%s7554_s20 + $0x60] sm:$0xf] }
  0x8c   : > { %v1571_v18 = vsel %vm7882_vm7, %v1566_v7, %v1570_v36  ;;  %v1603_v17 = vor.u32 %v1602_v10, %v1599_v59  ;;  %v1640_v36 = vshll.u32 %v7910_v61, 16  ;;  %v1637_v7 = vor.u32 %v1636_v26, %v7912_v62 }
  0x8d   : > { %v6083_v21 = vcombine.low %v1561_v48, %v1571_v18  ;;  %v1672_v59 = vshll.u32 %v6070_v1, 16  ;;  %v1678_v10 = vshll.u32 %v7933_v52, 16  ;;  %v1682_v26 = vshrl.u32 %v7933_v52, 16 }
  0x8e   : > { %v1642_v46 = vrot.slane %v1640_v36, 5  ;;  %v1638_v48 = vrot.slane %v1637_v7, 4  ;;  %v1650_v18 = vrot.slane %v1648_v24, 5  ;;  %v1693_v41 = vshrl.u32 %v6073_v37, 16 }
  0x8f   : > { %6621 = vmatmul.mubr.msk.bf16.gmra.mrb[12].mxu0 %vm605_vm1, %v7299_v11  ;;  %v1612_v11 = vrot.slane %v1610_v2, 4  ;;  %v7923_v2 = vld [vmem:[%s7554_s20 + $0x4c] sm:$0xf]  ;;  %v1684_v56 = vrot.slane %v1682_v26, 4  ;;  %v1696_v36 = vshll.u32 %v6073_v37, 16  ;;  %v1633_v26 = vsel %vm7882_vm7, %v1628_v40, %v7912_v62 }
  0x90   : > { %6624 = vmatprep.mubr.msk.bf16.mxu0 %vm605_vm1, %v7300_v3  ;;  %9334 = vst [vmem:[#allocation24_spill] sm:$0xff] %v7923_v2  ;;  %v1595_v3 = vsel %vm7882_vm7, %v1590_v0, %v1594_v35  ;;  %v1654_v57 = vshll.u32 %v7923_v2, 16  ;;  %v1658_v35 = vshrl.u32 %v7923_v2, 16  ;;  %v1669_v0 = vshrl.u32 %v6070_v1, 16 }
  0x91   : > { %v1613_v45 = vor.u32 %v1612_v11, %v7907_v63  ;;  %v6084_v16 = vcombine.low %v1585_v49, %v1595_v3  ;;  %v1604_v11 = vrot.slane %v1603_v17, 4  ;;  %v1647_v2 = vrot.slane %v1645_v60, 4 }
  0x92   : > { %v7948_v1 = vrot.slane %v1654_v57, 5  ;;  %v1660_v12 = vrot.slane %v1658_v35, 4  ;;  %v1671_v49 = vrot.slane %v1669_v0, 4  ;;  %v1674_v3 = vrot.slane %v1672_v59, 5 }
  0x93   : > { %v1614_v47 = vrot.slane %v1613_v45, 4  ;;  %v7953_v17 = vrot.slane %v1678_v10, 5  ;;  %v7956_v45 = vld [vmem:[%s7554_s20 + $0x5c] sm:$0x1]  ;;  %v9339_v57 = vrot.slane %v7773_v54, 2  ;;  %v1609_v0 = vsel %vm7882_vm7, %v1604_v11, %v7907_v63 }
  0x94   : > { %9338 = vst [vmem:[#allocation28_spill] sm:$0xff] %v7956_v45  ;;  %v6076_v10 = vld [vmem:[%s7554_s20 + $0x6c] sm:$0xf]  ;;  %v1651_v37 = vor.u32 %v1650_v18, %v1647_v2  ;;  %v1661_v7 = vor.u32 %v1660_v12, %v7948_v1  ;;  %v1675_v11 = vor.u32 %v1674_v3, %v1671_v49  ;;  %v1688_v40 = vshll.u32 %v7956_v45, 16 }
  0x95   : > { %v2137_v35 = vsel %vm636_vm0, %v9339_v57, 0  ;;  %v1619_v59 = vsel %vm7882_vm7, %v1614_v47, %v1618_v4  ;;  %v7981_v63 = vld [vmem:[%s9284_s1 + $0xc] sm:$0x3]  ;;  %v1643_v47 = vsel %vm7882_vm7, %v1638_v48, %v1642_v46  ;;  %v1695_v62 = vrot.slane %v1693_v41, 4  ;;  %v7992_v57 = vld [vmem:[%s7554_s20 + $0x68] sm:$0x1] }
  0x96   : > { %v1685_v12 = vor.u32 %v1684_v56, %v7953_v17  ;;  %v1698_v2 = vrot.slane %v1696_v36, 5  ;;  %v1720_v52 = vshll.u32 %v6076_v10, 16  ;;  %v6085_v3 = vcombine.low %v1609_v0, %v1619_v59 }
  0x97   : > { %6625 = vmatmul.mubr.msk.bf16.gmra.mrb[16].mxu0 %vm605_vm1, %v7301_v22  ;;  %v7946_v22 = vld [vmem:[%s7554_s20 + $0x64] sm:$0xf]  ;;  %v1652_v41 = vrot.slane %v1651_v37, 4  ;;  %v6086_v36 = vcombine.low %v1633_v26, %v1643_v47  ;;  %v1712_v61 = vshll.u32 %v7992_v57, 16  ;;  %v512_v37 = vshrl.u32 %v7633_v28, 16 }
  0x98   : > { %6630 = vmatprep.mubr.msk.bf16.mxu0 %vm605_vm1, %v6082_v39  ;;  %9336 = vst [vmem:[#allocation26_spill] sm:$0xff] %v7946_v22  ;;  %v7951_v39 = vld [vmem:[%s7554_s20 + $0x50] sm:$0x1]  ;;  %v1702_v60 = vshll.u32 %v7946_v22, 16  ;;  %v1706_v24 = vshrl.u32 %v7946_v22, 16  ;;  %v1686_v45 = vrot.slane %v1685_v12, 4 }
  0x99   : > { %9337 = vst [vmem:[#allocation27_spill] sm:$0xff] %v7951_v39  ;;  %v1664_v54 = vshll.u32 %v7951_v39, 16  ;;  %v7976_v22 = vld [vmem:[%s7554_s20 + $0x70] sm:$0xf]  ;;  %v1699_v39 = vor.u32 %v1698_v2, %v1695_v62  ;;  %v1714_v2 = vrot.slane %v1712_v61, 5  ;;  %v523_v61 = vshrl.u32 %v7637_v30, 16 }
  0x9a   : > { %9340 = vst [vmem:[#allocation29_spill] sm:$0xff] %v7976_v22  ;;  %v7989_v4 = vrot.slane %v1702_v60, 5  ;;  %v1708_v18 = vrot.slane %v1706_v24, 4  ;;  %v1726_v46 = vshll.u32 %v7976_v22, 16  ;;  %v1730_v48 = vshrl.u32 %v7976_v22, 16 }
  0x9b   : > { %v1666_v56 = vrot.slane %v1664_v54, 5  ;;  %v1662_v60 = vrot.slane %v1661_v7, 4  ;;  %v1676_v24 = vrot.slane %v1675_v11, 4  ;;  %v9343_v7 = vshll.u32 %v7618_v23, 16 }
  0x9c   : > { %v1709_v22 = vor.u32 %v1708_v18, %v7989_v4  ;;  %v8011_v0 = vrot.slane %v1726_v46, 5  ;;  %v1732_v59 = vrot.slane %v1730_v48, 4  ;;  %v1657_v11 = vsel %vm7882_vm7, %v1652_v41, %v7948_v1 }
  0x9d   : > { %v8015_v26 = vrot.slane %v9343_v7, 5  ;;  %v1681_v62 = vsel %vm7882_vm7, %v1676_v24, %v7953_v17  ;;  %v1700_v12 = vrot.slane %v1699_v39, 4  ;;  %v1736_v18 = vshll.u32 %v8009_v33, 16 }
  0x9e   : > { %v1733_v48 = vor.u32 %v1732_v59, %v8011_v0  ;;  %v2003_v39 = vrot.slane %v7797_v14, 5 }
  0x9f   : > { %6631 = vmatmul.mubr.msk.bf16.vlgmr.msra.gmra.mrb[0].mxu0 %vm605_vm1, %v6083_v21  ;;  %v1717_v21 = vshrl.u32 %v6076_v10, 16  ;;  %v6079_v10 = vld [vmem:[%s7554_s20 + $0x78] sm:$0xf] }
  0xa0   : > { %6651 = vmatpush3.bf16.msra.mxu0 %v2137_v35  ;;  %6634 = vmatprep.mubr.msk.bf16.mxu0 %vm605_vm1, %v6084_v16  ;;  %v9341_v16 = vshrl.u32 %v7618_v23, 16  ;;  %v1690_v35 = vrot.slane %v1688_v40, 5  ;;  %v1741_v54 = vshrl.u32 %v6079_v10, 16  ;;  %v1744_v47 = vshll.u32 %v6079_v10, 16 }
  0xa1   : > { %7194 = vmatprep.subr.msk.bf16.mxu0 %vm636_vm0, %v7981_v63  ;;  %v1750_v40 = vshll.u32 %v8006_v15, 16  ;;  %v1754_v23 = vshrl.u32 %v8006_v15, 16  ;;  %v1705_v10 = vsel %vm7882_vm7, %v1700_v12, %v7989_v4  ;;  %v1734_v7 = vrot.slane %v1733_v48, 4 }
  0xa2   : > { %v8000_v49 = vrot.slane %v9341_v16, 4  ;;  %v1719_v16 = vrot.slane %v1717_v21, 4  ;;  %v1691_v1 = vsel %vm7882_vm7, %v1686_v45, %v1690_v35  ;;  %v1710_v21 = vrot.slane %v1709_v22, 4  ;;  %v6102_v45 = vld [vmem:[%s7554_s20 + $0xc] sm:$0xe] }
  0xa3   : > { %v1746_v17 = vrot.slane %v1744_v47, 5  ;;  %v8043_v24 = vrot.slane %v1750_v40, 5  ;;  %v1756_v22 = vrot.slane %v1754_v23, 4  ;;  %v6088_v35 = vcombine.low %v1681_v62, %v1691_v1  ;;  %v6103_v23 = vld [vmem:[%s7554_s20 + $0x18] sm:$0xe] }
  0xa4   : > { %9342 = vst [vmem:[#allocation30_spill] sm:$0xff] %v8000_v49  ;;  %v1722_v49 = vrot.slane %v1720_v52, 5  ;;  %v1667_v52 = vsel %vm7882_vm7, %v1662_v60, %v1666_v56  ;;  %v8039_v56 = vld [vmem:[%s7554_s20 + $0x80] sm:$0x1]  ;;  %v1715_v59 = vsel %vm7882_vm7, %v1710_v21, %v1714_v2  ;;  %v2006_v40 = vrot.slane %v7837_v55, 5 }
  0xa5   : > { %v6087_v60 = vcombine.low %v1657_v11, %v1667_v52  ;;  %v6112_v11 = vrot.slane %v6102_v45, 9  ;;  %v2005_v52 = vrot.slane %v2003_v39, 4  ;;  %v536_v4 = vshrl.u32 %v7640_v31, 16 }
  0xa6   : > { %v1723_v46 = vor.u32 %v1722_v49, %v1719_v16  ;;  %v526_v49 = vshll.u32 %v7637_v30, 16  ;;  %v1738_v16 = vrot.slane %v1736_v18, 5  ;;  %v9345_v30 = vshll.u32 %v7630_v27, 16 }
  0xa7   : > { %6635 = vmatmul.mubr.msk.bf16.gmra.mrb[4].mxu0 %vm605_vm1, %v6085_v3  ;;  %v9344_v3 = vshrl.u32 %v7630_v27, 16  ;;  %v1757_v12 = vor.u32 %v1756_v22, %v8043_v24  ;;  %v2010_v2 = vrot.slane %v7828_v50, 5  ;;  %v8063_v18 = vrot.slane %v523_v61, 4 }
  0xa8   : > { %6638 = vmatprep.mubr.msk.bf16.mxu0 %vm605_vm1, %v6086_v36  ;;  %v1743_v36 = vrot.slane %v1741_v54, 4  ;;  %v1724_v14 = vrot.slane %v1723_v46, 4  ;;  %v1760_v54 = vshll.u32 %v8039_v56, 16  ;;  %v8057_v62 = vrot.slane %v9345_v30, 5 }
  0xa9   : > { %v8036_v41 = vrot.slane %v9344_v3, 4  ;;  %v8065_v1 = vrot.slane %v526_v49, 5  ;;  %v547_v21 = vshrl.u32 %v7658_v42, 16  ;;  %v550_v55 = vshll.u32 %v7658_v42, 16 }
  0xaa   : > { %v1747_v47 = vor.u32 %v1746_v17, %v1743_v36  ;;  %v6089_v27 = vcombine.low %v1705_v10, %v1715_v59  ;;  %v1729_v46 = vsel %vm7882_vm7, %v1724_v14, %v8011_v0  ;;  %v1739_v48 = vsel %vm7882_vm7, %v1734_v7, %v1738_v16  ;;  %v6104_v10 = vld [vmem:[%s7554_s20 + $0x24] sm:$0xe] }
  0xab   : > { %v6113_v50 = vrot.slane %v6103_v23, 9  ;;  %v1762_v36 = vrot.slane %v1760_v54, 5  ;;  %v8077_v17 = vsel %vm7651_vm4, %v6112_v11, %v2003_v39  ;;  %v8081_v61 = vsel %vm7651_vm4, %v2005_v52, %v2006_v40  ;;  %v7314_v39 = vld [vmem:[%s9284_s1] ss:$0 sps:$4 sm:$0xcc]  }
  0xac   : > { %v1748_v3 = vrot.slane %v1747_v47, 4  ;;  %v2012_v22 = vrot.slane %v2010_v2, 4  ;;  %v2013_v45 = vrot.slane %v7860_v9, 5  ;;  %v340_v0 = vshll.u32 %v7565_v5, 16 }
  0xad   : > { %v560_v49 = vshrl.u32 %v7661_v43, 16  ;;  %v6122_v16 = vcombine.low %v8077_v17, %v8081_v61  ;;  %v8094_v59 = vsel %vm7651_vm4, %v6113_v50, %v2010_v2  ;;  %v2017_v9 = vrot.slane %v7834_v53, 5 }
  0xae   : > { %v337_v14 = vor.u32 %v7801_v6, %v7799_v19  ;;  %v1753_v7 = vsel %vm7882_vm7, %v1748_v3, %v8043_v24  ;;  %v604_v54 = vrot.slane %v7314_v39, 2  ;;  %v342_v47 = vrot.slane %v340_v0, 5  ;;  %v6105_v24 = vld [vmem:[%s7554_s20 + $0x30] sm:$0xe] }
  0xaf   : > { %6639 = vmatmul.mubr.msk.bf16.gmra.mrb[8].mxu0 %vm605_vm1, %v6087_v60  ;;  %v1758_v60 = vrot.slane %v1757_v12, 4  ;;  %v9346_v11 = vshrl.u32 %v7565_v5, 16  ;;  %v8109_v53 = vsel %vm7651_vm4, %v2012_v22, %v2013_v45  ;;  %v6114_v19 = vrot.slane %v6104_v10, 9 }
  0xb0   : > { %6642 = vmatprep.mubr.msk.bf16.mxu0 %vm605_vm1, %v6088_v35  ;;  %v6090_v35 = vcombine.low %v1729_v46, %v1739_v48  ;;  %v338_v6 = vrot.slane %v337_v14, 4  ;;  %7188 = vmatprep.subr.msk.bf16.mxu1 %vm636_vm0, %v604_v54  ;;  %v638_v5 = vsel %vm636_vm0, %v604_v54, 0  ;;  %v350_v30 = vshll.u32 %v7643_v32, 16  ;;  %v7315_v48 = vld [vmem:[%s7554_s20 + $0x10] sm:$0xf] }
  0xb1   : > { %v346_v52 = vrot.slane %v9346_v11, 4  ;;  %v1763_v40 = vsel %vm7882_vm7, %v1758_v60, %v1762_v36  ;;  %v361_v12 = vor.u32 %v7807_v29, %v7803_v20  ;;  %v2019_v2 = vrot.slane %v2017_v9, 4  ;;  %6541 = vmatpush3.bf16.msra.mxu1 %v638_v5  ;;  %v9349_v11 = vld [vmem:[#allocation16_spill] sm:$0xff]  ;;  %v9351_v5 = vld [vmem:[#allocation6_spill] sm:$0xff] }
  0xb2   : > { %v2024_v46 = vrot.slane %v7876_v58, 5  ;;  %v364_v50 = vshll.u32 %v7315_v48, 16  ;;  %v343_v3 = vsel %vm7882_vm7, %v338_v6, %v342_v47  ;;  %v352_v17 = vrot.slane %v350_v30, 5 }
  0xb3   : > { %v347_v23 = vor.u32 %v346_v52, %v342_v47  ;;  %v9347_v61 = vshrl.u32 %v7573_v8, 16  ;;  %v6091_v60 = vcombine.low %v1753_v7, %v1763_v40  ;;  %v362_v22 = vrot.slane %v361_v12, 4  ;;  %v6106_v8 = vld [vmem:[%s7554_s20 + $0x3c] sm:$0xe]  ;;  %v9353_v12 = vld [vmem:[#allocation24_spill] sm:$0xff] }
  0xb4   : > { %v366_v20 = vrot.slane %v364_v50, 5  ;;  %v374_v29 = vshll.u32 %v7664_v44, 16  ;;  %v6123_v58 = vcombine.low %v8094_v59, %v8109_v53  ;;  %v6115_v45 = vrot.slane %v6105_v24, 9  ;;  %v9348_v47 = vld [vmem:[#allocation15_spill] sm:$0xff] }
  0xb5   : > { %v348_v36 = vrot.slane %v347_v23, 4  ;;  %v370_v32 = vrot.slane %v9347_v61, 4  ;;  %v2018_v44 = vsel %vm7651_vm4, %v6114_v19, %v2017_v9  ;;  %v2026_v7 = vrot.slane %v2024_v46, 4  ;;  %v7316_v40 = vld [vmem:[%s7554_s20 + $0x1c] sm:$0xf]  ;;  %v9356_v61 = vld [vmem:[#allocation18_spill] sm:$0xff] }
  0xb6   : > { %v376_v14 = vrot.slane %v374_v29, 5  ;;  %v385_v52 = vor.u32 %v9349_v11, %v9348_v47  ;;  %v388_v53 = vshll.u32 %v7316_v40, 16  ;;  %v8154_v9 = vsel %vm7651_vm4, %v6115_v45, %v2024_v46  ;;  %v9350_v19 = vld [vmem:[#allocation23_spill] sm:$0xff]  ;;  %v8160_v24 = vld [vmem:[%s9284_s1 + $0xc] ss:$0 sps:$4 sm:$0xcc]  }
  0xb7   : > { %6643 = vmatmul.mubr.msk.bf16.gmra.mrb[12].mxu0 %vm605_vm1, %v6089_v27  ;;  %v2020_v27 = vrot.slane %v7866_v51, 5  ;;  %v2378_v51 = vsel %vm636_vm0, %v7981_v63, 0  ;;  %v353_v0 = vsel %vm7882_vm7, %v348_v36, %v352_v17  ;;  %v371_v39 = vor.u32 %v370_v32, %v366_v20  ;;  %v9355_v17 = vld [vmem:[#allocation17_spill] sm:$0xff] }
  0xb8   : > { %6646 = vmatprep.mubr.msk.bf16.mxu0 %vm605_vm1, %v6090_v35  ;;  %v2027_v35 = vrot.slane %v7905_v13, 5  ;;  %v5938_v10 = vcombine.low %v343_v3, %v353_v0  ;;  %v2031_v63 = vrot.slane %v7889_v34, 5  ;;  %v367_v13 = vsel %vm7882_vm7, %v362_v22, %v366_v20  ;;  %v9354_v3 = vld [vmem:[#allocation11_spill] sm:$0xff]  ;;  %v6107_v20 = vld [vmem:[%s7554_s20 + $0x48] sm:$0xe] }
  0xb9   : > { %v2021_v59 = vsel %vm7651_vm4, %v2019_v2, %v2020_v27  ;;  %v372_v54 = vrot.slane %v371_v39, 4  ;;  %v6116_v34 = vrot.slane %v6106_v8, 9  ;;  %v2034_v6 = vrot.slane %v9350_v19, 5  ;;  %v7317_v45 = vld [vmem:[%s7554_s20 + $0x28] sm:$0xf]  ;;  %v9357_v39 = vld [vmem:[#allocation7_spill] sm:$0xff] }
  0xba   : > { %6542 = vmatprep.mubr.msk.bf16.mxu1 %vm605_vm1, %v5938_v10  ;;  %v9352_v23 = vshrl.u32 %v9351_v5, 16  ;;  %v2038_v2 = vrot.slane %v9353_v12, 5  ;;  %v386_v27 = vrot.slane %v385_v52, 4  ;;  %v390_v46 = vrot.slane %v388_v53, 5  ;;  %v9360_v53 = vld [vmem:[#allocation27_spill] sm:$0xff] }
  0xbb   : > { %v6124_v48 = vcombine.low %v2018_v44, %v2021_v59  ;;  %v398_v36 = vshll.u32 %v9354_v3, 16  ;;  %v409_v32 = vor.u32 %v9356_v61, %v9355_v17  ;;  %v2033_v22 = vrot.slane %v2031_v63, 4  ;;  %v9359_v59 = vld [vmem:[#allocation12_spill] sm:$0xff] }
  0xbc   : > { %v394_v30 = vrot.slane %v9352_v23, 4  ;;  %v412_v0 = vshll.u32 %v7317_v45, 16  ;;  %v2817_v8 = vrot.slane %v8160_v24, 2  ;;  %v8185_v11 = vrot.slane %v547_v21, 4  ;;  %v6108_v23 = vld [vmem:[%s7554_s20 + $0x54] sm:$0xe] }
  0xbd   : > { %v400_v10 = vrot.slane %v398_v36, 5  ;;  %v2032_v52 = vsel %vm7651_vm4, %v6116_v34, %v2031_v63  ;;  %v6117_v40 = vrot.slane %v6107_v20, 9  ;;  %v2041_v19 = vrot.slane %v9360_v53, 5  ;;  %v9361_v34 = vld [vmem:[#allocation25_spill] sm:$0xff]  ;;  %v9364_v61 = vld [vmem:[#allocation8_spill] sm:$0xff] }
  0xbe   : > { %v395_v29 = vor.u32 %v394_v30, %v390_v46  ;;  %v414_v47 = vrot.slane %v412_v0, 5  ;;  %v2035_v21 = vsel %vm7651_vm4, %v2033_v22, %v2034_v6  ;;  %v2040_v63 = vrot.slane %v2038_v2, 4  ;;  %v9366_v22 = vld [vmem:[#allocation13_spill] sm:$0xff]  ;;  %v9367_v45 = vld [vmem:[#allocation28_spill] sm:$0xff] }
  0xbf   : > { %6647 = vmatmul.mubr.msk.bf16.gmra.mrb[16].mxu0 %vm605_vm1, %v6091_v60  ;;  %v8172_v60 = vsel %vm7651_vm4, %v2026_v7, %v2027_v35  ;;  %v391_v35 = vsel %vm7882_vm7, %v386_v27, %v390_v46  ;;  %v8210_v6 = vsel %vm7651_vm4, %v6117_v40, %v2038_v2  ;;  %v6118_v17 = vrot.slane %v6108_v23, 9  ;;  %v7319_v40 = vld [vmem:[%s7554_s20 + $0x40] sm:$0xf]  ;;  %v9370_v53 = vld [vmem:[#allocation9_spill] sm:$0xff] }
  0xc0   : > { %6652 = vmatprep.mubr.msk.bf16.mxu0 %vm605_vm1, %v6122_v16  ;;  %v377_v16 = vsel %vm7882_vm7, %v372_v54, %v376_v14  ;;  %v9358_v14 = vshrl.u32 %v9357_v39, 16  ;;  %v396_v7 = vrot.slane %v395_v29, 4  ;;  %v410_v54 = vrot.slane %v409_v32, 4  ;;  %v7308_v24 = vld [vmem:[%s7554_s20 + $0x48] sm:$0xff]  }
  0xc1   : > { %v5939_v50 = vcombine.low %v367_v13, %v377_v16  ;;  %v422_v13 = vshll.u32 %v9359_v59, 16  ;;  %v6125_v5 = vcombine.low %v8154_v9, %v8172_v60  ;;  %v9365_v32 = vshrl.u32 %v9364_v61, 16 }
  0xc2   : > { %v418_v44 = vrot.slane %v9358_v14, 4  ;;  %v401_v30 = vsel %vm7882_vm7, %v396_v7, %v400_v10  ;;  %v415_v9 = vsel %vm7882_vm7, %v410_v54, %v414_v47  ;;  %v446_v20 = vshll.u32 %v9366_v22, 16  ;;  %v6109_v10 = vld [vmem:[%s7554_s20 + $0x60] sm:$0xe]  ;;  %v9368_v14 = vld [vmem:[#allocation21_spill] sm:$0xff] }
  0xc3   : > { %6543 = vmatmul.mubr.msk.bf16.vlgmr.msra.gmra.mrb[0].mxu1 %vm605_vm1, %v5939_v50  ;;  %v424_v16 = vrot.slane %v422_v13, 5  ;;  %v5940_v27 = vcombine.low %v391_v35, %v401_v30  ;;  %v9362_v50 = vld [vmem:[#allocation19_spill] sm:$0xff]  ;;  %v442_v60 = vrot.slane %v9365_v32, 4  ;;  %v6126_v29 = vcombine.low %v2032_v52, %v2035_v21 }
  0xc4   : > { %v419_v12 = vor.u32 %v418_v44, %v414_v47  ;;  %v2048_v0 = vrot.slane %v9367_v45, 5  ;;  %v9369_v44 = vld [vmem:[#allocation22_spill] sm:$0xff]  ;;  %v2042_v59 = vsel %vm7651_vm4, %v2040_v63, %v2041_v19  ;;  %v8225_v47 = vld [vmem:[%s7554_s20 + $0x6c] sm:$0xe]  ;;  %v460_v52 = vshll.u32 %v7319_v40, 16 }
  0xc5   : > { %6546 = vmatprep.mubr.msk.bf16.mxu1 %vm605_vm1, %v5940_v27  ;;  %v457_v2 = vor.u32 %v9369_v44, %v9368_v14  ;;  %v9371_v23 = vshrl.u32 %v9370_v53, 16  ;;  %v448_v19 = vrot.slane %v446_v20, 5  ;;  %v6127_v63 = vcombine.low %v8210_v6, %v2042_v59  ;;  %v9374_v6 = vld [vmem:[#allocation29_spill] sm:$0xff]  ;;  %v9376_v59 = vld [vmem:[#allocation10_spill] sm:$0xff]  ;;  %v7322_v40 = vld [vmem:[%s7554_s20 + $0x58] sm:$0xf] }
  0xc6   : > { %v420_v46 = vrot.slane %v419_v12, 4  ;;  %v9372_v12 = vld [vmem:[#allocation14_spill] sm:$0xff]  ;;  %v2062_v45 = vrot.slane %v8009_v33, 5  ;;  %v7320_v44 = vld [vmem:[%s7554_s20 + $0x4c] sm:$0xf] }
  0xc7   : > { %6653 = vmatmul.mubr.msk.bf16.vlgmr.msra.gmra.mrb[0].mxu0 %vm605_vm1, %v6123_v58  ;;  %v2045_v58 = vrot.slane %v9361_v34, 5  ;;  %v466_v30 = vrot.slane %v9371_v23, 4  ;;  %v470_v21 = vshll.u32 %v9372_v12, 16  ;;  %v9373_v34 = vld [vmem:[#allocation26_spill] sm:$0xff]  ;;  %v514_v12 = vrot.slane %v512_v37, 4 }
  0xc8   : > { %6673 = vmatpush3.bf16.msra.mxu0 %v2378_v51  ;;  %6656 = vmatprep.mubr.msk.bf16.mxu0 %vm605_vm1, %v6124_v48  ;;  %v9363_v51 = vld [vmem:[#allocation20_spill] sm:$0xff]  ;;  %v7318_v48 = vld [vmem:[%s7554_s20 + $0x34] sm:$0xf]  ;;  %v425_v39 = vsel %vm7882_vm7, %v420_v46, %v424_v16  ;;  %v6119_v16 = vrot.slane %v6109_v10, 9  ;;  %v2052_v27 = vrot.slane %v9373_v34, 5 }
  0xc9   : > { %7195 = vmatprep.subr.msk.bf16.mxu0 %vm636_vm0, %v2817_v8  ;;  %v433_v3 = vor.u32 %v9363_v51, %v9362_v50  ;;  %v436_v36 = vshll.u32 %v7318_v48, 16  ;;  %v5941_v13 = vcombine.low %v415_v9, %v425_v39  ;;  %v2047_v54 = vrot.slane %v2045_v58, 4 }
  0xca   : > { %v2055_v9 = vrot.slane %v7992_v57, 5  ;;  %v458_v50 = vrot.slane %v457_v2, 4  ;;  %v462_v51 = vrot.slane %v460_v52, 5  ;;  %v6120_v48 = vrot.slane %v8225_v47, 9 }
  0xcb   : > { %v434_v35 = vrot.slane %v433_v3, 4  ;;  %v438_v7 = vrot.slane %v436_v36, 5  ;;  %6547 = vmatmul.mubr.msk.bf16.gmra.mrb[4].mxu1 %vm605_vm1, %v5941_v13  ;;  %v2046_v3 = vsel %vm7651_vm4, %v6118_v17, %v2045_v58  ;;  %v2059_v57 = vrot.slane %v9374_v6, 5  ;;  %v9375_v17 = vld [vmem:[#allocation30_spill] sm:$0xff] }
  0xcc   : > { %v467_v32 = vor.u32 %v466_v30, %v462_v51  ;;  %v2053_v22 = vsel %vm7651_vm4, %v6119_v16, %v2052_v27  ;;  %v2054_v20 = vrot.slane %v2052_v27, 4  ;;  %v484_v2 = vshll.u32 %v7320_v44, 16  ;;  %v6111_v16 = vld [vmem:[%s7554_s20 + $0x78] sm:$0xe] }
  0xcd   : > { %v443_v46 = vor.u32 %v442_v60, %v438_v7  ;;  %v439_v36 = vsel %vm7882_vm7, %v434_v35, %v438_v7  ;;  %v472_v60 = vrot.slane %v470_v21, 5  ;;  %v9377_v13 = vshrl.u32 %v9376_v59, 16  ;;  %v7321_v7 = vld [vmem:[%s7554_s20 + $0x50] sm:$0x1] }
  0xce   : > { %v468_v39 = vrot.slane %v467_v32, 4  ;;  %v2061_v47 = vrot.slane %v2059_v57, 4  ;;  %v508_v52 = vshll.u32 %v7322_v40, 16  ;;  %v486_v30 = vrot.slane %v484_v2, 5  ;;  %v7327_v2 = vld [vmem:[%s7554_s20 + $0x74] sm:$0x1] }
  0xcf   : > { %6657 = vmatmul.mubr.msk.bf16.gmra.mrb[4].mxu0 %vm605_vm1, %v6125_v5  ;;  %v444_v61 = vrot.slane %v443_v46, 4  ;;  %v2049_v5 = vsel %vm7651_vm4, %v2047_v54, %v2048_v0  ;;  %v463_v0 = vsel %vm7882_vm7, %v458_v50, %v462_v51  ;;  %v490_v35 = vrot.slane %v9377_v13, 4  ;;  %v7323_v46 = vld [vmem:[%s7554_s20 + $0x5c] sm:$0x1] }
  0xd0   : > { %6660 = vmatprep.mubr.msk.bf16.mxu0 %vm605_vm1, %v6126_v29  ;;  %v481_v29 = vor.u32 %v8015_v26, %v9375_v17  ;;  %v6128_v14 = vcombine.low %v2046_v3, %v2049_v5  ;;  %v494_v54 = vshll.u32 %v7321_v7, 16  ;;  %v473_v33 = vsel %vm7882_vm7, %v468_v39, %v472_v60  ;;  %v7326_v39 = vld [vmem:[%s7554_s20 + $0x70] sm:$0xf]  ;;  %v7303_v40 = vld [vmem:[%s7554_s20 + $0x18] sm:$0xff]  }
  0xd1   : > { %v449_v58 = vsel %vm7882_vm7, %v444_v61, %v448_v19  ;;  %v505_v26 = vor.u32 %v8057_v62, %v8036_v41  ;;  %v5943_v53 = vcombine.low %v463_v0, %v473_v33  ;;  %v2056_v21 = vsel %vm7651_vm4, %v2054_v20, %v2055_v9 }
  0xd2   : > { %v5942_v10 = vcombine.low %v439_v36, %v449_v58  ;;  %v482_v23 = vrot.slane %v481_v29, 4  ;;  %v510_v27 = vrot.slane %v508_v52, 5  ;;  %v518_v19 = vshll.u32 %v7323_v46, 16  ;;  %v6185_v46 = vld [vmem:[%s7554_s20 + $0x18] sm:$0xf] }
  0xd3   : > { %v506_v34 = vrot.slane %v505_v26, 4  ;;  %v552_v41 = vrot.slane %v550_v55, 5  ;;  %v2066_v62 = vrot.slane %v8006_v15, 5  ;;  %v491_v28 = vor.u32 %v490_v35, %v486_v30 }
  0xd4   : > { %6550 = vmatprep.mubr.msk.bf16.mxu1 %vm605_vm1, %v5942_v10  ;;  %v496_v37 = vrot.slane %v494_v54, 5  ;;  %v2063_v9 = vsel %vm7651_vm4, %v2061_v47, %v2062_v45  ;;  %v515_v50 = vor.u32 %v514_v12, %v510_v27  ;;  %v520_v51 = vrot.slane %v518_v19, 5  ;;  %v7305_v12 = vld [vmem:[%s7554_s20 + $0x24] sm:$0xff]  }
  0xd5   : > { %6551 = vmatmul.mubr.msk.bf16.gmra.mrb[8].mxu1 %vm605_vm1, %v5943_v53  ;;  %v6129_v3 = vcombine.low %v2053_v22, %v2056_v21  ;;  %v6121_v42 = vrot.slane %v6111_v16, 9  ;;  %v487_v55 = vsel %vm7882_vm7, %v482_v23, %v486_v30  ;;  %v492_v36 = vrot.slane %v491_v28, 4  ;;  %v7306_v21 = vld [vmem:[%s7554_s20 + $0x30] sm:$0xff]   ;;  %v6188_v19 = vld [vmem:[%s7554_s20 + $0x24] sm:$0xf] }
  0xd6   : > { %v511_v15 = vsel %vm7882_vm7, %v506_v34, %v510_v27  ;;  %v516_v61 = vrot.slane %v515_v50, 4  ;;  %v529_v5 = vor.u32 %v8065_v1, %v8063_v18  ;;  %v2068_v32 = vrot.slane %v2066_v62, 4  ;;  %v8329_v34 = vld [vmem:[%s9284_s1 + $0x10] sm:$0x3]  ;;  %v7307_v27 = vld [vmem:[%s7554_s20 + $0x3c] sm:$0xff]  }
  0xd7   : > { %6661 = vmatmul.mubr.msk.bf16.gmra.mrb[8].mxu0 %vm605_vm1, %v6127_v63  ;;  %v2060_v63 = vsel %vm7651_vm4, %v6120_v48, %v2059_v57  ;;  %v7324_v48 = vld [vmem:[%s7554_s20 + $0x64] sm:$0xf]  ;;  %v2069_v60 = vrot.slane %v8039_v56, 5  ;;  %v497_v22 = vsel %vm7882_vm7, %v492_v36, %v496_v37  ;;  %v538_v18 = vrot.slane %v536_v4, 4  ;;  %v7325_v56 = vld [vmem:[%s7554_s20 + $0x68] sm:$0x1] }
  0xd8   : > { %6664 = vmatprep.mubr.msk.bf16.mxu0 %vm605_vm1, %v6128_v14  ;;  %v532_v6 = vshll.u32 %v7324_v48, 16  ;;  %v6130_v57 = vcombine.low %v2060_v63, %v2063_v9  ;;  %v5944_v20 = vcombine.low %v487_v55, %v497_v22  ;;  %v521_v58 = vsel %vm7882_vm7, %v516_v61, %v520_v51  ;;  %v8347_v63 = vld [vmem:[%s7554_s20 + $0x28] sm:$0xf]  ;;  %v7309_v51 = vld [vmem:[%s7554_s20 + $0x54] sm:$0xff]   ;;  %v6191_v55 = vld [vmem:[%s7554_s20 + $0x30] sm:$0xf] }
  0xd9   : > { %v5945_v17 = vcombine.low %v511_v15, %v521_v58  ;;  %v530_v29 = vrot.slane %v529_v5, 4  ;;  %v2067_v1 = vsel %vm7651_vm4, %v6121_v42, %v2066_v62  ;;  %v542_v10 = vshll.u32 %v7325_v56, 16  ;;  %v8356_v48 = vld [vmem:[%s7554_s20 + $0x34] sm:$0xf]  ;;  %v8363_v22 = vld [vmem:[%s7554_s20 + $0x2c] sm:$0x1] }
  0xda   : > { %v534_v45 = vrot.slane %v532_v6, 5  ;;  %6554 = vmatprep.mubr.msk.bf16.mxu1 %vm605_vm1, %v5944_v20  ;;  %v553_v0 = vor.u32 %v552_v41, %v8185_v11  ;;  %v556_v14 = vshll.u32 %v7326_v39, 16  ;;  %v2070_v31 = vsel %vm7651_vm4, %v2068_v32, %v2069_v60  ;;  %v7310_v6 = vld [vmem:[%s7554_s20 + $0x60] sm:$0xff]  }
  0xdb   : > { %v562_v44 = vrot.slane %v560_v49, 4  ;;  %v566_v59 = vshll.u32 %v7327_v2, 16  ;;  %v544_v13 = vrot.slane %v542_v10, 5  ;;  %v6131_v47 = vcombine.low %v2067_v1, %v2070_v31  ;;  %v8369_v1 = vld [vmem:[%s7554_s20 + $0x40] sm:$0xf] }
  0xdc   : > { %v539_v4 = vor.u32 %v538_v18, %v534_v45  ;;  %v554_v35 = vrot.slane %v553_v0, 4  ;;  %v558_v7 = vrot.slane %v556_v14, 5  ;;  %v535_v11 = vsel %vm7882_vm7, %v530_v29, %v534_v45  ;;  %v6194_v18 = vld [vmem:[%s7554_s20 + $0x3c] sm:$0xf] }
  0xdd   : > { %6555 = vmatmul.mubr.msk.bf16.gmra.mrb[12].mxu1 %vm605_vm1, %v5945_v17  ;;  %v568_v26 = vrot.slane %v566_v59, 5  ;;  %v2849_v16 = vsel %vm636_vm0, %v2817_v8, 0  ;;  %v8339_v8 = vld [vmem:[%s7554_s20 + $0x1c] sm:$0xf]  ;;  %v2544_v41 = vshrl.u32 %v6185_v46, 16  ;;  %v2547_v62 = vshll.u32 %v6185_v46, 16 }
  0xde   : > { %v540_v54 = vrot.slane %v539_v4, 4  ;;  %v563_v33 = vor.u32 %v562_v44, %v558_v7  ;;  %v559_v49 = vsel %vm7882_vm7, %v554_v35, %v558_v7  ;;  %v2553_v28 = vshll.u32 %v8339_v8, 16 }
  0xdf   : > { %6665 = vmatmul.mubr.msk.bf16.gmra.mrb[12].mxu0 %vm605_vm1, %v6129_v3  ;;  %v2557_v37 = vshrl.u32 %v8339_v8, 16  ;;  %v2568_v9 = vshrl.u32 %v6188_v19, 16  ;;  %v2571_v50 = vshll.u32 %v6188_v19, 16  ;;  %v2546_v3 = vrot.slane %v2544_v41, 4  ;;  %v8399_v41 = vld [vmem:[%s7554_s20 + $0x44] sm:$0x1] }
  0xe0   : > { %6668 = vmatprep.mubr.msk.bf16.mxu0 %vm605_vm1, %v6130_v57  ;;  %v545_v52 = vsel %vm7882_vm7, %v540_v54, %v544_v13  ;;  %v564_v53 = vrot.slane %v563_v33, 4  ;;  %v2549_v42 = vrot.slane %v2547_v62, 5  ;;  %v8351_v36 = vrot.slane %v2553_v28, 5  ;;  %v8360_v57 = vld [vmem:[%s7554_s20 + $0x20] sm:$0x1]  ;;  %v7311_v54 = vld [vmem:[%s7554_s20 + $0x6c] sm:$0xff]  }
  0xe1   : > { %v5946_v43 = vcombine.low %v535_v11, %v545_v52  ;;  %v2559_v15 = vrot.slane %v2557_v37, 4  ;;  %v2577_v61 = vshll.u32 %v8347_v63, 16  ;;  %v2581_v5 = vshrl.u32 %v8347_v63, 16  ;;  %v8385_v52 = vld [vmem:[%s7554_s20 + $0x38] sm:$0x1] }
  0xe2   : > { %v569_v23 = vsel %vm7882_vm7, %v564_v53, %v568_v26  ;;  %v2570_v32 = vrot.slane %v2568_v9, 4  ;;  %v2573_v60 = vrot.slane %v2571_v50, 5  ;;  %v2592_v20 = vshrl.u32 %v6191_v55, 16  ;;  %v6197_v53 = vld [vmem:[%s7554_s20 + $0x48] sm:$0xf] }
  0xe3   : > { %6558 = vmatprep.mubr.msk.bf16.mxu1 %vm605_vm1, %v5946_v43  ;;  %v5947_v30 = vcombine.low %v559_v49, %v569_v23  ;;  %v2595_v58 = vshll.u32 %v6191_v55, 16  ;;  %v2550_v17 = vor.u32 %v2549_v42, %v2546_v3  ;;  %v2601_v29 = vshll.u32 %v8356_v48, 16  ;;  %v7312_v43 = vld [vmem:[%s7554_s20 + $0x78] sm:$0xff]   ;;  %v6200_v42 = vld [vmem:[%s7554_s20 + $0x54] sm:$0xf] }
  0xe4   : > { %v2605_v45 = vshrl.u32 %v8356_v48, 16  ;;  %v2560_v56 = vor.u32 %v2559_v15, %v8351_v36  ;;  %v2563_v10 = vshll.u32 %v8360_v57, 16  ;;  %v8374_v0 = vrot.slane %v2577_v61, 5  ;;  %v7313_v61 = vld [vmem:[%s7554_s20 + $0x84] sm:$0xff]  }
  0xe5   : > { %6559 = vmatmul.mubr.msk.bf16.gmra.mrb[16].mxu1 %vm605_vm1, %v5947_v30  ;;  %v2583_v39 = vrot.slane %v2581_v5, 4  ;;  %v2574_v14 = vor.u32 %v2573_v60, %v2570_v32  ;;  %v2587_v31 = vshll.u32 %v8363_v22, 16  ;;  %v2616_v4 = vshrl.u32 %v6194_v18, 16 }
  0xe6   : > { %v2619_v44 = vshll.u32 %v6194_v18, 16  ;;  %v2625_v2 = vshll.u32 %v8369_v1, 16  ;;  %v2629_v59 = vshrl.u32 %v8369_v1, 16  ;;  %v2594_v13 = vrot.slane %v2592_v20, 4  ;;  %v8415_v20 = vld [vmem:[%s7554_s20 + $0x50] sm:$0x1] }
  0xe7   : > { %6669 = vmatmul.mubr.msk.bf16.gmra.mrb[16].mxu0 %vm605_vm1, %v6131_v47  ;;  %v2597_v35 = vrot.slane %v2595_v58, 5  ;;  %v8380_v7 = vrot.slane %v2601_v29, 5  ;;  %v2607_v11 = vrot.slane %v2605_v45, 4  ;;  %v2551_v47 = vrot.slane %v2550_v17, 4  ;;  %v8424_v45 = vld [vmem:[%s7554_s20 + $0x58] sm:$0xf] }
  0xe8   : > { %6674 = vmatprep.mubr.msk.bf16.mxu0 %vm605_vm1, %v7303_v40  ;;  %v2561_v33 = vrot.slane %v2560_v56, 4  ;;  %v2565_v26 = vrot.slane %v2563_v10, 5  ;;  %v2584_v40 = vor.u32 %v2583_v39, %v8374_v0  ;;  %v8388_v49 = vrot.slane %v2574_v14, 4  ;;  %v6203_v56 = vld [vmem:[%s7554_s20 + $0x60] sm:$0xf] }
  0xe9   : > { %v2618_v23 = vrot.slane %v2616_v4, 4  ;;  %v2621_v30 = vrot.slane %v2619_v44, 5  ;;  %v2598_v46 = vor.u32 %v2597_v35, %v2594_v13  ;;  %v2611_v19 = vshll.u32 %v8385_v52, 16  ;;  %v8430_v4 = vld [vmem:[%s7554_s20 + $0x64] sm:$0xf] }
  0xea   : > { %v2556_v62 = vsel %vm7882_vm7, %v2551_v47, %v8351_v36  ;;  %v2566_v28 = vsel %vm7882_vm7, %v2561_v33, %v2565_v26  ;;  %v2585_v37 = vrot.slane %v2584_v40, 4  ;;  %v2640_v9 = vshrl.u32 %v6197_v53, 16 }
  0xeb   : > { %v2643_v50 = vshll.u32 %v6197_v53, 16  ;;  %v2622_v55 = vor.u32 %v2621_v30, %v2618_v23  ;;  %v2635_v36 = vshll.u32 %v8399_v41, 16  ;;  %v6215_v5 = vcombine.low %v2556_v62, %v2566_v28 }
  0xec   : > { %v2613_v60 = vrot.slane %v2611_v19, 5  ;;  %v2580_v58 = vsel %vm7882_vm7, %v8388_v49, %v8374_v0  ;;  %v2642_v29 = vrot.slane %v2640_v9, 4  ;;  %v2664_v18 = vshrl.u32 %v6200_v42, 16  ;;  %v8456_v9 = vld [vmem:[%s7554_s20 + $0x68] sm:$0x1] }
  0xed   : > { %v2645_v10 = vrot.slane %v2643_v50, 5  ;;  %v2623_v44 = vrot.slane %v2622_v55, 4  ;;  %v2659_v0 = vshll.u32 %v8415_v20, 16  ;;  %v2673_v13 = vshll.u32 %v8424_v45, 16 }
  0xee   : > { %v2677_v35 = vshrl.u32 %v8424_v45, 16  ;;  %v2697_v26 = vshll.u32 %v8430_v4, 16  ;;  %v2701_v40 = vshrl.u32 %v8430_v4, 16  ;;  %v2666_v53 = vrot.slane %v2664_v18, 4 }
  0xef   : > { %6675 = vmatmul.mubr.msk.bf16.vlgmr.msra.gmra.mrb[0].mxu0 %vm605_vm1, %v7305_v12  ;;  %v8391_v12 = vrot.slane %v2625_v2, 5  ;;  %v3036_v25 = vrot.slane %v8363_v22, 5 }
  0xf0   : > { %6695 = vmatpush3.bf16.msra.mxu0 %v2849_v16  ;;  %6678 = vmatprep.mubr.msk.bf16.mxu0 %vm605_vm1, %v7306_v21  ;;  %v2631_v21 = vrot.slane %v2629_v59, 4  ;;  %v8394_v16 = vld [vmem:[%s7554_s20 + $0x4c] sm:$0xf]  ;;  %v2637_v59 = vrot.slane %v2635_v36, 5  ;;  %v8458_v50 = vrot.slane %v2697_v26, 5 }
  0xf1   : > { %7196 = vmatprep.subr.msk.bf16.mxu0 %vm636_vm0, %v8329_v34  ;;  %v2653_v3 = vshrl.u32 %v8394_v16, 16  ;;  %v8463_v36 = vld [vmem:[%s7554_s20 + $0x70] sm:$0xf] }
  0xf2   : > { %v2632_v15 = vor.u32 %v2631_v21, %v8391_v12  ;;  %v2661_v21 = vrot.slane %v2659_v0, 5 }
  0xf3   : > { %v2655_v14 = vrot.slane %v2653_v3, 4 }
  0xf4   : > { %v2633_v2 = vrot.slane %v2632_v15, 4 }
  0xf6   : > { %v2638_v30 = vsel %vm7882_vm7, %v2633_v2, %v2637_v59 }
  0xf7   : > { %6679 = vmatmul.mubr.msk.bf16.gmra.mrb[4].mxu0 %vm605_vm1, %v7307_v27  ;;  %v2589_v27 = vrot.slane %v2587_v31, 5  ;;  %v2667_v31 = vshll.u32 %v6200_v42, 16 }
  0xf8   : > { %6682 = vmatprep.mubr.msk.bf16.mxu0 %vm605_vm1, %v7308_v24  ;;  %v2608_v24 = vor.u32 %v2607_v11, %v8380_v7  ;;  %v2688_v11 = vshrl.u32 %v6203_v56, 16 }
  0xf9   : > { %v2590_v17 = vsel %vm7882_vm7, %v2585_v37, %v2589_v27  ;;  %v2669_v23 = vrot.slane %v2667_v31, 5  ;;  %v8451_v27 = vld [vmem:[%s7554_s20 + $0x5c] sm:$0x1] }
  0xfa   : > { %v2609_v32 = vrot.slane %v2608_v24, 4  ;;  %v2679_v24 = vrot.slane %v2677_v35, 4  ;;  %v2690_v19 = vrot.slane %v2688_v11, 4  ;;  %v6216_v28 = vcombine.low %v2580_v58, %v2590_v17  ;;  %v6209_v17 = vld [vmem:[%s7554_s20 + $0x78] sm:$0xf] }
  0xfb   : > { %v2670_v55 = vor.u32 %v2669_v23, %v2666_v53  ;;  %v2683_v15 = vshll.u32 %v8451_v27, 16  ;;  %v2736_v59 = vshrl.u32 %v6209_v17, 16  ;;  %v2739_v0 = vshll.u32 %v6209_v17, 16  ;;  %v6212_v23 = vld [vmem:[%s7554_s20 + $0x84] sm:$0xf] }
  0xfc   : > { %v2614_v33 = vsel %vm7882_vm7, %v2609_v32, %v2613_v60  ;;  %v2707_v60 = vshll.u32 %v8456_v9, 16 }
  0xfd   : > { %v2685_v2 = vrot.slane %v2683_v15, 5  ;;  %v2763_v15 = vshll.u32 %v6212_v23, 16 }
  0xff   : > { %6683 = vmatmul.mubr.msk.bf16.gmra.mrb[8].mxu0 %vm605_vm1, %v7309_v51  ;;  %v2649_v51 = vshll.u32 %v8394_v16, 16 }
 0x100   : > { %6686 = vmatprep.mubr.msk.bf16.mxu0 %vm605_vm1, %v7310_v6  ;;  %v2599_v6 = vrot.slane %v2598_v46, 4  ;;  %v8453_v46 = vrot.slane %v2673_v13, 5 }
 0x101   : > { %v8427_v39 = vrot.slane %v2649_v51, 5  ;;  %v6206_v51 = vld [vmem:[%s7554_s20 + $0x6c] sm:$0xf] }
 0x102   : > { %v2604_v47 = vsel %vm7882_vm7, %v2599_v6, %v8380_v7  ;;  %v2628_v7 = vsel %vm7882_vm7, %v2623_v44, %v8391_v12  ;;  %v2703_v12 = vrot.slane %v2701_v40, 4  ;;  %v2680_v6 = vor.u32 %v2679_v24, %v8453_v46 }
 0x103   : > { %v2656_v49 = vor.u32 %v2655_v14, %v8427_v39  ;;  %v6217_v37 = vcombine.low %v2604_v47, %v2614_v33  ;;  %v2712_v58 = vshrl.u32 %v6206_v51, 16  ;;  %v2725_v14 = vshrl.u32 %v8463_v36, 16 }
 0x104   : > { %v2704_v18 = vor.u32 %v2703_v12, %v8458_v50  ;;  %v2671_v44 = vrot.slane %v2670_v55, 4  ;;  %v2681_v11 = vrot.slane %v2680_v6, 4  ;;  %v2709_v47 = vrot.slane %v2707_v60, 5  ;;  %v8499_v12 = vld [vmem:[%s7554_s20 + $0x80] sm:$0x1] }
 0x105   : > { %v2657_v42 = vrot.slane %v2656_v49, 4  ;;  %v2714_v33 = vrot.slane %v2712_v58, 4  ;;  %v2727_v49 = vrot.slane %v2725_v14, 4  ;;  %v2755_v60 = vshll.u32 %v8499_v12, 16 }
 0x106   : > { %v2705_v26 = vrot.slane %v2704_v18, 4  ;;  %v2765_v14 = vrot.slane %v2763_v15, 5 }
 0x107   : > { %6687 = vmatmul.mubr.msk.bf16.gmra.mrb[12].mxu0 %vm605_vm1, %v7311_v54  ;;  %v2691_v54 = vshll.u32 %v6203_v56, 16  ;;  %v2715_v56 = vshll.u32 %v6206_v51, 16  ;;  %v2662_v31 = vsel %vm7882_vm7, %v2657_v42, %v2661_v21 }
 0x108   : > { %6690 = vmatprep.mubr.msk.bf16.mxu0 %vm605_vm1, %v7312_v43  ;;  %v2646_v43 = vor.u32 %v2645_v10, %v2642_v29  ;;  %v8471_v29 = vld [vmem:[%s7554_s20 + $0x7c] sm:$0xf]  ;;  %v2721_v10 = vshll.u32 %v8463_v36, 16 }
 0x109   : > { %v2693_v62 = vrot.slane %v2691_v54, 5  ;;  %v2745_v13 = vshll.u32 %v8471_v29, 16  ;;  %v2749_v35 = vshrl.u32 %v8471_v29, 16  ;;  %v2717_v40 = vrot.slane %v2715_v56, 5 }
 0x10a   : > { %v2647_v3 = vrot.slane %v2646_v43, 4  ;;  %v2723_v43 = vrot.slane %v2721_v10, 5 }
 0x10b   : > { %v2694_v32 = vor.u32 %v2693_v62, %v2690_v19  ;;  %v2747_v21 = vrot.slane %v2745_v13, 5  ;;  %v2751_v24 = vrot.slane %v2749_v35, 4  ;;  %v8490_v19 = vld [vmem:[%s7554_s20 + $0x88] sm:$0xf]  ;;  %v2676_v62 = vsel %vm7882_vm7, %v2671_v44, %v8453_v46 }
 0x10c   : > { %v2718_v42 = vor.u32 %v2717_v40, %v2714_v33  ;;  %v2728_v55 = vor.u32 %v2727_v49, %v2723_v43  ;;  %v2760_v46 = vshrl.u32 %v6212_v23, 16  ;;  %v2773_v6 = vshrl.u32 %v8490_v19, 16  ;;  %v6236_v49 = vld [vmem:[%s7554_s20 + $0x18] sm:$0xe] }
 0x10d   : > { %v2695_v54 = vrot.slane %v2694_v32, 4  ;;  %v3026_v40 = vrot.slane %v8339_v8, 5 }
 0x10e   : > { %v2719_v17 = vrot.slane %v2718_v42, 4  ;;  %v2729_v18 = vrot.slane %v2728_v55, 4  ;;  %v2762_v10 = vrot.slane %v2760_v46, 4  ;;  %v6237_v42 = vld [vmem:[%s7554_s20 + $0x24] sm:$0xe] }
 0x10f   : > { %6691 = vmatmul.mubr.msk.bf16.gmra.mrb[16].mxu0 %vm605_vm1, %v7313_v61  ;;  %v3156_v61 = vsel %vm636_vm0, %v8329_v34, 0  ;;  %v2652_v34 = vsel %vm7882_vm7, %v2647_v3, %v8427_v39  ;;  %v8486_v39 = vld [vmem:[%s7554_s20 + $0x74] sm:$0x1]  ;;  %v2700_v51 = vsel %vm7882_vm7, %v2695_v54, %v8458_v50  ;;  %v2710_v3 = vsel %vm7882_vm7, %v2705_v26, %v2709_v47  ;;  %v6238_v55 = vld [vmem:[%s7554_s20 + $0x30] sm:$0xe] }
 0x110   : > { %6696 = vmatprep.mubr.msk.bf16.mxu0 %vm605_vm1, %v6215_v5  ;;  %v6218_v5 = vcombine.low %v2628_v7, %v2638_v30  ;;  %v6219_v53 = vcombine.low %v2652_v34, %v2662_v31  ;;  %v2738_v7 = vrot.slane %v2736_v59, 4  ;;  %v2741_v30 = vrot.slane %v2739_v0, 5  ;;  %v8512_v0 = vld [vmem:[%s7554_s20 + $0x8c] sm:$0x1] }
 0x111   : > { %v6221_v50 = vcombine.low %v2700_v51, %v2710_v3  ;;  %v2775_v31 = vrot.slane %v2773_v6, 4  ;;  %v2757_v59 = vrot.slane %v2755_v60, 5  ;;  %v2724_v13 = vsel %vm7882_vm7, %v2719_v17, %v2723_v43  ;;  %v6239_v17 = vld [vmem:[%s7554_s20 + $0x3c] sm:$0xe] }
 0x112   : > { %v2742_v32 = vor.u32 %v2741_v30, %v2738_v7  ;;  %v2779_v47 = vshll.u32 %v8512_v0, 16 }
 0x114   : > { %v2743_v44 = vrot.slane %v2742_v32, 4  ;;  %v2781_v30 = vrot.slane %v2779_v47, 5  ;;  %v6248_v32 = vrot.slane %v6238_v55, 9  ;;  %v3089_v55 = vrot.slane %v8490_v19, 5 }
 0x116   : > { %v2748_v33 = vsel %vm7882_vm7, %v2743_v44, %v2747_v21 }
 0x117   : > { %6697 = vmatmul.mubr.msk.bf16.vlgmr.msra.gmra.mrb[0].mxu0 %vm605_vm1, %v6216_v28  ;;  %v2686_v28 = vsel %vm7882_vm7, %v2681_v11, %v2685_v2  ;;  %v2766_v11 = vor.u32 %v2765_v14, %v2762_v10  ;;  %v6249_v14 = vrot.slane %v6239_v17, 9 }
 0x118   : > { %6717 = vmatpush3.bf16.msra.mxu0 %v3156_v61  ;;  %6700 = vmatprep.mubr.msk.bf16.mxu0 %vm605_vm1, %v6217_v37  ;;  %v2731_v37 = vshll.u32 %v8486_v39, 16  ;;  %v2769_v61 = vshll.u32 %v8490_v19, 16  ;;  %v6220_v58 = vcombine.low %v2676_v62, %v2686_v28  ;;  %v3028_v62 = vrot.slane %v3026_v40, 4 }
 0x119   : > { %v2767_v23 = vrot.slane %v2766_v11, 4  ;;  %v3029_v28 = vrot.slane %v8360_v57, 5  ;;  %v3040_v57 = vrot.slane %v8356_v48, 5  ;;  %v6241_v11 = vld [vmem:[%s7554_s20 + $0x54] sm:$0xe] }
 0x11a   : > { %v2733_v56 = vrot.slane %v2731_v37, 5  ;;  %v2771_v34 = vrot.slane %v2769_v61, 5  ;;  %v3033_v37 = vrot.slane %v8347_v63, 5  ;;  %v6247_v61 = vrot.slane %v6237_v42, 9 }
 0x11b   : > { %v3030_v3 = vsel %vm7651_vm4, %v3028_v62, %v3029_v28  ;;  %v3042_v63 = vrot.slane %v3040_v57, 4  ;;  %v6244_v62 = vld [vmem:[%s7554_s20 + $0x78] sm:$0xe] }
 0x11c   : > { %v2734_v35 = vsel %vm7882_vm7, %v2729_v18, %v2733_v56  ;;  %v2776_v54 = vor.u32 %v2775_v31, %v2771_v34  ;;  %v3035_v6 = vrot.slane %v3033_v37, 4  ;;  %v3034_v48 = vsel %vm7651_vm4, %v6247_v61, %v3033_v37  ;;  %v6240_v18 = vld [vmem:[%s7554_s20 + $0x48] sm:$0xe] }
 0x11d   : > { %v6222_v43 = vcombine.low %v2724_v13, %v2734_v35  ;;  %v3050_v31 = vrot.slane %v8399_v41, 5  ;;  %v6250_v44 = vrot.slane %v6240_v18, 9  ;;  %v3061_v13 = vrot.slane %v8424_v45, 5 }
 0x11e   : > { %v2777_v7 = vrot.slane %v2776_v54, 4  ;;  %v3037_v60 = vsel %vm7651_vm4, %v3035_v6, %v3036_v25  ;;  %v6242_v54 = vld [vmem:[%s7554_s20 + $0x60] sm:$0xe]  ;;  %v3091_v25 = vrot.slane %v3089_v55, 4 }
 0x11f   : > { %6701 = vmatmul.mubr.msk.bf16.gmra.mrb[4].mxu0 %vm605_vm1, %v6218_v5  ;;  %v2752_v5 = vor.u32 %v2751_v24, %v2747_v21  ;;  %v6246_v24 = vrot.slane %v6236_v49, 9  ;;  %v2772_v21 = vsel %vm7882_vm7, %v2767_v23, %v2771_v34  ;;  %v6257_v56 = vcombine.low %v3034_v48, %v3037_v60 }
 0x120   : > { %6704 = vmatprep.mubr.msk.bf16.mxu0 %vm605_vm1, %v6219_v53  ;;  %v2782_v8 = vsel %vm7882_vm7, %v2777_v7, %v2781_v30  ;;  %v3064_v49 = vrot.slane %v8451_v27, 5  ;;  %v3075_v7 = vrot.slane %v8463_v36, 5  ;;  %v3085_v36 = vrot.slane %v8499_v12, 5 }
 0x121   : > { %v2753_v2 = vrot.slane %v2752_v5, 4  ;;  %v3027_v51 = vsel %vm7651_vm4, %v6246_v24, %v3026_v40  ;;  %v6224_v46 = vcombine.low %v2772_v21, %v2782_v8  ;;  %v3043_v5 = vrot.slane %v8385_v52, 5  ;;  %v6243_v24 = vld [vmem:[%s7554_s20 + $0x6c] sm:$0xe] }
 0x122   : > { %v6256_v15 = vcombine.low %v3027_v51, %v3030_v3  ;;  %v3054_v52 = vrot.slane %v8394_v16, 5  ;;  %v3063_v40 = vrot.slane %v3061_v13, 4  ;;  %v6253_v8 = vrot.slane %v6243_v24, 9 }
 0x123   : > { %v2758_v26 = vsel %vm7882_vm7, %v2753_v2, %v2757_v59  ;;  %v3044_v22 = vsel %vm7651_vm4, %v3042_v63, %v3043_v5  ;;  %v3057_v2 = vrot.slane %v8415_v20, 5  ;;  %v3068_v20 = vrot.slane %v8430_v4, 5 }
 0x124   : > { %v6223_v53 = vcombine.low %v2748_v33, %v2758_v26  ;;  %v3055_v35 = vsel %vm7651_vm4, %v6250_v44, %v3054_v52  ;;  %v6251_v26 = vrot.slane %v6241_v11, 9  ;;  %v3065_v23 = vsel %vm7651_vm4, %v3063_v40, %v3064_v49 }
 0x125   : > { %v3070_v45 = vrot.slane %v3068_v20, 4  ;;  %v3077_v37 = vrot.slane %v3075_v7, 4  ;;  %v3078_v51 = vrot.slane %v8486_v39, 5  ;;  %v6254_v3 = vrot.slane %v6244_v62, 9 }
 0x126   : > { %v3062_v4 = vsel %vm7651_vm4, %v6251_v26, %v3061_v13 }
 0x127   : > { %6705 = vmatmul.mubr.msk.bf16.gmra.mrb[8].mxu0 %vm605_vm1, %v6220_v58  ;;  %v3047_v58 = vrot.slane %v8369_v1, 5  ;;  %v3056_v1 = vrot.slane %v3054_v52, 4  ;;  %v6261_v28 = vcombine.low %v3062_v4, %v3065_v23 }
 0x128   : > { %6708 = vmatprep.mubr.msk.bf16.mxu0 %vm605_vm1, %v6221_v50  ;;  %v3041_v50 = vsel %vm7651_vm4, %v6248_v32, %v3040_v57  ;;  %v3076_v57 = vsel %vm7651_vm4, %v6253_v8, %v3075_v7  ;;  %v3092_v32 = vrot.slane %v8512_v0, 5 }
 0x129   : > { %v6258_v10 = vcombine.low %v3041_v50, %v3044_v22  ;;  %v3049_v34 = vrot.slane %v3047_v58, 4  ;;  %v3048_v16 = vsel %vm7651_vm4, %v6249_v14, %v3047_v58  ;;  %v3058_v41 = vsel %vm7651_vm4, %v3056_v1, %v3057_v2 }
 0x12a   : > { %v6260_v33 = vcombine.low %v3055_v35, %v3058_v41  ;;  %v3093_v63 = vsel %vm7651_vm4, %v3091_v25, %v3092_v32  ;;  %v7424_v22 = vmov 0   ;;  %v8659_v41 = vld [vmem:[%s9285_s2] ss:$0 sm:$0xff] }
 0x12b   : > { %v3051_v59 = vsel %vm7651_vm4, %v3049_v34, %v3050_v31  ;;  %3368 = vst.msk [vmem:[#allocation2 + $0x10] sm:$0xff] %vm3365_vm8, %v7424_v22  ;;  %3369 = vst.msk [vmem:[#allocation2 + $0x18] sm:$0xff] %vm3365_vm8, %v7424_v22 }
 0x12c   : > { %v6259_v47 = vcombine.low %v3048_v16, %v3051_v59  ;;  %3366 = vst.msk [vmem:[#allocation2] sm:$0xff] %vm3365_vm8, %v7424_v22  ;;  %3367 = vst.msk [vmem:[#allocation2 + $0x8] sm:$0xff] %vm3365_vm8, %v7424_v22 }
 0x12d   : > { %3370 = vst.msk [vmem:[#allocation2 + $0x20] sm:$0xff] %vm3365_vm8, %v7424_v22  ;;  %3371 = vst.msk [vmem:[#allocation2 + $0x28] sm:$0xff] %vm3365_vm8, %v7424_v22 }
 0x12e   : > { %3372 = vst.msk [vmem:[#allocation2 + $0x30] sm:$0xff] %vm3365_vm8, %v7424_v22  ;;  %3373 = vst.msk [vmem:[#allocation2 + $0x38] sm:$0xff] %vm3365_vm8, %v7424_v22 }
 0x12f   : > { %6709 = vmatmul.mubr.msk.bf16.gmra.mrb[12].mxu0 %vm605_vm1, %v6222_v43  ;;  %v6252_v43 = vrot.slane %v6242_v54, 9  ;;  %3374 = vst.msk [vmem:[#allocation2 + $0x40] sm:$0xff] %vm3365_vm8, %v7424_v22  ;;  %3375 = vst.msk [vmem:[#allocation2 + $0x48] sm:$0xff] %vm3365_vm8, %v7424_v22  ;;  %v8664_v54 = vld [vmem:[%s9286_s3] ss:$0 sm:$0xff] }
 0x130   : > { %6712 = vmatprep.mubr.msk.bf16.mxu0 %vm605_vm1, %v6223_v53  ;;  %v3071_v53 = vrot.slane %v8456_v9, 5  ;;  %v3082_v9 = vrot.slane %v8471_v29, 5  ;;  %v3079_v29 = vsel %vm7651_vm4, %v3077_v37, %v3078_v51  ;;  %3376 = vst.msk [vmem:[#allocation2 + $0x50] sm:$0xff] %vm3365_vm8, %v7424_v22  ;;  %3377 = vst.msk [vmem:[#allocation2 + $0x58] sm:$0xff] %vm3365_vm8, %v7424_v22 }
 0x131   : > { %v3069_v30 = vsel %vm7651_vm4, %v6252_v43, %v3068_v20  ;;  %v6263_v12 = vcombine.low %v3076_v57, %v3079_v29  ;;  %3378 = vst.msk [vmem:[#allocation2 + $0x60] sm:$0xff] %vm3365_vm8, %v7424_v22  ;;  %3379 = vst.msk [vmem:[#allocation2 + $0x68] sm:$0xff] %vm3365_vm8, %v7424_v22 }
 0x132   : > { %v3072_v27 = vsel %vm7651_vm4, %v3070_v45, %v3071_v53  ;;  %v3084_v42 = vrot.slane %v3082_v9, 4  ;;  %3380 = vst.msk [vmem:[#allocation2 + $0x70] sm:$0xff] %vm3365_vm8, %v7424_v22  ;;  %3381 = vst.msk [vmem:[#allocation2 + $0x78] sm:$0xff] %vm3365_vm8, %v7424_v22 }
 0x133   : > { %v6262_v21 = vcombine.low %v3069_v30, %v3072_v27  ;;  %3382 = vst.msk [vmem:[#allocation2 + $0x80] sm:$0xff] %vm3365_vm8, %v7424_v22  ;;  %3383 = vst.msk [vmem:[#allocation2 + $0x88] sm:$0xff] %vm3365_vm8, %v7424_v22 }
 0x134   : > { %v3086_v39 = vsel %vm7651_vm4, %v3084_v42, %v3085_v36  ;;  %3384 = vst.msk [vmem:[#allocation2 + $0x90] sm:$0xff] %vm3365_vm8, %v7424_v22  ;;  %3385 = vst.msk [vmem:[#allocation2 + $0x98] sm:$0xff] %vm3365_vm8, %v7424_v22 }
 0x137   : > { %6713 = vmatmul.mubr.msk.bf16.gmra.mrb[16].mxu0 %vm605_vm1, %v6224_v46  ;;  %v3083_v46 = vsel %vm7651_vm4, %v6254_v3, %v3082_v9 }
 0x138   : > { %6718 = vmatprep.mubr.msk.bf16.mxu0 %vm605_vm1, %v6256_v15  ;;  %v6245_v15 = vld [vmem:[%s7554_s20 + $0x84] sm:$0xe]  ;;  %v6264_v61 = vcombine.low %v3083_v46, %v3086_v39 }
 0x139   : > { %v6255_v6 = vrot.slane %v6245_v15, 9 }
 0x13b   : > { %v3090_v19 = vsel %vm7651_vm4, %v6255_v6, %v3089_v55 }
 0x13c   : > { %v6265_v5 = vcombine.low %v3090_v19, %v3093_v63 }
 0x13f   : > { %6719 = vmatmul.mubr.msk.bf16.vlgmr.msra.gmra.mrb[0].mxu0 %vm605_vm1, %v6257_v56 }
 0x140   : > { %6722 = vmatprep.mubr.msk.bf16.mxu0 %vm605_vm1, %v6258_v10 }
 0x147   : > { %6723 = vmatmul.mubr.msk.bf16.gmra.mrb[4].mxu0 %vm605_vm1, %v6259_v47 }
 0x148   : > { %6726 = vmatprep.mubr.msk.bf16.mxu0 %vm605_vm1, %v6260_v33 }
 0x14f   : > { %6727 = vmatmul.mubr.msk.bf16.gmra.mrb[8].mxu0 %vm605_vm1, %v6261_v28 }
 0x150   : > { %6730 = vmatprep.mubr.msk.bf16.mxu0 %vm605_vm1, %v6262_v21 }
 0x157   : > { %6731 = vmatmul.mubr.msk.bf16.gmra.mrb[12].mxu0 %vm605_vm1, %v6263_v12 }
 0x158   : > { %6734 = vmatprep.mubr.msk.bf16.mxu0 %vm605_vm1, %v6264_v61 }
 0x15f   : > { %6735 = vmatmul.mubr.msk.bf16.gmra.mrb[16].mxu0 %vm605_vm1, %v6265_v5 }
 0x196   : > { %v6544_v48 = vpop.f32.mrb[0].mxu1 }
 0x197   : > { %v674_v60 = vpop.f32.mrb[1].mxu1 }
 0x198   : > { %v6545_v58 = vpop.f32.mrb[2].mxu1 }
 0x199   : > { %v677_v50 = vpop.f32.mrb[3].mxu1 }
 0x19e   : > { %v6548_v38 = vpop.f32.mrb[4].mxu1 }
 0x19f   : > { %v690_v0 = vpop.f32.mrb[5].mxu1 }
 0x1a0   : > { %v6549_v17 = vpop.f32.mrb[6].mxu1 }
 0x1a1   : > { %v693_v52 = vpop.f32.mrb[7].mxu1 }
 0x1a8   : > { %v8632_v18 = vpop.f32.mrb[8].mxu1 }
 0x1a9   : > { %v8634_v56 = vpop.f32.mrb[9].mxu1 }
 0x1aa   : > { %v8636_v10 = vpop.f32.mrb[10].mxu1 }
 0x1ab   : > { %v8638_v14 = vpop.f32.mrb[11].mxu1 }
 0x1b0   : > { %v8640_v34 = vpop.f32.mrb[12].mxu1 }
 0x1b1   : > { %v8642_v31 = vpop.f32.mrb[13].mxu1 }
 0x1b2   : > { %v8644_v44 = vpop.f32.mrb[14].mxu1 }
 0x1b3   : > { %v8646_v1 = vpop.f32.mrb[15].mxu1 }
 0x1b8   : > { %v8648_v2 = vpop.f32.mrb[16].mxu1 }
 0x1b9   : > { %v8650_v16 = vpop.f32.mrb[17].mxu1 }
 0x1ba   : > { %v8652_v59 = vpop.f32.mrb[18].mxu1 }
 0x1bb   : > { %v8654_v13 = vpop.f32.mrb[19].mxu1 }
 0x212   : > { %v6720_v35 = vpop.f32.mrb[0].mxu0 }
 0x213   : > { %v6900_v11 = vadd.f32 %v6720_v35, %v6544_v48  ;;  %v3192_v20 = vpop.f32.mrb[1].mxu0 }
 0x214   : > { %v6901_v47 = vadd.f32 %v3192_v20, %v674_v60  ;;  %v6721_v33 = vpop.f32.mrb[2].mxu0 }
 0x215   : > { %v3300_v26 = vmul.f32 %v6900_v11, %v8659_v41  ;;  %v6902_v40 = vadd.f32 %v6721_v33, %v6545_v58  ;;  %v3195_v49 = vpop.f32.mrb[3].mxu0 }
 0x216   : > { %v3298_v43 = vmul.f32 %v6901_v47, %v8659_v41  ;;  %v6903_v45 = vadd.f32 %v3195_v49, %v677_v50 }
 0x217   : > { %v3327_v53 = vadd.f32 %v8664_v54, %v3300_v26  ;;  %v3301_v4 = vmul.f32 %v6902_v40, %v8659_v41 }
 0x218   : > { %v3325_v23 = vadd.f32 %v8664_v54, %v3298_v43  ;;  %v3299_v7 = vmul.f32 %v6903_v45, %v8659_v41 }
 0x219   : > { %v3328_v30 = vadd.f32 %v8664_v54, %v3301_v4  ;;  %v3347_v9 = vmax.f32 %v3327_v53, 0.0 }
 0x21a   : > { %v3326_v27 = vadd.f32 %v8664_v54, %v3299_v7  ;;  %v6724_v24 = vpop.f32.mrb[4].mxu0  ;;  %v3345_v8 = vmax.f32 %v3325_v23, 0.0 }
 0x21b   : > { %v3348_v62 = vmax.f32 %v3328_v30, 0.0  ;;  %v6904_v28 = vadd.f32 %v6724_v24, %v6548_v38  ;;  %v3208_v21 = vpop.f32.mrb[5].mxu0 }
 0x21c   : > { %v3346_v37 = vmax.f32 %v3326_v27, 0.0  ;;  %v6905_v51 = vadd.f32 %v3208_v21, %v690_v0  ;;  %v6725_v3 = vpop.f32.mrb[6].mxu0 }
 0x21d   : > { %v3387_v42 = vpack.c.bf16 %v3348_v62, %v3347_v9  ;;  %v3304_v36 = vmul.f32 %v6904_v28, %v8659_v41  ;;  %v6906_v57 = vadd.f32 %v6725_v3, %v6549_v17  ;;  %v3211_v29 = vpop.f32.mrb[7].mxu0 }
 0x21e   : > { %v3386_v55 = vpack.c.bf16 %v3346_v37, %v3345_v8  ;;  %v3302_v46 = vmul.f32 %v6905_v51, %v8659_v41  ;;  %v6907_v39 = vadd.f32 %v3211_v29, %v693_v52 }
 0x21f   : > { %v3407_v15 = vrot.slane %v3387_v42, 4  ;;  %v3331_v12 = vadd.f32 %v8664_v54, %v3304_v36  ;;  %v3305_v61 = vmul.f32 %v6906_v57, %v8659_v41 }
 0x220   : > { %v3406_v6 = vrot.slane %v3386_v55, 4  ;;  %v3329_v25 = vadd.f32 %v8664_v54, %v3302_v46  ;;  %v3303_v32 = vmul.f32 %v6907_v39, %v8659_v41 }
 0x221   : > { %3430 = vst.msk [vmem:[#allocation2 + $0x10] sm:$0xf0] %vm3426_vm9, %v3407_v15  ;;  %v3332_v19 = vadd.f32 %v8664_v54, %v3305_v61  ;;  %v3351_v48 = vmax.f32 %v3331_v12, 0.0 }
 0x222   : > { %3431 = vst.msk [vmem:[#allocation2 + $0x18] sm:$0xf] %vm3428_vm10, %v3407_v15  ;;  %3429 = vst.msk [vmem:[#allocation2 + $0x8] sm:$0xf] %vm3428_vm10, %v3406_v6  ;;  %v3330_v63 = vadd.f32 %v8664_v54, %v3303_v32  ;;  %v6728_v5 = vpop.f32.mrb[8].mxu0  ;;  %v3349_v22 = vmax.f32 %v3329_v25, 0.0 }
 0x223   : > { %3427 = vst.msk [vmem:[#allocation2] sm:$0xf0] %vm3426_vm9, %v3406_v6  ;;  %v3352_v60 = vmax.f32 %v3332_v19, 0.0  ;;  %v6908_v58 = vadd.f32 %v6728_v5, %v8632_v18  ;;  %v3224_v50 = vpop.f32.mrb[9].mxu0 }
 0x224   : > { %v3350_v38 = vmax.f32 %v3330_v63, 0.0  ;;  %v6909_v0 = vadd.f32 %v3224_v50, %v8634_v56  ;;  %v6729_v17 = vpop.f32.mrb[10].mxu0 }
 0x225   : > { %v3389_v52 = vpack.c.bf16 %v3352_v60, %v3351_v48  ;;  %v3308_v35 = vmul.f32 %v6908_v58, %v8659_v41  ;;  %v6910_v11 = vadd.f32 %v6729_v17, %v8636_v10  ;;  %v3227_v20 = vpop.f32.mrb[11].mxu0 }
 0x226   : > { %v3388_v47 = vpack.c.bf16 %v3350_v38, %v3349_v22  ;;  %v3306_v33 = vmul.f32 %v6909_v0, %v8659_v41  ;;  %v6911_v26 = vadd.f32 %v3227_v20, %v8638_v14 }
 0x227   : > { %v3409_v40 = vrot.slane %v3389_v52, 4  ;;  %v3335_v18 = vadd.f32 %v8664_v54, %v3308_v35  ;;  %v3309_v49 = vmul.f32 %v6910_v11, %v8659_v41 }
 0x228   : > { %v3408_v43 = vrot.slane %v3388_v47, 4  ;;  %v3333_v56 = vadd.f32 %v8664_v54, %v3306_v33  ;;  %v3307_v45 = vmul.f32 %v6911_v26, %v8659_v41 }
 0x229   : > { %3434 = vst.msk [vmem:[#allocation2 + $0x30] sm:$0xf0] %vm3426_vm9, %v3409_v40  ;;  %v3336_v10 = vadd.f32 %v8664_v54, %v3309_v49  ;;  %v3355_v4 = vmax.f32 %v3335_v18, 0.0 }
 0x22a   : > { %3435 = vst.msk [vmem:[#allocation2 + $0x38] sm:$0xf] %vm3428_vm10, %v3409_v40  ;;  %3433 = vst.msk [vmem:[#allocation2 + $0x28] sm:$0xf] %vm3428_vm10, %v3408_v43  ;;  %v3334_v14 = vadd.f32 %v8664_v54, %v3307_v45  ;;  %v6732_v53 = vpop.f32.mrb[12].mxu0  ;;  %v3353_v27 = vmax.f32 %v3333_v56, 0.0 }
 0x22b   : > { %3432 = vst.msk [vmem:[#allocation2 + $0x20] sm:$0xf0] %vm3426_vm9, %v3408_v43  ;;  %v3356_v23 = vmax.f32 %v3336_v10, 0.0  ;;  %v6912_v7 = vadd.f32 %v6732_v53, %v8640_v34  ;;  %v3240_v30 = vpop.f32.mrb[13].mxu0 }
 0x22c   : > { %v3354_v24 = vmax.f32 %v3334_v14, 0.0  ;;  %v6913_v9 = vadd.f32 %v3240_v30, %v8642_v31  ;;  %v6733_v62 = vpop.f32.mrb[14].mxu0 }
 0x22d   : > { %v3391_v28 = vpack.c.bf16 %v3356_v23, %v3355_v4  ;;  %v3312_v21 = vmul.f32 %v6912_v7, %v8659_v41  ;;  %v6914_v8 = vadd.f32 %v6733_v62, %v8644_v44  ;;  %v3243_v37 = vpop.f32.mrb[15].mxu0 }
 0x22e   : > { %v3390_v51 = vpack.c.bf16 %v3354_v24, %v3353_v27  ;;  %v3310_v3 = vmul.f32 %v6913_v9, %v8659_v41  ;;  %v6915_v42 = vadd.f32 %v3243_v37, %v8646_v1 }
 0x22f   : > { %v3411_v36 = vrot.slane %v3391_v28, 4  ;;  %v3339_v34 = vadd.f32 %v8664_v54, %v3312_v21  ;;  %v3313_v57 = vmul.f32 %v6914_v8, %v8659_v41 }
 0x230   : > { %v3410_v29 = vrot.slane %v3390_v51, 4  ;;  %v3337_v31 = vadd.f32 %v8664_v54, %v3310_v3  ;;  %v3311_v55 = vmul.f32 %v6915_v42, %v8659_v41 }
 0x231   : > { %3438 = vst.msk [vmem:[#allocation2 + $0x50] sm:$0xf0] %vm3426_vm9, %v3411_v36  ;;  %v3340_v44 = vadd.f32 %v8664_v54, %v3313_v57  ;;  %v3359_v39 = vmax.f32 %v3339_v34, 0.0 }
 0x232   : > { %3439 = vst.msk [vmem:[#allocation2 + $0x58] sm:$0xf] %vm3428_vm10, %v3411_v36  ;;  %3437 = vst.msk [vmem:[#allocation2 + $0x48] sm:$0xf] %vm3428_vm10, %v3410_v29  ;;  %v3338_v1 = vadd.f32 %v8664_v54, %v3311_v55  ;;  %v6736_v46 = vpop.f32.mrb[16].mxu0  ;;  %v3357_v6 = vmax.f32 %v3337_v31, 0.0 }
 0x233   : > { %3436 = vst.msk [vmem:[#allocation2 + $0x40] sm:$0xf0] %vm3426_vm9, %v3410_v29  ;;  %v3360_v15 = vmax.f32 %v3340_v44, 0.0  ;;  %v6916_v12 = vadd.f32 %v6736_v46, %v8648_v2  ;;  %v3256_v61 = vpop.f32.mrb[17].mxu0 }
 0x234   : > { %v3358_v25 = vmax.f32 %v3338_v1, 0.0  ;;  %v6917_v32 = vadd.f32 %v3256_v61, %v8650_v16  ;;  %v6737_v19 = vpop.f32.mrb[18].mxu0 }
 0x235   : > { %v3393_v63 = vpack.c.bf16 %v3360_v15, %v3359_v39  ;;  %v3316_v5 = vmul.f32 %v6916_v12, %v8659_v41  ;;  %v6918_v48 = vadd.f32 %v6737_v19, %v8652_v59  ;;  %v3259_v60 = vpop.f32.mrb[19].mxu0 }
 0x236   : > { %v3392_v58 = vpack.c.bf16 %v3358_v25, %v3357_v6  ;;  %v3314_v50 = vmul.f32 %v6917_v32, %v8659_v41  ;;  %v6919_v22 = vadd.f32 %v3259_v60, %v8654_v13 }
 0x237   : > { %v3413_v38 = vrot.slane %v3393_v63, 4  ;;  %v3343_v2 = vadd.f32 %v8664_v54, %v3316_v5  ;;  %v3317_v0 = vmul.f32 %v6918_v48, %v8659_v41 }
 0x238   : > { %v3412_v17 = vrot.slane %v3392_v58, 4  ;;  %v3341_v16 = vadd.f32 %v8664_v54, %v3314_v50  ;;  %v3315_v52 = vmul.f32 %v6919_v22, %v8659_v41 }
 0x239   : > { %3442 = vst.msk [vmem:[#allocation2 + $0x70] sm:$0xf0] %vm3426_vm9, %v3413_v38  ;;  %v3344_v59 = vadd.f32 %v8664_v54, %v3317_v0  ;;  %v3363_v35 = vmax.f32 %v3343_v2, 0.0 }
 0x23a   : > { %3443 = vst.msk [vmem:[#allocation2 + $0x78] sm:$0xf] %vm3428_vm10, %v3413_v38  ;;  %3441 = vst.msk [vmem:[#allocation2 + $0x68] sm:$0xf] %vm3428_vm10, %v3412_v17  ;;  %v3342_v13 = vadd.f32 %v8664_v54, %v3315_v52  ;;  %v3361_v20 = vmax.f32 %v3341_v16, 0.0  ;;  %v7425_v54 = vmov (!%p6278_p13), 0  }
 0x23b   : > { %3440 = vst.msk [vmem:[#allocation2 + $0x60] sm:$0xf0] %vm3426_vm9, %v3412_v17  ;;  %v3364_v11 = vmax.f32 %v3344_v59, 0.0 }
 0x23c   : > { %v3362_v47 = vmax.f32 %v3342_v13, 0.0  ;;  %3452 = vst.msk [vmem:[#allocation2] sm:$0xff] (!%p6278_p13), %vm3365_vm8, %v7425_v54  ;;  %3453 = vst.msk [vmem:[#allocation2 + $0x8] sm:$0xff] (!%p6278_p13), %vm3365_vm8, %v7425_v54 }
 0x23d   : > { %v3395_v33 = vpack.c.bf16 %v3364_v11, %v3363_v35  ;;  %3451 = sbr.rel (%p6278_p13) target bundleno = 580 (0x244), region = 52 }
 0x23e   : > { %v3394_v26 = vpack.c.bf16 %v3362_v47, %v3361_v20 }
 0x23f   : > { %v3415_v41 = vrot.slane %v3395_v33, 4 }
 0x240   : > { %v3414_v40 = vrot.slane %v3394_v26, 4 }
 0x241   : > { %3446 = vst.msk [vmem:[#allocation2 + $0x90] sm:$0xf0] %vm3426_vm9, %v3415_v41 }
 0x242   : > { %3447 = vst.msk [vmem:[#allocation2 + $0x98] sm:$0xf] %vm3428_vm10, %v3415_v41  ;;  %3445 = vst.msk [vmem:[#allocation2 + $0x88] sm:$0xf] %vm3428_vm10, %v3414_v40 }
 0x243   : > { %3444 = vst.msk [vmem:[#allocation2 + $0x80] sm:$0xf0] %vm3426_vm9, %v3414_v40 }
 0x244 PF: > { %p6279_p0 = scmp.ne.s32.totalorder %s7406_s27, 1 }
 0x245   : > { %v7426_v18 = vmov (!%p6279_p0), 0  }
 0x246   : > { %3457 = sbr.rel (%p6279_p0) target bundleno = 589 (0x24d), region = 56  ;;  %3459 = vst.msk [vmem:[#allocation2 + $0x90] sm:$0xff] (!%p6279_p0), %vm3365_vm8, %v7426_v18  ;;  %3460 = vst.msk [vmem:[#allocation2 + $0x98] sm:$0xff] (!%p6279_p0), %vm3365_vm8, %v7426_v18 }
 0x24d PF: > { %vm3639_vm11 = vcmask 1043456   ;;  %v3664_v49 = vld [vmem:[%s9287_s4 + $0x4] sm:$0xf]  ;;  %v3462_v43 = vld [vmem:[#allocation2 + $0x8] sm:$0xf]  ;;  %s6355_s13 = sshll.u32 %s7410_s28, 1 }
 0x24e   : > { %7197 = vmatprep.subr.msk.bf16.mxu1 %vm3639_vm11, %v3664_v49  ;;  %v3691_v56 = vsel %vm3639_vm11, %v3664_v49, 0  ;;  %v8750_v45 = vld [vmem:[#allocation2] sm:$0xf0]  ;;  %v3641_v10 = vrot.slane %v3462_v43, 4  ;;  %v8752_v14 = vld [vmem:[#allocation2 + $0x18] sm:$0xf]  ;;  %s5842_s16 = sadd.s32 %s7406_s27, %s6355_s13 }
 0x24f   : > { %6739 = vmatpush3.bf16.msra.mxu1 %v3691_v56  ;;  %v3640_v53 = vrot.slane %v8750_v45, 4  ;;  %v8755_v4 = vld [vmem:[#allocation2 + $0x10] sm:$0xf0]  ;;  %v3644_v23 = vrot.slane %v8752_v14, 4  ;;  %v3614_v30 = vld [vmem:[%s9287_s4] sm:$0xf] }
 0x250   : > { %v3643_v7 = vrot.slane %v8755_v4, 4  ;;  %v8762_v27 = vld [vmem:[#allocation2 + $0x28] sm:$0xf]  ;;  %7198 = vmatprep.subr.msk.bf16.mxu1 %vm3639_vm11, %v3614_v30  ;;  %v3815_v9 = vsel %vm3639_vm11, %v3614_v30, 0  ;;  %v8767_v62 = vld [vmem:[#allocation2 + $0x20] sm:$0xf0] }
 0x251   : > { %v3642_v24 = vsel %vm3639_vm11, %v3640_v53, %v3641_v10  ;;  %v3646_v21 = vrot.slane %v8767_v62, 4  ;;  %v3647_v8 = vrot.slane %v8762_v27, 4  ;;  %v8773_v37 = vld [vmem:[#allocation2 + $0x38] sm:$0xf]  ;;  %v8775_v51 = vld [vmem:[#allocation2 + $0x30] sm:$0xf0] }
 0x252   : > { %6740 = vmatprep.mubr.msk.bf16.mxu1 %vm3365_vm8, %v3642_v24  ;;  %v3645_v28 = vsel %vm3639_vm11, %v3643_v7, %v3644_v23  ;;  %v8778_v3 = vld [vmem:[#allocation2 + $0x48] sm:$0xf]  ;;  %v8780_v42 = vld [vmem:[#allocation2 + $0x40] sm:$0xf0]  ;;  %v3649_v34 = vrot.slane %v8775_v51, 4  ;;  %v3650_v57 = vrot.slane %v8773_v37, 4 }
 0x253   : > { %6741 = vmatmul.mubr.msk.bf16.vlgmr.msra.gmra.mrb[20].mxu1 %vm3365_vm8, %v3645_v28  ;;  %v3648_v36 = vsel %vm3639_vm11, %v3646_v21, %v3647_v8  ;;  %v3652_v29 = vrot.slane %v8780_v42, 4  ;;  %v3653_v31 = vrot.slane %v8778_v3, 4  ;;  %v8789_v44 = vld [vmem:[#allocation2 + $0x58] sm:$0xf]  ;;  %v8791_v1 = vld [vmem:[#allocation2 + $0x50] sm:$0xf0] }
 0x254   : > { %6757 = vmatpush3.bf16.msra.mxu1 %v3815_v9  ;;  %6744 = vmatprep.mubr.msk.bf16.mxu1 %vm3365_vm8, %v3648_v36  ;;  %v3651_v55 = vsel %vm3639_vm11, %v3649_v34, %v3650_v57  ;;  %v8794_v39 = vld [vmem:[#allocation2 + $0x68] sm:$0xf]  ;;  %v8796_v15 = vld [vmem:[#allocation2 + $0x60] sm:$0xf0]  ;;  %v3655_v6 = vrot.slane %v8791_v1, 4  ;;  %v3656_v25 = vrot.slane %v8789_v44, 4 }
 0x255   : > { %v3654_v46 = vsel %vm3639_vm11, %v3652_v29, %v3653_v31  ;;  %v8801_v12 = vld [vmem:[%s9287_s4 + $0x8] sm:$0xf]  ;;  %v3461_v61 = vld [vmem:[#allocation2] sm:$0xf8]  ;;  %v3658_v32 = vrot.slane %v8796_v15, 4  ;;  %v3659_v19 = vrot.slane %v8794_v39, 4 }
 0x256   : > { %7199 = vmatprep.subr.msk.bf16.mxu1 %vm3639_vm11, %v8801_v12  ;;  %v3479_v63 = vshrl.u32 %v3461_v61, 16  ;;  %v3482_v5 = vshll.u32 %v3461_v61, 16  ;;  %v3487_v48 = vshrl.u32 %v3462_v43, 16  ;;  %v3490_v60 = vshll.u32 %v3462_v43, 16  ;;  %v8813_v22 = vld [vmem:[#allocation2 + $0x78] sm:$0xf] }
 0x257   : > { %v3657_v58 = vsel %vm3639_vm11, %v3655_v6, %v3656_v25  ;;  %v3660_v50 = vsel %vm3639_vm11, %v3658_v32, %v3659_v19  ;;  %v8815_v38 = vld [vmem:[#allocation2 + $0x70] sm:$0xf0]  ;;  %v3465_v59 = vld [vmem:[#allocation2 + $0x20] sm:$0xf8]  ;;  %v3504_v13 = vshrl.u32 %v8752_v14, 16  ;;  %v3507_v35 = vshll.u32 %v8752_v14, 16 }
 0x258   : > { %v3463_v2 = vld [vmem:[#allocation2 + $0x10] sm:$0xf8]  ;;  %v3481_v0 = vrot.slane %v3479_v63, 3  ;;  %v3484_v17 = vrot.slane %v3482_v5, 4  ;;  %v3489_v16 = vrot.slane %v3487_v48, 3  ;;  %v3492_v52 = vrot.slane %v3490_v60, 4 }
 0x259   : > { %v3496_v11 = vshrl.u32 %v3463_v2, 16  ;;  %v3499_v20 = vshll.u32 %v3463_v2, 16  ;;  %v3661_v47 = vrot.slane %v8815_v38, 4  ;;  %v3662_v33 = vrot.slane %v8813_v22, 4  ;;  %v3467_v7 = vld [vmem:[#allocation2 + $0x30] sm:$0xf8] }
 0x25a   : > { %v3513_v26 = vshrl.u32 %v3465_v59, 16  ;;  %v3521_v41 = vshrl.u32 %v8762_v27, 16  ;;  %v3485_v40 = vor.u32 %v3484_v17, %v3481_v0  ;;  %v3493_v54 = vor.u32 %v3492_v52, %v3489_v16  ;;  %v3469_v21 = vld [vmem:[#allocation2 + $0x40] sm:$0xf8]  ;;  %v3471_v5 = vld [vmem:[#allocation2 + $0x50] sm:$0xf8] }
 0x25b   : > { %6745 = vmatmul.mubr.msk.bf16.gmra.mrb[24].mxu1 %vm3365_vm8, %v3651_v55  ;;  %v3516_v18 = vshll.u32 %v3465_v59, 16  ;;  %v3524_v49 = vshll.u32 %v8762_v27, 16  ;;  %vm3477_vm12 = vsmask.f32 4352  ;;  %v3506_v43 = vrot.slane %v3504_v13, 3  ;;  %s6356_s20 = sshll.u32 %s5842_s16, 7 }
 0x25c   : > { %6748 = vmatprep.mubr.msk.bf16.mxu1 %vm3365_vm8, %v3654_v46  ;;  %v3509_v56 = vrot.slane %v3507_v35, 4  ;;  %v3498_v10 = vrot.slane %v3496_v11, 3  ;;  %v3501_v14 = vrot.slane %v3499_v20, 4  ;;  %v3663_v53 = vsel %vm3639_vm11, %v3661_v47, %v3662_v33  ;;  %v3473_v16 = vld [vmem:[#allocation2 + $0x60] sm:$0xf8]  ;;  %s5846_s17 = sshll.u32 %s285_s9, 4  ;;  %s9226_s10 = scalar_lea.hbm %s9290_s7, %s6356_s20  ;;  %s9228_s17 = int_to_ptr.vmem [resolvable:$true] %s5846_s17 }
 0x25d   : > { %v3523_v23 = vrot.slane %v3521_v41, 3  ;;  %v3494_v30 = vsel %vm3477_vm12, %v3485_v40, %v3493_v54  ;;  %v3515_v24 = vrot.slane %v3513_v26, 3  ;;  %v3518_v9 = vrot.slane %v3516_v18, 4  ;;  %s5831_s0 = scalar_lea.sflag [#allocation4], %s283_s22  ;;  %s7328_s28 = scalar_lea.vmem %s9228_s17, 128 }
 0x25e   : > { %v3526_v28 = vrot.slane %v3524_v49, 4  ;;  %v3502_v8 = vor.u32 %v3501_v14, %v3498_v10  ;;  %v3510_v36 = vor.u32 %v3509_v56, %v3506_v43  ;;  %v3530_v27 = vshrl.u32 %v3467_v7, 16  ;;  %v3475_v43 = vld [vmem:[#allocation2 + $0x70] sm:$0xf8]  ;;  %p7329_p1 = scmp.ne.s32.totalorder %s9228_s17, %s7328_s28  ;;  %s7427_s27 = smov [#allocation3]  }
 0x25f   : > { %v3533_v34 = vshll.u32 %v3467_v7, 16  ;;  %v3538_v57 = vshrl.u32 %v8773_v37, 16  ;;  %v3541_v29 = vshll.u32 %v8773_v37, 16  ;;  %v3547_v31 = vshrl.u32 %v3469_v21, 16  ;;  %s7332_s13 = sshll.u32 %s7427_s27, 4  ;;  %s7333_s13 = int_to_ptr.vmem [resolvable:$false] %s7332_s13 }
 0x260   : > { %v3550_v55 = vshll.u32 %v3469_v21, 16  ;;  %v3519_v46 = vor.u32 %v3518_v9, %v3515_v24  ;;  %v3527_v61 = vor.u32 %v3526_v28, %v3523_v23  ;;  %v3555_v6 = vshrl.u32 %v8778_v3, 16  ;;  %p7330_p2 = pnand %p7329_p1, %p7519_p3  ;;  %s7334_s16 = scalar_lea.vmem %s7333_s13, 256 }
 0x261   : > { %v3558_v25 = vshll.u32 %v8778_v3, 16  ;;  %v3511_v32 = vsel %vm3477_vm12, %v3502_v8, %v3510_v36  ;;  %v3532_v19 = vrot.slane %v3530_v27, 3  ;;  %v3535_v63 = vrot.slane %v3533_v34, 4  ;;  %v8840_v3 = vld [vmem:[%s9287_s4 + $0xc] sm:$0xf]  ;;  %p7335_p5 = scmp.lt.s32.totalorder %s9228_s17, %s7333_s13  ;;  %p7336_p6 = scmp.lt.s32.totalorder %s7334_s16, %s7328_s28 }
 0x262   : > { %v3540_v48 = vrot.slane %v3538_v57, 3  ;;  %v3543_v60 = vrot.slane %v3541_v29, 4  ;;  %v4084_v37 = vsel %vm3639_vm11, %v8801_v12, 0  ;;  %v3528_v2 = vsel %vm3477_vm12, %v3519_v46, %v3527_v61  ;;  %p7331_p4 = pneg %p7330_p2 }
 0x263   : > { %6749 = vmatmul.mubr.msk.bf16.gmra.mrb[28].mxu1 %vm3365_vm8, %v3657_v58  ;;  %v3549_v58 = vrot.slane %v3547_v31, 3  ;;  %v3557_v0 = vrot.slane %v3555_v6, 3  ;;  %v3560_v17 = vrot.slane %v3558_v25, 4  ;;  %v3564_v52 = vshrl.u32 %v3471_v5, 16  ;;  %p7337_p7 = por %p7336_p6, %p7335_p5 }
 0x264   : > { %6752 = vmatprep.mubr.msk.bf16.mxu1 %vm3365_vm8, %v3660_v50  ;;  %v3552_v50 = vrot.slane %v3550_v55, 4  ;;  %v3567_v59 = vshll.u32 %v3471_v5, 16  ;;  %v3572_v13 = vshrl.u32 %v8789_v44, 16  ;;  %v3575_v35 = vshll.u32 %v8789_v44, 16  ;;  %v3915_v5 = vld [vmem:[#allocation2 + $0x18] sm:$0x1f] }
 0x265   : > { %v3536_v12 = vor.u32 %v3535_v63, %v3532_v19  ;;  %v3544_v11 = vor.u32 %v3543_v60, %v3540_v48  ;;  %v3581_v47 = vshrl.u32 %v3473_v16, 16  ;;  %v3561_v33 = vor.u32 %v3560_v17, %v3557_v0  ;;  %v3916_v60 = vld [vmem:[#allocation2 + $0x28] sm:$0x1f]  ;;  %p7338_p9 = pnand %p7337_p7, %p7331_p4 }
 0x266   : > { %v3553_v20 = vor.u32 %v3552_v50, %v3549_v58  ;;  %v3584_v26 = vshll.u32 %v3473_v16, 16  ;;  %v3589_v41 = vshrl.u32 %v8794_v39, 16  ;;  %v3592_v40 = vshll.u32 %v8794_v39, 16 }
 0x267   : > { %v3566_v54 = vrot.slane %v3564_v52, 3  ;;  %v3569_v18 = vrot.slane %v3567_v59, 4  ;;  %v3574_v49 = vrot.slane %v3572_v13, 3  ;;  %v3577_v44 = vrot.slane %v3575_v35, 4 }
 0x268   : > { %v3545_v56 = vsel %vm3477_vm12, %v3536_v12, %v3544_v11  ;;  %v3583_v10 = vrot.slane %v3581_v47, 3  ;;  %v3562_v14 = vsel %vm3477_vm12, %v3553_v20, %v3561_v33  ;;  %v3591_v23 = vrot.slane %v3589_v41, 3 }
 0x269   : > { %v3594_v7 = vrot.slane %v3592_v40, 4  ;;  %v3570_v24 = vor.u32 %v3569_v18, %v3566_v54  ;;  %v3598_v9 = vshrl.u32 %v3475_v43, 16  ;;  %v3578_v39 = vor.u32 %v3577_v44, %v3574_v49  ;;  %v3917_v18 = vld [vmem:[#allocation2 + $0x38] sm:$0x1f]  ;;  %v3918_v49 = vld [vmem:[#allocation2 + $0x48] sm:$0x1f] }
 0x26a   : > { %v3601_v28 = vshll.u32 %v3475_v43, 16  ;;  %v3606_v21 = vshrl.u32 %v8813_v22, 16  ;;  %v3609_v8 = vshll.u32 %v8813_v22, 16  ;;  %v3923_v36 = vshrl.u32 %v8750_v45, 16 }
 0x26b   : > { %6753 = vmatmul.mubr.msk.bf16.gmra.mrb[32].mxu1 %vm3365_vm8, %v3663_v53  ;;  %v3586_v53 = vrot.slane %v3584_v26, 4  ;;  %v3926_v27 = vshll.u32 %v8750_v45, 16  ;;  %v3595_v31 = vor.u32 %v3594_v7, %v3591_v23  ;;  %v3600_v55 = vrot.slane %v3598_v9, 3 }
 0x26c   : > { %6758 = vmatprep.mubr.msk.bf16.mxu1 %vm3365_vm8, %v3494_v30  ;;  %v3914_v30 = vld [vmem:[#allocation2 + $0x8] sm:$0x1f]  ;;  %v3579_v46 = vsel %vm3477_vm12, %v3570_v24, %v3578_v39  ;;  %v3603_v61 = vrot.slane %v3601_v28, 4  ;;  %v3608_v6 = vrot.slane %v3606_v21, 3  ;;  %v3611_v25 = vrot.slane %v3609_v8, 4 }
 0x26d   : > { %v3931_v34 = vshrl.u32 %v3914_v30, 16  ;;  %v3934_v57 = vshll.u32 %v3914_v30, 16  ;;  %v3587_v29 = vor.u32 %v3586_v53, %v3583_v10  ;;  %v3928_v19 = vrot.slane %v3926_v27, 5 }
 0x26e   : > { %v3940_v45 = vshrl.u32 %v8755_v4, 16  ;;  %v3943_v58 = vshll.u32 %v8755_v4, 16  ;;  %v3948_v50 = vshrl.u32 %v3915_v5, 16  ;;  %v3612_v0 = vor.u32 %v3611_v25, %v3608_v6  ;;  %v8883_v6 = vld [vmem:[%s9287_s4 + $0x10] sm:$0xf] }
 0x26f   : > { %v3933_v63 = vrot.slane %v3931_v34, 4  ;;  %v3936_v22 = vrot.slane %v3934_v57, 5  ;;  %v3596_v48 = vsel %vm3477_vm12, %v3587_v29, %v3595_v31  ;;  %v3957_v52 = vshrl.u32 %v8767_v62, 16  ;;  %v3919_v34 = vld [vmem:[#allocation2 + $0x58] sm:$0x1f] }
 0x270   : > { %v3960_v59 = vshll.u32 %v8767_v62, 16  ;;  %v3965_v13 = vshrl.u32 %v3916_v60, 16  ;;  %v3968_v35 = vshll.u32 %v3916_v60, 16  ;;  %v3942_v12 = vrot.slane %v3940_v45, 4 }
 0x271   : > { %v3937_v16 = vor.u32 %v3936_v22, %v3933_v63  ;;  %v3945_v11 = vrot.slane %v3943_v58, 5  ;;  %v3950_v20 = vrot.slane %v3948_v50, 4  ;;  %v3959_v26 = vrot.slane %v3957_v52, 4 }
 0x272   : > { %v3962_v41 = vrot.slane %v3960_v59, 5  ;;  %v3967_v40 = vrot.slane %v3965_v13, 4  ;;  %v3970_v54 = vrot.slane %v3968_v35, 5  ;;  %v3974_v43 = vshrl.u32 %v8775_v51, 16 }
 0x273   : > { %6759 = vmatmul.mubr.msk.bf16.vlgmr.msra.gmra.mrb[20].mxu1 %vm3365_vm8, %v3511_v32  ;;  %v3925_v32 = vrot.slane %v3923_v36, 4  ;;  %v3946_v44 = vor.u32 %v3945_v11, %v3942_v12  ;;  %v3982_v10 = vshrl.u32 %v3917_v18, 16  ;;  %v3991_v53 = vshrl.u32 %v8780_v42, 16 }
 0x274   : > { %6775 = vmatpush3.bf16.msra.mxu1 %v4084_v37  ;;  %6762 = vmatprep.mubr.msk.bf16.mxu1 %vm3365_vm8, %v3528_v2  ;;  %v3951_v37 = vshll.u32 %v3915_v5, 16  ;;  %v3604_v2 = vor.u32 %v3603_v61, %v3600_v55  ;;  %v3994_v23 = vshll.u32 %v8780_v42, 16  ;;  %v3963_v7 = vor.u32 %v3962_v41, %v3959_v26  ;;  %v3920_v61 = vld [vmem:[#allocation2 + $0x68] sm:$0x1f] }
 0x275   : > { %7200 = vmatprep.subr.msk.bf16.mxu1 %vm3639_vm11, %v8840_v3  ;;  %v3929_v17 = vor.u32 %v3928_v19, %v3925_v32  ;;  %v3971_v30 = vor.u32 %v3970_v54, %v3967_v40  ;;  %v3999_v24 = vshrl.u32 %v3918_v49, 16  ;;  %v4002_v9 = vshll.u32 %v3918_v49, 16 }
 0x276   : > { %v3953_v47 = vrot.slane %v3951_v37, 5  ;;  %v3613_v4 = vsel %vm3477_vm12, %v3604_v2, %v3612_v0  ;;  %v3976_v28 = vrot.slane %v3974_v43, 4  ;;  %v3984_v8 = vrot.slane %v3982_v10, 4 }
 0x277   : > { %v3938_v33 = vsel %vm327_vm5, %v3929_v17, %v3937_v16  ;;  %v3993_v27 = vrot.slane %v3991_v53, 4  ;;  %v4378_v57 = vsel %vm3639_vm11, %v8840_v3, 0  ;;  %v3972_v29 = vsel %vm327_vm5, %v3963_v7, %v3971_v30  ;;  %v3921_v17 = vld [vmem:[#allocation2 + $0x78] sm:$0x1f]  ;;  %v4200_v16 = vld [vmem:[#allocation2 + $0x10] sm:$0xf8] }
 0x278   : > { %v3954_v62 = vor.u32 %v3953_v47, %v3950_v20  ;;  %v4001_v31 = vrot.slane %v3999_v24, 4  ;;  %v4004_v42 = vrot.slane %v4002_v9, 5  ;;  %v4008_v55 = vshrl.u32 %v8791_v1, 16  ;;  %v8902_v30 = vld [vmem:[#allocation2 + $0x28] sm:$0xf] }
 0x279   : > { %v4016_v25 = vshrl.u32 %v3919_v34, 16  ;;  %v4019_v32 = vshll.u32 %v3919_v34, 16  ;;  %v4025_v22 = vshrl.u32 %v8796_v15, 16  ;;  %v4036_v60 = vshll.u32 %v3920_v61, 16  ;;  %v4204_v9 = vld [vmem:[#allocation2 + $0x30] sm:$0xf8] }
 0x27a   : > { %v3955_v39 = vsel %vm327_vm5, %v3946_v44, %v3954_v62  ;;  %v4005_v5 = vor.u32 %v4004_v42, %v4001_v31  ;;  %v4010_v45 = vrot.slane %v4008_v55, 4  ;;  %v4042_v11 = vshrl.u32 %v8815_v38, 16 }
 0x27b   : > { %6763 = vmatmul.mubr.msk.bf16.gmra.mrb[24].mxu1 %vm3365_vm8, %v3545_v56  ;;  %v3977_v56 = vshll.u32 %v8775_v51, 16  ;;  %v3996_v51 = vrot.slane %v3994_v23, 5  ;;  %v4018_v50 = vrot.slane %v4016_v25, 4  ;;  %v4021_v37 = vrot.slane %v4019_v32, 5 }
 0x27c   : > { %6766 = vmatprep.mubr.msk.bf16.mxu1 %vm3365_vm8, %v3562_v14  ;;  %v3985_v14 = vshll.u32 %v3917_v18, 16  ;;  %v4027_v0 = vrot.slane %v4025_v22, 4  ;;  %v4038_v35 = vrot.slane %v4036_v60, 5  ;;  %v4045_v47 = vshll.u32 %v8815_v38, 16  ;;  %v8915_v22 = vld [vmem:[#allocation2 + $0x48] sm:$0xf] }
 0x27d   : > { %v3979_v21 = vrot.slane %v3977_v56, 5  ;;  %v3997_v63 = vor.u32 %v3996_v51, %v3993_v27  ;;  %v4022_v20 = vor.u32 %v4021_v37, %v4018_v50  ;;  %v4217_v26 = vshrl.u32 %v4200_v16, 16 }
 0x27e   : > { %v3987_v36 = vrot.slane %v3985_v14, 5  ;;  %v4220_v41 = vshll.u32 %v4200_v16, 16  ;;  %v4044_v44 = vrot.slane %v4042_v11, 4  ;;  %v4047_v43 = vrot.slane %v4045_v47, 5  ;;  %v4202_v14 = vld [vmem:[#allocation2 + $0x20] sm:$0xf8] }
 0x27f   : > { %v3980_v3 = vor.u32 %v3979_v21, %v3976_v28  ;;  %v4006_v52 = vsel %vm327_vm5, %v3997_v63, %v4005_v5  ;;  %v4219_v38 = vrot.slane %v4217_v26, 3  ;;  %v4234_v28 = vshrl.u32 %v4202_v14, 16  ;;  %v4208_v5 = vld [vmem:[#allocation2 + $0x50] sm:$0xf8] }
 0x280   : > { %v3988_v19 = vor.u32 %v3987_v36, %v3984_v8  ;;  %v4222_v53 = vrot.slane %v4220_v41, 4  ;;  %v4237_v21 = vshll.u32 %v4202_v14, 16  ;;  %v4242_v8 = vshrl.u32 %v8902_v30, 16  ;;  %v4210_v41 = vld [vmem:[#allocation2 + $0x60] sm:$0xf8] }
 0x281   : > { %v4245_v36 = vshll.u32 %v8902_v30, 16  ;;  %v4048_v27 = vor.u32 %v4047_v43, %v4044_v44  ;;  %v4254_v31 = vshll.u32 %v4204_v9, 16  ;;  %v4279_v16 = vshll.u32 %v8915_v22, 16  ;;  %v8926_v44 = vld [vmem:[#allocation2 + $0x68] sm:$0xf] }
 0x282   : > { %v3989_v2 = vsel %vm327_vm5, %v3980_v3, %v3988_v19  ;;  %v4223_v34 = vor.u32 %v4222_v53, %v4219_v38  ;;  %v4244_v25 = vrot.slane %v4242_v8, 3  ;;  %v4206_v3 = vld [vmem:[#allocation2 + $0x40] sm:$0xf8]  ;;  %v8931_v14 = vld [vmem:[#allocation2 + $0x78] sm:$0xf]  ;;  %v4302_v53 = vshrl.u32 %v4210_v41, 16 }
 0x283   : > { %6767 = vmatmul.mubr.msk.bf16.gmra.mrb[28].mxu1 %vm3365_vm8, %v3579_v46  ;;  %v4011_v46 = vshll.u32 %v8791_v1, 16  ;;  %v4028_v1 = vshll.u32 %v8796_v15, 16  ;;  %v8893_v15 = vld [vmem:[#allocation2 + $0x18] sm:$0xf]  ;;  %v4247_v32 = vrot.slane %v4245_v36, 4  ;;  %v4268_v50 = vshrl.u32 %v4206_v3, 16 }
 0x284   : > { %6770 = vmatprep.mubr.msk.bf16.mxu1 %vm3365_vm8, %v3596_v48  ;;  %v4033_v48 = vshrl.u32 %v3920_v61, 16  ;;  %v4225_v40 = vshrl.u32 %v8893_v15, 16  ;;  %v4228_v54 = vshll.u32 %v8893_v15, 16  ;;  %v4239_v61 = vrot.slane %v4237_v21, 4  ;;  %v8936_v38 = vld [vmem:[%s9287_s4 + $0x14] sm:$0xf] }
 0x285   : > { %v4013_v58 = vrot.slane %v4011_v46, 5  ;;  %v4030_v59 = vrot.slane %v4028_v1, 5  ;;  %v4236_v46 = vrot.slane %v4234_v28, 3  ;;  %v4271_v37 = vshll.u32 %v4206_v3, 16  ;;  %v8948_v3 = vld [vmem:[#allocation2 + $0x88] sm:$0xf] }
 0x286   : > { %v4035_v13 = vrot.slane %v4033_v48, 4  ;;  %v4227_v23 = vrot.slane %v4225_v40, 3  ;;  %v4230_v7 = vrot.slane %v4228_v54, 4  ;;  %v4256_v48 = vrot.slane %v4254_v31, 4 }
 0x287   : > { %v4014_v12 = vor.u32 %v4013_v58, %v4010_v45  ;;  %v4031_v18 = vor.u32 %v4030_v59, %v4027_v0  ;;  %v8917_v58 = vld [vmem:[#allocation2 + $0x58] sm:$0xf]  ;;  %v4248_v0 = vor.u32 %v4247_v32, %v4244_v25  ;;  %v4288_v59 = vshll.u32 %v4208_v5, 16 }
 0x288   : > { %v4039_v49 = vor.u32 %v4038_v35, %v4035_v13  ;;  %v4293_v13 = vshrl.u32 %v8917_v58, 16  ;;  %v4296_v35 = vshll.u32 %v8917_v58, 16  ;;  %v4273_v47 = vrot.slane %v4271_v37, 4 }
 0x289   : > { %v4023_v62 = vsel %vm327_vm5, %v4014_v12, %v4022_v20  ;;  %v4270_v20 = vrot.slane %v4268_v50, 3  ;;  %v4281_v26 = vrot.slane %v4279_v16, 4  ;;  %v4290_v54 = vrot.slane %v4288_v59, 4  ;;  %v4493_v59 = vld [vmem:[#allocation2 + $0x10] sm:$0xf0] }
 0x28a   : > { %v4040_v24 = vsel %vm327_vm5, %v4031_v18, %v4039_v49  ;;  %v4295_v18 = vrot.slane %v4293_v13, 3  ;;  %v4298_v49 = vrot.slane %v4296_v35, 4  ;;  %v4327_v36 = vshrl.u32 %v8931_v14, 16 }
 0x28b   : > { %6771 = vmatmul.mubr.msk.bf16.gmra.mrb[32].mxu1 %vm3365_vm8, %v3613_v4  ;;  %v4050_v4 = vshrl.u32 %v3921_v17, 16 }
 0x28c   : > { %6776 = vmatprep.mubr.msk.bf16.mxu1 %vm3365_vm8, %v3938_v33  ;;  %v4053_v33 = vshll.u32 %v3921_v17, 16  ;;  %v4276_v17 = vshrl.u32 %v8915_v22, 16  ;;  %v4299_v28 = vor.u32 %v4298_v49, %v4295_v18  ;;  %v4329_v25 = vrot.slane %v4327_v36, 3 }
 0x28d   : > { %v4052_v56 = vrot.slane %v4050_v4, 4  ;;  %v4852_v18 = vsel %vm3639_vm11, %v8936_v38, 0 }
 0x28e   : > { %v4055_v10 = vrot.slane %v4053_v33, 5  ;;  %v4278_v33 = vrot.slane %v4276_v17, 3 }
 0x290   : > { %v4056_v51 = vor.u32 %v4055_v10, %v4052_v56  ;;  %v4274_v56 = vor.u32 %v4273_v47, %v4270_v20  ;;  %v4212_v10 = vld [vmem:[#allocation2 + $0x70] sm:$0xf8] }
 0x291   : > { %v4319_v21 = vshrl.u32 %v4212_v10, 16  ;;  %v4322_v8 = vshll.u32 %v4212_v10, 16 }
 0x292   : > { %v4057_v19 = vsel %vm327_vm5, %v4048_v27, %v4056_v51  ;;  %v4330_v27 = vshll.u32 %v8931_v14, 16  ;;  %v4304_v51 = vrot.slane %v4302_v53, 3 }
 0x293   : > { %6777 = vmatmul.mubr.msk.bf16.vlgmr.msra.gmra.mrb[20].mxu1 %vm3365_vm8, %v3955_v39  ;;  %v8905_v39 = vld [vmem:[#allocation2 + $0x38] sm:$0xf] }
 0x294   : > { %6793 = vmatpush3.bf16.msra.mxu1 %v4378_v57  ;;  %6780 = vmatprep.mubr.msk.bf16.mxu1 %vm3365_vm8, %v3972_v29  ;;  %v4231_v57 = vor.u32 %v4230_v7, %v4227_v23  ;;  %v4251_v29 = vshrl.u32 %v4204_v9, 16  ;;  %v4259_v42 = vshrl.u32 %v8905_v39, 16  ;;  %v4262_v55 = vshll.u32 %v8905_v39, 16 }
 0x295   : > { %7201 = vmatprep.subr.msk.bf16.mxu1 %vm3639_vm11, %v8883_v6  ;;  %v4305_v23 = vshll.u32 %v4210_v41, 16  ;;  %v4310_v7 = vshrl.u32 %v8926_v44, 16  ;;  %v4332_v32 = vrot.slane %v4330_v27, 4  ;;  %v4521_v41 = vrot.slane %v8902_v30, 4 }
 0x296   : > { %v4232_v63 = vsel %vm3477_vm12, %v4223_v34, %v4231_v57  ;;  %v4253_v1 = vrot.slane %v4251_v29, 3  ;;  %v4261_v60 = vrot.slane %v4259_v42, 3  ;;  %v4264_v45 = vrot.slane %v4262_v55, 4  ;;  %v4214_v55 = vld [vmem:[#allocation2 + $0x80] sm:$0xf8] }
 0x297   : > { %v4307_v34 = vrot.slane %v4305_v23, 4  ;;  %v4312_v57 = vrot.slane %v4310_v7, 3  ;;  %v4333_v50 = vor.u32 %v4332_v32, %v4329_v25  ;;  %v8990_v23 = vld [vmem:[#allocation2 + $0x60] sm:$0xf0]  ;;  %v4536_v27 = vrot.slane %v8931_v14, 4 }
 0x298   : > { %v4257_v12 = vor.u32 %v4256_v48, %v4253_v1  ;;  %v4265_v11 = vor.u32 %v4264_v45, %v4261_v60  ;;  %v4339_v1 = vshll.u32 %v4214_v55, 16  ;;  %v4344_v48 = vshrl.u32 %v8948_v3, 16 }
 0x299   : > { %v4347_v60 = vshll.u32 %v8948_v3, 16 }
 0x29a   : > { %v4266_v43 = vsel %vm3477_vm12, %v4257_v12, %v4265_v11  ;;  %v4346_v17 = vrot.slane %v4344_v48, 3  ;;  %v4517_v12 = vrot.slane %v4493_v59, 4  ;;  %v4518_v11 = vrot.slane %v8893_v15, 4 }
 0x29b   : > { %6781 = vmatmul.mubr.msk.bf16.gmra.mrb[24].mxu1 %vm3365_vm8, %v3989_v2  ;;  %v4240_v2 = vor.u32 %v4239_v61, %v4236_v46  ;;  %v4321_v46 = vrot.slane %v4319_v21, 3  ;;  %v4324_v61 = vrot.slane %v4322_v8, 4  ;;  %v4349_v16 = vrot.slane %v4347_v60, 4 }
 0x29c   : > { %6784 = vmatprep.mubr.msk.bf16.mxu1 %vm3365_vm8, %v4006_v52  ;;  %v4285_v52 = vshrl.u32 %v4208_v5, 16  ;;  %v4336_v5 = vshrl.u32 %v4214_v55, 16  ;;  %v4519_v47 = vsel %vm3639_vm11, %v4517_v12, %v4518_v11  ;;  %v4685_v12 = vld [vmem:[#allocation2 + $0x48] sm:$0x1f]  ;;  %v4686_v11 = vld [vmem:[#allocation2 + $0x58] sm:$0x1f] }
 0x29d   : > { %v4249_v4 = vsel %vm3477_vm12, %v4240_v2, %v4248_v0  ;;  %v4325_v45 = vor.u32 %v4324_v61, %v4321_v46  ;;  %v4341_v0 = vrot.slane %v4339_v1, 4  ;;  %v4350_v35 = vor.u32 %v4349_v16, %v4346_v17  ;;  %v4684_v46 = vld [vmem:[#allocation2 + $0x38] sm:$0x1f] }
 0x29e   : > { %v4287_v40 = vrot.slane %v4285_v52, 3  ;;  %v4338_v2 = vrot.slane %v4336_v5, 3 }
 0x29f   : > { %v4334_v52 = vsel %vm3477_vm12, %v4325_v45, %v4333_v50  ;;  %v4733_v45 = vshrl.u32 %v4684_v46, 16  ;;  %v4736_v50 = vshll.u32 %v4684_v46, 16 }
 0x2a0   : > { %v4291_v9 = vor.u32 %v4290_v54, %v4287_v40  ;;  %v4342_v13 = vor.u32 %v4341_v0, %v4338_v2  ;;  %v4524_v54 = vrot.slane %v8905_v39, 4  ;;  %v4527_v39 = vrot.slane %v8915_v22, 4 }
 0x2a1   : > { %v4532_v22 = vrot.slane %v8990_v23, 4 }
 0x2a2   : > { %v4300_v42 = vsel %vm3477_vm12, %v4291_v9, %v4299_v28  ;;  %v4351_v20 = vsel %vm3477_vm12, %v4342_v13, %v4350_v35  ;;  %v4533_v9 = vrot.slane %v8926_v44, 4  ;;  %v4694_v28 = vshll.u32 %v4493_v59, 16 }
 0x2a3   : > { %6785 = vmatmul.mubr.msk.bf16.gmra.mrb[28].mxu1 %vm3365_vm8, %v4023_v62  ;;  %v4567_v62 = vsel %vm3639_vm11, %v8883_v6, 0  ;;  %v4282_v6 = vor.u32 %v4281_v26, %v4278_v33  ;;  %v8961_v33 = vld [vmem:[#allocation2 + $0x30] sm:$0xf0]  ;;  %v4735_v35 = vrot.slane %v4733_v45, 4 }
 0x2a4   : > { %6788 = vmatprep.mubr.msk.bf16.mxu1 %vm3365_vm8, %v4040_v24  ;;  %v4313_v24 = vshll.u32 %v8926_v44, 16  ;;  %v4523_v40 = vrot.slane %v8961_v33, 4  ;;  %v9003_v44 = vld [vmem:[#allocation2 + $0x80] sm:$0xf0]  ;;  %v4725_v48 = vshrl.u32 %v8961_v33, 16  ;;  %v4728_v60 = vshll.u32 %v8961_v33, 16 }
 0x2a5   : > { %v4283_v31 = vsel %vm3477_vm12, %v4274_v56, %v4282_v6  ;;  %v8979_v56 = vld [vmem:[%s9287_s4 + $0x18] sm:$0xf]  ;;  %v8993_v6 = vld [vmem:[#allocation2 + $0x70] sm:$0xf0]  ;;  %v4538_v14 = vrot.slane %v9003_v44, 4 }
 0x2a6   : > { %v4315_v29 = vrot.slane %v4313_v24, 4  ;;  %v4525_v49 = vsel %vm3639_vm11, %v4523_v40, %v4524_v54  ;;  %v4682_v24 = vld [vmem:[#allocation2 + $0x18] sm:$0x1f]  ;;  %v4535_v36 = vrot.slane %v8993_v6, 4  ;;  %v4730_v13 = vrot.slane %v4728_v60, 5 }
 0x2a7   : > { %v4699_v21 = vshrl.u32 %v4682_v24, 16  ;;  %v4702_v8 = vshll.u32 %v4682_v24, 16 }
 0x2a8   : > { %v4537_v55 = vsel %vm3639_vm11, %v4535_v36, %v4536_v27  ;;  %v4779_v36 = vshll.u32 %v8990_v23, 16 }
 0x2ab   : > { %6789 = vmatmul.mubr.msk.bf16.gmra.mrb[32].mxu1 %vm3365_vm8, %v4057_v19  ;;  %v4308_v19 = vor.u32 %v4307_v34, %v4304_v51  ;;  %v4534_v51 = vsel %vm3639_vm11, %v4532_v22, %v4533_v9  ;;  %v5146_v9 = vsel %vm3639_vm11, %v8979_v56, 0 }
 0x2ac   : > { %6794 = vmatprep.mubr.msk.bf16.mxu1 %vm3365_vm8, %v4232_v63  ;;  %v4316_v63 = vor.u32 %v4315_v29, %v4312_v57  ;;  %v4696_v57 = vrot.slane %v4694_v28, 5  ;;  %v4701_v29 = vrot.slane %v4699_v21, 4  ;;  %v4688_v21 = vld [vmem:[#allocation2 + $0x78] sm:$0x1f] }
 0x2ad   : > { %v4804_v46 = vshll.u32 %v4688_v21, 16 }
 0x2ae   : > { %v4317_v37 = vsel %vm3477_vm12, %v4308_v19, %v4316_v63  ;;  %v4539_v63 = vrot.slane %v8948_v3, 4  ;;  %v4738_v3 = vrot.slane %v4736_v50, 5 }
 0x2af   : > { %v4806_v50 = vrot.slane %v4804_v46, 5 }
 0x2b0   : > { %v4540_v16 = vsel %vm3639_vm11, %v4538_v14, %v4539_v63 }
 0x2b3   : > { %6795 = vmatmul.mubr.msk.bf16.vlgmr.msra.gmra.mrb[20].mxu1 %vm3365_vm8, %v4249_v4  ;;  %v4494_v4 = vld [vmem:[#allocation2 + $0x20] sm:$0xf0] }
 0x2b4   : > { %6811 = vmatpush3.bf16.msra.mxu1 %v4567_v62  ;;  %6798 = vmatprep.mubr.msk.bf16.mxu1 %vm3365_vm8, %v4266_v43  ;;  %v4520_v26 = vrot.slane %v4494_v4, 4  ;;  %v8972_v62 = vld [vmem:[#allocation2 + $0x40] sm:$0xf0]  ;;  %v8974_v43 = vld [vmem:[#allocation2 + $0x50] sm:$0xf0]  ;;  %v4708_v61 = vshrl.u32 %v4494_v4, 16 }
 0x2b5   : > { %7202 = vmatprep.subr.msk.bf16.mxu1 %vm3639_vm11, %v8936_v38  ;;  %v4526_v30 = vrot.slane %v8972_v62, 4  ;;  %v4529_v10 = vrot.slane %v8974_v43, 4  ;;  %v4530_v38 = vrot.slane %v8917_v58, 4  ;;  %v4691_v58 = vshrl.u32 %v4493_v59, 16 }
 0x2b6   : > { %v4522_v15 = vsel %vm3639_vm11, %v4520_v26, %v4521_v41  ;;  %v4711_v25 = vshll.u32 %v4494_v4, 16  ;;  %v4727_v59 = vrot.slane %v4725_v48, 4  ;;  %v4742_v4 = vshrl.u32 %v8972_v62, 16 }
 0x2b7   : > { %v4528_v53 = vsel %vm3639_vm11, %v4526_v30, %v4527_v39  ;;  %v4531_v7 = vsel %vm3639_vm11, %v4529_v10, %v4530_v38  ;;  %v4693_v34 = vrot.slane %v4691_v58, 4  ;;  %v4745_v33 = vshll.u32 %v8972_v62, 16 }
 0x2b8   : > { %v4713_v2 = vrot.slane %v4711_v25, 5  ;;  %v4750_v26 = vshrl.u32 %v4685_v12, 16  ;;  %v4753_v41 = vshll.u32 %v4685_v12, 16  ;;  %v4759_v40 = vshrl.u32 %v8974_v43, 16 }
 0x2b9   : > { %v4697_v5 = vor.u32 %v4696_v57, %v4693_v34  ;;  %v4762_v54 = vshll.u32 %v8974_v43, 16  ;;  %v4770_v30 = vshll.u32 %v4686_v11, 16  ;;  %v4744_v10 = vrot.slane %v4742_v4, 4  ;;  %v9028_v34 = vld [vmem:[%s9287_s4 + $0x1c] sm:$0xf] }
 0x2ba   : > { %v4747_v38 = vrot.slane %v4745_v33, 5  ;;  %v4755_v24 = vrot.slane %v4753_v41, 5  ;;  %v4761_v62 = vrot.slane %v4759_v40, 4  ;;  %v4781_v25 = vrot.slane %v4779_v36, 5 }
 0x2bb   : > { %6799 = vmatmul.mubr.msk.bf16.gmra.mrb[24].mxu1 %vm3365_vm8, %v4283_v31  ;;  %v4704_v31 = vrot.slane %v4702_v8, 5  ;;  %v4764_v22 = vrot.slane %v4762_v54, 5  ;;  %v4772_v43 = vrot.slane %v4770_v30, 5  ;;  %v4776_v8 = vshrl.u32 %v8990_v23, 16  ;;  %v4972_v30 = vld [vmem:[#allocation2 + $0x40] sm:$0xf8] }
 0x2bc   : > { %6802 = vmatprep.mubr.msk.bf16.mxu1 %vm3365_vm8, %v4300_v42  ;;  %v4683_v42 = vld [vmem:[#allocation2 + $0x28] sm:$0x1f]  ;;  %v4796_v23 = vshll.u32 %v8993_v6, 16 }
 0x2bd   : > { %v4716_v32 = vshrl.u32 %v4683_v42, 16  ;;  %v4719_v19 = vshll.u32 %v4683_v42, 16  ;;  %v4705_v1 = vor.u32 %v4704_v31, %v4701_v29  ;;  %v4765_v29 = vor.u32 %v4764_v22, %v4761_v62 }
 0x2be   : > { %v4793_v31 = vshrl.u32 %v8993_v6, 16  ;;  %v4798_v60 = vrot.slane %v4796_v23, 5  ;;  %v9038_v6 = vld [vmem:[#allocation2 + $0x28] sm:$0xf] }
 0x2bf   : > { %v4718_v0 = vrot.slane %v4716_v32, 4  ;;  %v4721_v17 = vrot.slane %v4719_v19, 5 }
 0x2c0   : > { %v4795_v63 = vrot.slane %v4793_v31, 4  ;;  %v9060_v31 = vld [vmem:[#allocation2 + $0x58] sm:$0xf] }
 0x2c2   : > { %v4799_v12 = vor.u32 %v4798_v60, %v4795_v63  ;;  %v5047_v63 = vshll.u32 %v9060_v31, 16 }
 0x2c3   : > { %6803 = vmatmul.mubr.msk.bf16.gmra.mrb[28].mxu1 %vm3365_vm8, %v4317_v37  ;;  %v4710_v37 = vrot.slane %v4708_v61, 4  ;;  %v4778_v61 = vrot.slane %v4776_v8, 4 }
 0x2c4   : > { %6806 = vmatprep.mubr.msk.bf16.mxu1 %vm3365_vm8, %v4334_v52  ;;  %v4706_v52 = vsel %vm327_vm5, %v4697_v5, %v4705_v1  ;;  %v4689_v5 = vld [vmem:[#allocation2 + $0x88] sm:$0x1f]  ;;  %v4968_v1 = vld [vmem:[#allocation2 + $0x20] sm:$0xf8] }
 0x2cb   : > { %6807 = vmatmul.mubr.msk.bf16.gmra.mrb[32].mxu1 %vm3365_vm8, %v4351_v20  ;;  %v4714_v20 = vor.u32 %v4713_v2, %v4710_v37  ;;  %v4782_v37 = vor.u32 %v4781_v25, %v4778_v61  ;;  %v4976_v61 = vld [vmem:[#allocation2 + $0x60] sm:$0xf8]  ;;  %v9062_v25 = vld [vmem:[#allocation2 + $0x68] sm:$0xf] }
 0x2cc   : > { %6812 = vmatprep.mubr.msk.bf16.mxu1 %vm3365_vm8, %v4519_v47  ;;  %v4722_v47 = vor.u32 %v4721_v17, %v4718_v0  ;;  %v4810_v0 = vshrl.u32 %v9003_v44, 16  ;;  %v4813_v17 = vshll.u32 %v9003_v44, 16  ;;  %v5056_v60 = vshll.u32 %v4976_v61, 16 }
 0x2ce   : > { %v4723_v39 = vsel %vm327_vm5, %v4714_v20, %v4722_v47  ;;  %v4812_v47 = vrot.slane %v4810_v0, 4  ;;  %v4815_v4 = vrot.slane %v4813_v17, 5 }
 0x2d3   : > { %6813 = vmatmul.mubr.msk.bf16.vlgmr.msra.gmra.mrb[20].mxu1 %vm3365_vm8, %v4522_v15  ;;  %v4731_v15 = vor.u32 %v4730_v13, %v4727_v59  ;;  %v4985_v59 = vshrl.u32 %v4968_v1, 16  ;;  %v4988_v13 = vshll.u32 %v4968_v1, 16 }
 0x2d4   : > { %6829 = vmatpush3.bf16.msra.mxu1 %v4852_v18  ;;  %6816 = vmatprep.mubr.msk.bf16.mxu1 %vm3365_vm8, %v4525_v49  ;;  %v4739_v18 = vor.u32 %v4738_v3, %v4735_v35  ;;  %v4767_v49 = vshrl.u32 %v4686_v11, 16  ;;  %v4993_v35 = vshrl.u32 %v9038_v6, 16  ;;  %v4996_v3 = vshll.u32 %v9038_v6, 16 }
 0x2d5   : > { %7203 = vmatprep.subr.msk.bf16.mxu1 %vm3639_vm11, %v8979_v56  ;;  %v4748_v56 = vor.u32 %v4747_v38, %v4744_v10  ;;  %v4987_v41 = vrot.slane %v4985_v59, 3  ;;  %v4990_v44 = vrot.slane %v4988_v13, 4  ;;  %v4816_v10 = vor.u32 %v4815_v4, %v4812_v47 }
 0x2d6   : > { %v4740_v58 = vsel %vm327_vm5, %v4731_v15, %v4739_v18  ;;  %v4769_v28 = vrot.slane %v4767_v49, 4  ;;  %v4995_v40 = vrot.slane %v4993_v35, 3  ;;  %v4998_v54 = vrot.slane %v4996_v3, 4  ;;  %v4970_v15 = vld [vmem:[#allocation2 + $0x30] sm:$0xf8] }
 0x2d7   : > { %v9048_v49 = vld [vmem:[#allocation2 + $0x38] sm:$0xf]  ;;  %v5058_v35 = vrot.slane %v5056_v60, 4  ;;  %v4978_v3 = vld [vmem:[#allocation2 + $0x70] sm:$0xf8] }
 0x2d8   : > { %v4773_v42 = vor.u32 %v4772_v43, %v4769_v28  ;;  %v4999_v62 = vor.u32 %v4998_v54, %v4995_v40  ;;  %v5010_v22 = vshrl.u32 %v9048_v49, 16  ;;  %v5022_v28 = vshll.u32 %v4972_v30, 16  ;;  %v5261_v60 = vld [vmem:[#allocation2 + $0x20] sm:$0xf0] }
 0x2d9   : > { %v5070_v54 = vshrl.u32 %v4978_v3, 16 }
 0x2da   : > { %v4774_v48 = vsel %vm327_vm5, %v4765_v29, %v4773_v42  ;;  %v5024_v23 = vrot.slane %v5022_v28, 4 }
 0x2db   : > { %6817 = vmatmul.mubr.msk.bf16.gmra.mrb[24].mxu1 %vm3365_vm8, %v4528_v53  ;;  %v4687_v53 = vld [vmem:[#allocation2 + $0x68] sm:$0x1f] }
 0x2dc   : > { %6820 = vmatprep.mubr.msk.bf16.mxu1 %vm3365_vm8, %v4531_v7  ;;  %v4752_v7 = vrot.slane %v4750_v26, 4  ;;  %v4784_v27 = vshrl.u32 %v4687_v53, 16 }
 0x2de   : > { %v4756_v57 = vor.u32 %v4755_v24, %v4752_v7  ;;  %v4786_v32 = vrot.slane %v4784_v27, 4  ;;  %v5005_v7 = vshll.u32 %v4970_v15, 16  ;;  %v4991_v24 = vor.u32 %v4990_v44, %v4987_v41  ;;  %v4974_v27 = vld [vmem:[#allocation2 + $0x50] sm:$0xf8]  ;;  %v9081_v41 = vld [vmem:[%s9287_s4 + $0x20] sm:$0xf] }
 0x2e0   : > { %v4757_v14 = vsel %vm327_vm5, %v4748_v56, %v4756_v57  ;;  %v5007_v56 = vrot.slane %v5005_v7, 4  ;;  %v5012_v57 = vrot.slane %v5010_v22, 3 }
 0x2e3   : > { %6821 = vmatmul.mubr.msk.bf16.gmra.mrb[28].mxu1 %vm3365_vm8, %v4534_v51  ;;  %v4787_v51 = vshll.u32 %v4687_v53, 16  ;;  %v5002_v53 = vshrl.u32 %v4970_v15, 16  ;;  %v5073_v15 = vshll.u32 %v4978_v3, 16 }
 0x2e4   : > { %6824 = vmatprep.mubr.msk.bf16.mxu1 %vm3365_vm8, %v4537_v55  ;;  %v4801_v55 = vshrl.u32 %v4688_v21, 16 }
 0x2e5   : > { %v4789_v19 = vrot.slane %v4787_v51, 5  ;;  %v5004_v36 = vrot.slane %v5002_v53, 3  ;;  %v5000_v51 = vsel %vm3477_vm12, %v4991_v24, %v4999_v62  ;;  %v5072_v62 = vrot.slane %v5070_v54, 3  ;;  %v9129_v54 = vld [vmem:[#allocation2 + $0x70] sm:$0xf0] }
 0x2e6   : > { %v4803_v45 = vrot.slane %v4801_v55, 4  ;;  %v5075_v22 = vrot.slane %v5073_v15, 4  ;;  %v9131_v15 = vld [vmem:[#allocation2 + $0x80] sm:$0xf0] }
 0x2e7   : > { %v4790_v2 = vor.u32 %v4789_v19, %v4786_v32  ;;  %v5036_v32 = vshrl.u32 %v4974_v27, 16  ;;  %v5039_v19 = vshll.u32 %v4974_v27, 16 }
 0x2e8   : > { %v4807_v11 = vor.u32 %v4806_v50, %v4803_v45 }
 0x2e9   : > { %v4791_v20 = vsel %vm327_vm5, %v4782_v37, %v4790_v2  ;;  %v5061_v37 = vshrl.u32 %v9062_v25, 16  ;;  %v5064_v2 = vshll.u32 %v9062_v25, 16  ;;  %v5038_v0 = vrot.slane %v5036_v32, 3 }
 0x2ea   : > { %v4808_v18 = vsel %vm327_vm5, %v4799_v12, %v4807_v11  ;;  %v5041_v17 = vrot.slane %v5039_v19, 4  ;;  %v9071_v12 = vld [vmem:[#allocation2 + $0x78] sm:$0xf]  ;;  %v5335_v11 = vsel %vm3639_vm11, %v9028_v34, 0 }
 0x2eb   : > { %6825 = vmatmul.mubr.msk.bf16.gmra.mrb[32].mxu1 %vm3365_vm8, %v4540_v16  ;;  %v4818_v16 = vshrl.u32 %v4689_v5, 16  ;;  %v5063_v47 = vrot.slane %v5061_v37, 3  ;;  %v5066_v4 = vrot.slane %v5064_v2, 4  ;;  %v5285_v37 = vrot.slane %v5261_v60, 4 }
 0x2ec   : > { %6830 = vmatprep.mubr.msk.bf16.mxu1 %vm3365_vm8, %v4706_v52  ;;  %v4821_v52 = vshll.u32 %v4689_v5, 16  ;;  %v5008_v5 = vor.u32 %v5007_v56, %v5004_v36  ;;  %v5042_v44 = vor.u32 %v5041_v17, %v5038_v0  ;;  %v9093_v56 = vld [vmem:[#allocation2 + $0x98] sm:$0xf]  ;;  %v5286_v2 = vrot.slane %v9038_v6, 4 }
 0x2ed   : > { %v4820_v33 = vrot.slane %v4818_v16, 4 }
 0x2ee   : > { %v4823_v26 = vrot.slane %v4821_v52, 5  ;;  %v5049_v52 = vrot.slane %v5047_v63, 4  ;;  %v5287_v17 = vsel %vm3639_vm11, %v5285_v37, %v5286_v2  ;;  %v5454_v37 = vld [vmem:[#allocation2 + $0x68] sm:$0x1f] }
 0x2f0   : > { %v4824_v38 = vor.u32 %v4823_v26, %v4820_v33  ;;  %v4980_v33 = vld [vmem:[#allocation2 + $0x80] sm:$0xf8]  ;;  %v9076_v26 = vld [vmem:[#allocation2 + $0x88] sm:$0xf] }
 0x2f1   : > { %v5090_v53 = vshll.u32 %v4980_v33, 16  ;;  %v5095_v7 = vshrl.u32 %v9076_v26, 16  ;;  %v5098_v24 = vshll.u32 %v9076_v26, 16 }
 0x2f2   : > { %v4825_v8 = vsel %vm327_vm5, %v4816_v10, %v4824_v38  ;;  %v5087_v10 = vshrl.u32 %v4980_v33, 16  ;;  %v5067_v38 = vor.u32 %v5066_v4, %v5063_v47  ;;  %v9117_v47 = vld [vmem:[#allocation2 + $0x50] sm:$0xf0]  ;;  %v9119_v4 = vld [vmem:[#allocation2 + $0x60] sm:$0xf0] }
 0x2f3   : > { %6831 = vmatmul.mubr.msk.bf16.vlgmr.msra.gmra.mrb[20].mxu1 %vm3365_vm8, %v4723_v39  ;;  %v9050_v39 = vld [vmem:[#allocation2 + $0x48] sm:$0xf]  ;;  %v5092_v36 = vrot.slane %v5090_v53, 4  ;;  %v5097_v27 = vrot.slane %v5095_v7, 3  ;;  %v5297_v33 = vrot.slane %v9119_v4, 4 }
 0x2f4   : > { %6847 = vmatpush3.bf16.msra.mxu1 %v5146_v9  ;;  %6834 = vmatprep.mubr.msk.bf16.mxu1 %vm3365_vm8, %v4740_v58  ;;  %v5013_v9 = vshll.u32 %v9048_v49, 16  ;;  %v5019_v58 = vshrl.u32 %v4972_v30, 16  ;;  %v5027_v43 = vshrl.u32 %v9050_v39, 16  ;;  %v5030_v21 = vshll.u32 %v9050_v39, 16 }
 0x2f5   : > { %7204 = vmatprep.subr.msk.bf16.mxu1 %vm3639_vm11, %v9028_v34  ;;  %v5081_v30 = vshll.u32 %v9071_v12, 16  ;;  %v5292_v3 = vrot.slane %v9050_v39, 4  ;;  %v5295_v39 = vrot.slane %v9060_v31, 4 }
 0x2f6   : > { %v5015_v29 = vrot.slane %v5013_v9, 4  ;;  %v5021_v42 = vrot.slane %v5019_v58, 3  ;;  %v5029_v55 = vrot.slane %v5027_v43, 3  ;;  %v5032_v46 = vrot.slane %v5030_v21, 4  ;;  %v4982_v21 = vld [vmem:[#allocation2 + $0x90] sm:$0xf8] }
 0x2f7   : > { %v5083_v28 = vrot.slane %v5081_v30, 4  ;;  %v5089_v43 = vrot.slane %v5087_v10, 3  ;;  %v5459_v30 = vshrl.u32 %v5261_v60, 16  ;;  %v5462_v10 = vshll.u32 %v5261_v60, 16 }
 0x2f8   : > { %v5016_v1 = vor.u32 %v5015_v29, %v5012_v57  ;;  %v5025_v45 = vor.u32 %v5024_v23, %v5021_v42  ;;  %v5033_v50 = vor.u32 %v5032_v46, %v5029_v55  ;;  %v5076_v57 = vor.u32 %v5075_v22, %v5072_v62 }
 0x2f9   : > { %v5104_v29 = vshrl.u32 %v4982_v21, 16  ;;  %v5107_v23 = vshll.u32 %v4982_v21, 16  ;;  %v5112_v55 = vshrl.u32 %v9093_v56, 16  ;;  %v5115_v46 = vshll.u32 %v9093_v56, 16 }
 0x2fa   : > { %v5017_v59 = vsel %vm3477_vm12, %v5008_v5, %v5016_v1  ;;  %v5461_v22 = vrot.slane %v5459_v30, 4 }
 0x2fb   : > { %6835 = vmatmul.mubr.msk.bf16.gmra.mrb[24].mxu1 %vm3365_vm8, %v4757_v14  ;;  %v5044_v14 = vshrl.u32 %v9060_v31, 16  ;;  %v5106_v19 = vrot.slane %v5104_v29, 3  ;;  %v5109_v63 = vrot.slane %v5107_v23, 4  ;;  %v5114_v5 = vrot.slane %v5112_v55, 3 }
 0x2fc   : > { %6838 = vmatprep.mubr.msk.bf16.mxu1 %vm3365_vm8, %v4774_v48  ;;  %v5053_v48 = vshrl.u32 %v4976_v61, 16  ;;  %v5093_v61 = vor.u32 %v5092_v36, %v5089_v43  ;;  %v5117_v1 = vrot.slane %v5115_v46, 4  ;;  %v5301_v31 = vrot.slane %v9071_v12, 4 }
 0x2fd   : > { %v5046_v16 = vrot.slane %v5044_v14, 3 }
 0x2fe   : > { %v5055_v13 = vrot.slane %v5053_v48, 3 }
 0x2ff   : > { %v5050_v40 = vor.u32 %v5049_v52, %v5046_v16  ;;  %v5262_v16 = vld [vmem:[#allocation2 + $0x30] sm:$0xf0]  ;;  %v9106_v52 = vld [vmem:[#allocation2 + $0x40] sm:$0xf0] }
 0x300   : > { %v5059_v34 = vor.u32 %v5058_v35, %v5055_v13  ;;  %v5289_v13 = vrot.slane %v9048_v49, 4  ;;  %v5291_v35 = vrot.slane %v9106_v52, 4  ;;  %v5294_v49 = vrot.slane %v9117_v47, 4 }
 0x301   : > { %v5051_v9 = vsel %vm3477_vm12, %v5042_v44, %v5050_v40  ;;  %v5298_v44 = vrot.slane %v9062_v25, 4  ;;  %v5303_v25 = vrot.slane %v9131_v15, 4  ;;  %v5496_v55 = vshll.u32 %v9106_v52, 16 }
 0x303   : > { %6839 = vmatmul.mubr.msk.bf16.gmra.mrb[28].mxu1 %vm3365_vm8, %v4791_v20  ;;  %v5034_v20 = vsel %vm3477_vm12, %v5025_v45, %v5033_v50  ;;  %v5110_v45 = vor.u32 %v5109_v63, %v5106_v19  ;;  %v5118_v50 = vor.u32 %v5117_v1, %v5114_v5  ;;  %v5299_v40 = vsel %vm3639_vm11, %v5297_v33, %v5298_v44 }
 0x304   : > { %6842 = vmatprep.mubr.msk.bf16.mxu1 %vm3365_vm8, %v4808_v18  ;;  %v5078_v18 = vshrl.u32 %v9071_v12, 16  ;;  %v5476_v12 = vshrl.u32 %v5262_v16, 16 }
 0x305   : > { %v5119_v0 = vsel %vm3477_vm12, %v5110_v45, %v5118_v50  ;;  %v5498_v45 = vrot.slane %v5496_v55, 5 }
 0x306   : > { %v5080_v58 = vrot.slane %v5078_v18, 3  ;;  %v5300_v18 = vrot.slane %v9129_v54, 4 }
 0x308   : > { %v5084_v42 = vor.u32 %v5083_v28, %v5080_v58  ;;  %v5302_v62 = vsel %vm3639_vm11, %v5300_v18, %v5301_v31  ;;  %v9141_v28 = vld [vmem:[#allocation2 + $0x90] sm:$0xf0]  ;;  %v5455_v31 = vld [vmem:[#allocation2 + $0x78] sm:$0x1f] }
 0x30a   : > { %v5085_v14 = vsel %vm3477_vm12, %v5076_v57, %v5084_v42  ;;  %v5307_v57 = vrot.slane %v9093_v56, 4  ;;  %v5493_v42 = vshrl.u32 %v9106_v52, 16 }
 0x30b   : > { %6843 = vmatmul.mubr.msk.bf16.gmra.mrb[32].mxu1 %vm3365_vm8, %v4825_v8  ;;  %v5068_v8 = vsel %vm3477_vm12, %v5059_v34, %v5067_v38  ;;  %v5450_v34 = vld [vmem:[#allocation2 + $0x28] sm:$0x1f]  ;;  %v5304_v38 = vrot.slane %v9076_v26, 4  ;;  %v5306_v26 = vrot.slane %v9141_v28, 4 }
 0x30c   : > { %6848 = vmatprep.mubr.msk.bf16.mxu1 %vm3365_vm8, %v5000_v51  ;;  %v5100_v51 = vrot.slane %v5098_v24, 4  ;;  %v5467_v53 = vshrl.u32 %v5450_v34, 16  ;;  %v5470_v7 = vshll.u32 %v5450_v34, 16  ;;  %v5451_v24 = vld [vmem:[#allocation2 + $0x38] sm:$0x1f]  ;;  %v5495_v1 = vrot.slane %v5493_v42, 4 }
 0x30d   : > { %v5305_v58 = vsel %vm3639_vm11, %v5303_v25, %v5304_v38  ;;  %v5484_v36 = vshrl.u32 %v5451_v24, 16  ;;  %v5308_v5 = vsel %vm3639_vm11, %v5306_v26, %v5307_v57  ;;  %v5547_v25 = vshll.u32 %v9129_v54, 16 }
 0x30e   : > { %v5101_v32 = vor.u32 %v5100_v51, %v5097_v27  ;;  %v5469_v43 = vrot.slane %v5467_v53, 4  ;;  %v5472_v21 = vrot.slane %v5470_v7, 5  ;;  %v5487_v27 = vshll.u32 %v5451_v24, 16  ;;  %v5452_v51 = vld [vmem:[#allocation2 + $0x48] sm:$0x1f] }
 0x30f   : > { %v5501_v46 = vshrl.u32 %v5452_v51, 16  ;;  %v5552_v38 = vshrl.u32 %v5455_v31, 16  ;;  %v5555_v53 = vshll.u32 %v5455_v31, 16 }
 0x310   : > { %v5102_v48 = vsel %vm3477_vm12, %v5093_v61, %v5101_v32  ;;  %v5473_v23 = vor.u32 %v5472_v21, %v5469_v43  ;;  %v5504_v61 = vshll.u32 %v5452_v51, 16  ;;  %v5478_v32 = vrot.slane %v5476_v12, 4 }
 0x311   : > { %v5489_v63 = vrot.slane %v5487_v27, 5  ;;  %v5503_v56 = vrot.slane %v5501_v46, 4  ;;  %v5557_v27 = vrot.slane %v5555_v53, 5 }
 0x312   : > { %v5506_v50 = vrot.slane %v5504_v61, 5  ;;  %v5581_v61 = vshll.u32 %v9141_v28, 16 }
 0x313   : > { %6849 = vmatmul.mubr.msk.bf16.vlgmr.msra.gmra.mrb[20].mxu1 %vm3365_vm8, %v5017_v59  ;;  %v5288_v59 = vrot.slane %v5262_v16, 4 }
 0x314   : > { %6865 = vmatpush3.bf16.msra.mxu1 %v5335_v11  ;;  %6852 = vmatprep.mubr.msk.bf16.mxu1 %vm3365_vm8, %v5034_v20  ;;  %v5620_v11 = vsel %vm3639_vm11, %v9081_v41, 0  ;;  %v5293_v20 = vsel %vm3639_vm11, %v5291_v35, %v5292_v3  ;;  %v5530_v35 = vshll.u32 %v9119_v4, 16  ;;  %v5535_v3 = vshrl.u32 %v5454_v37, 16 }
 0x315   : > { %7205 = vmatprep.subr.msk.bf16.mxu1 %vm3639_vm11, %v9081_v41  ;;  %v5290_v6 = vsel %vm3639_vm11, %v5288_v59, %v5289_v13  ;;  %v5296_v41 = vsel %vm3639_vm11, %v5294_v49, %v5295_v39  ;;  %v5527_v13 = vshrl.u32 %v9119_v4, 16  ;;  %v5544_v4 = vshrl.u32 %v9129_v54, 16 }
 0x316   : > { %v5537_v34 = vrot.slane %v5535_v3, 4 }
 0x317   : > { %v5546_v12 = vrot.slane %v5544_v4, 4 }
 0x31b   : > { %6853 = vmatmul.mubr.msk.bf16.gmra.mrb[24].mxu1 %vm3365_vm8, %v5051_v9  ;;  %v5464_v9 = vrot.slane %v5462_v10, 5  ;;  %v5456_v10 = vld [vmem:[#allocation2 + $0x88] sm:$0x1f] }
 0x31c   : > { %6856 = vmatprep.mubr.msk.bf16.mxu1 %vm3365_vm8, %v5068_v8  ;;  %v5479_v8 = vshll.u32 %v5262_v16, 16  ;;  %v5513_v16 = vshll.u32 %v9117_v47, 16  ;;  %v5569_v43 = vshrl.u32 %v5456_v10, 16  ;;  %v5572_v21 = vshll.u32 %v5456_v10, 16 }
 0x31d   : > { %v5465_v29 = vor.u32 %v5464_v9, %v5461_v22  ;;  %v5561_v9 = vshrl.u32 %v9131_v15, 16 }
 0x31e   : > { %v5481_v19 = vrot.slane %v5479_v8, 5  ;;  %v5515_v33 = vrot.slane %v5513_v16, 5  ;;  %v5549_v8 = vrot.slane %v5547_v25, 5  ;;  %v5574_v42 = vrot.slane %v5572_v21, 5  ;;  %v9185_v16 = vld [vmem:[%s9289_s6] ss:$0 sm:$0xff] }
 0x31f   : > { %v5474_v60 = vsel %vm327_vm5, %v5465_v29, %v5473_v23  ;;  %v5563_v26 = vrot.slane %v5561_v9, 4  ;;  %v5571_v29 = vrot.slane %v5569_v43, 4  ;;  %v5457_v23 = vld [vmem:[#allocation2 + $0x98] sm:$0x1f] }
 0x320   : > { %v5482_v2 = vor.u32 %v5481_v19, %v5478_v32  ;;  %v5550_v55 = vor.u32 %v5549_v8, %v5546_v12  ;;  %v5586_v32 = vshrl.u32 %v5457_v23, 16  ;;  %v5589_v19 = vshll.u32 %v5457_v23, 16 }
 0x323   : > { %6857 = vmatmul.mubr.msk.bf16.gmra.mrb[28].mxu1 %vm3365_vm8, %v5085_v14  ;;  %v5486_v14 = vrot.slane %v5484_v36, 4  ;;  %v5554_v36 = vrot.slane %v5552_v38, 4 }
 0x324   : > { %6860 = vmatprep.mubr.msk.bf16.mxu1 %vm3365_vm8, %v5102_v48  ;;  %v5453_v48 = vld [vmem:[#allocation2 + $0x58] sm:$0x1f] }
 0x325   : > { %v5518_v52 = vshrl.u32 %v5453_v48, 16  ;;  %v5521_v59 = vshll.u32 %v5453_v48, 16  ;;  %v5558_v46 = vor.u32 %v5557_v27, %v5554_v36  ;;  %v5583_v48 = vrot.slane %v5581_v61, 5 }
 0x327   : > { %v5520_v44 = vrot.slane %v5518_v52, 4 }
 0x32b   : > { %6861 = vmatmul.mubr.msk.bf16.gmra.mrb[32].mxu1 %vm3365_vm8, %v5119_v0  ;;  %v5490_v0 = vor.u32 %v5489_v63, %v5486_v14  ;;  %v5575_v63 = vor.u32 %v5574_v42, %v5571_v29 }
 0x32c   : > { %6866 = vmatprep.mubr.msk.bf16.mxu1 %vm3365_vm8, %v5287_v17  ;;  %v5510_v17 = vshrl.u32 %v9117_v47, 16  ;;  %v5532_v47 = vrot.slane %v5530_v35, 5 }
 0x32d   : > { %v5491_v49 = vsel %vm327_vm5, %v5482_v2, %v5490_v0  ;;  %v9180_v2 = vld [vmem:[%s9288_s5] ss:$0 sm:$0xff] }
 0x32e   : > { %v5512_v39 = vrot.slane %v5510_v17, 4 }
 0x330   : > { %v5516_v7 = vor.u32 %v5515_v33, %v5512_v39 }
 0x333   : > { %6867 = vmatmul.mubr.msk.bf16.vlgmr.msra.gmra.mrb[20].mxu1 %vm3365_vm8, %v5290_v6  ;;  %v5538_v6 = vshll.u32 %v5454_v37, 16 }
 0x334   : > { %6883 = vmatpush3.bf16.msra.mxu1 %v5620_v11  ;;  %6870 = vmatprep.mubr.msk.bf16.mxu1 %vm3365_vm8, %v5293_v20  ;;  %v5499_v11 = vor.u32 %v5498_v45, %v5495_v1  ;;  %v5507_v20 = vor.u32 %v5506_v50, %v5503_v56  ;;  %v5591_v45 = vrot.slane %v5589_v19, 5 }
 0x335   : > { %v5540_v18 = vrot.slane %v5538_v6, 5 }
 0x336   : > { %v5508_v30 = vsel %vm327_vm5, %v5499_v11, %v5507_v20 }
 0x337   : > { %v5541_v22 = vor.u32 %v5540_v18, %v5537_v34 }
 0x33b   : > { %6871 = vmatmul.mubr.msk.bf16.gmra.mrb[24].mxu1 %vm3365_vm8, %v5296_v41  ;;  %v5523_v41 = vrot.slane %v5521_v59, 5 }
 0x33c   : > { %6874 = vmatprep.mubr.msk.bf16.mxu1 %vm3365_vm8, %v5299_v40  ;;  %v5529_v40 = vrot.slane %v5527_v13, 4 }
 0x33d   : > { %v5524_v24 = vor.u32 %v5523_v41, %v5520_v44 }
 0x33f   : > { %v5525_v54 = vsel %vm327_vm5, %v5516_v7, %v5524_v24 }
 0x343   : > { %6875 = vmatmul.mubr.msk.bf16.gmra.mrb[28].mxu1 %vm3365_vm8, %v5302_v62  ;;  %v5533_v62 = vor.u32 %v5532_v47, %v5529_v40 }
 0x344   : > { %6878 = vmatprep.mubr.msk.bf16.mxu1 %vm3365_vm8, %v5305_v58  ;;  %v5564_v58 = vshll.u32 %v9131_v15, 16  ;;  %v5578_v15 = vshrl.u32 %v9141_v28, 16 }
 0x345   : > { %v5542_v51 = vsel %vm327_vm5, %v5533_v62, %v5541_v22 }
 0x346   : > { %v5566_v57 = vrot.slane %v5564_v58, 5  ;;  %v5580_v1 = vrot.slane %v5578_v15, 4 }
 0x348   : > { %v5567_v14 = vor.u32 %v5566_v57, %v5563_v26  ;;  %v5584_v50 = vor.u32 %v5583_v48, %v5580_v1 }
 0x34a   : > { %v5576_v56 = vsel %vm327_vm5, %v5567_v14, %v5575_v63 }
 0x34b   : > { %6879 = vmatmul.mubr.msk.bf16.gmra.mrb[32].mxu1 %vm3365_vm8, %v5308_v5  ;;  %v5559_v5 = vsel %vm327_vm5, %v5550_v55, %v5558_v46 }
 0x34c   : > { %6884 = vmatprep.mubr.msk.bf16.mxu1 %vm3365_vm8, %v5474_v60  ;;  %v5588_v60 = vrot.slane %v5586_v32, 4 }
 0x34e   : > { %v5592_v37 = vor.u32 %v5591_v45, %v5588_v60 }
 0x350   : > { %v5593_v28 = vsel %vm327_vm5, %v5584_v50, %v5592_v37 }
 0x353   : > { %6885 = vmatmul.mubr.msk.bf16.vlgmr.msra.gmra.mrb[20].mxu1 %vm3365_vm8, %v5491_v49 }
 0x354   : > { %6888 = vmatprep.mubr.msk.bf16.mxu1 %vm3365_vm8, %v5508_v30 }
 0x35b   : > { %6889 = vmatmul.mubr.msk.bf16.gmra.mrb[24].mxu1 %vm3365_vm8, %v5525_v54 }
 0x35c   : > { %6892 = vmatprep.mubr.msk.bf16.mxu1 %vm3365_vm8, %v5542_v51 }
 0x363   : > { %6893 = vmatmul.mubr.msk.bf16.gmra.mrb[28].mxu1 %vm3365_vm8, %v5559_v5 }
 0x364   : > { %6896 = vmatprep.mubr.msk.bf16.mxu1 %vm3365_vm8, %v5576_v56 }
 0x36b   : > { %6897 = vmatmul.mubr.msk.bf16.gmra.mrb[32].mxu1 %vm3365_vm8, %v5593_v28 }
 0x426   : > { %v6886_v0 = vpop.f32.mrb[20].mxu1 }
 0x427   : > { %v5656_v17 = vpop.f32.mrb[21].mxu1  ;;  %v5744_v6 = vmul.f32 %v6886_v0, %v9180_v2 }
 0x428   : > { %v5742_v52 = vmul.f32 %v9180_v2, %v5656_v17  ;;  %v6887_v59 = vpop.f32.mrb[22].mxu1 }
 0x429   : > { %v5659_v13 = vpop.f32.mrb[23].mxu1  ;;  %v5745_v33 = vmul.f32 %v6887_v59, %v9180_v2  ;;  %v5767_v40 = vadd.f32 %v9185_v16, %v5744_v6 }
 0x42a   : > { %v5743_v35 = vmul.f32 %v9180_v2, %v5659_v13  ;;  %v5765_v3 = vadd.f32 %v9185_v16, %v5742_v52 }
 0x42b   : > { %v5783_v18 = vmax.f32 %v5767_v40, 0.0  ;;  %v5768_v31 = vadd.f32 %v9185_v16, %v5745_v33 }
 0x42c   : > { %v5781_v11 = vmax.f32 %v5765_v3, 0.0  ;;  %v5766_v20 = vadd.f32 %v9185_v16, %v5743_v35 }
 0x42d   : > { %v5784_v38 = vmax.f32 %v5768_v31, 0.0 }
 0x42e   : > { %v6890_v49 = vpop.f32.mrb[24].mxu1  ;;  %5797 = vxpose.xlu0.b32.start [1/16] (narrow) %v5781_v11, 8  ;;  %v5782_v41 = vmax.f32 %v5766_v20, 0.0 }
 0x42f   : > { %v5672_v39 = vpop.f32.mrb[25].mxu1  ;;  %v5748_v24 = vmul.f32 %v6890_v49, %v9180_v2 }
 0x430   : > { %v6891_v44 = vpop.f32.mrb[26].mxu1  ;;  %v5746_v34 = vmul.f32 %v9180_v2, %v5672_v39 }
 0x431   : > { %v5675_v47 = vpop.f32.mrb[27].mxu1  ;;  %v5749_v43 = vmul.f32 %v6891_v44, %v9180_v2  ;;  %v5771_v8 = vadd.f32 %v9185_v16, %v5748_v24 }
 0x432   : > { %5798 = vxpose.xlu0.b32.cont [2/16] (narrow) %v5782_v41, 8  ;;  %v5747_v4 = vmul.f32 %v9180_v2, %v5675_v47  ;;  %v5769_v53 = vadd.f32 %v9185_v16, %v5746_v34 }
 0x433   : > { %v5787_v54 = vmax.f32 %v5771_v8, 0.0  ;;  %v5772_v51 = vadd.f32 %v9185_v16, %v5749_v43 }
 0x434   : > { %v5785_v62 = vmax.f32 %v5769_v53, 0.0  ;;  %v5770_v22 = vadd.f32 %v9185_v16, %v5747_v4 }
 0x435   : > { %v5788_v57 = vmax.f32 %v5772_v51, 0.0 }
 0x436   : > { %v6894_v30 = vpop.f32.mrb[28].mxu1  ;;  %5799 = vxpose.xlu0.b32.cont [3/16] (narrow) %v5783_v18, 8  ;;  %v5786_v12 = vmax.f32 %v5770_v22, 0.0 }
 0x437   : > { %v5688_v10 = vpop.f32.mrb[29].mxu1  ;;  %v5752_v42 = vmul.f32 %v6894_v30, %v9180_v2 }
 0x438   : > { %v6895_v25 = vpop.f32.mrb[30].mxu1  ;;  %v5750_v27 = vmul.f32 %v9180_v2, %v5688_v10 }
 0x439   : > { %v5691_v7 = vpop.f32.mrb[31].mxu1  ;;  %v5753_v46 = vmul.f32 %v6895_v25, %v9180_v2  ;;  %v5775_v61 = vadd.f32 %v9185_v16, %v5752_v42 }
 0x43a   : > { %5800 = vxpose.xlu0.b32.cont [4/16] (narrow) %v5784_v38, 8  ;;  %v5751_v26 = vmul.f32 %v9180_v2, %v5691_v7  ;;  %v5773_v29 = vadd.f32 %v9185_v16, %v5750_v27 }
 0x43b   : > { %v5791_v19 = vmax.f32 %v5775_v61, 0.0  ;;  %v5776_v14 = vadd.f32 %v9185_v16, %v5753_v46 }
 0x43c   : > { %v5789_v23 = vmax.f32 %v5773_v29, 0.0  ;;  %v5774_v55 = vadd.f32 %v9185_v16, %v5751_v26 }
 0x43d   : > { %v5792_v5 = vmax.f32 %v5776_v14, 0.0 }
 0x43e   : > { %v6898_v9 = vpop.f32.mrb[32].mxu1  ;;  %5801 = vxpose.xlu0.b32.cont [5/16] (narrow) %v5785_v62, 8  ;;  %v5790_v15 = vmax.f32 %v5774_v55, 0.0 }
 0x43f   : > { %v5704_v58 = vpop.f32.mrb[33].mxu1  ;;  %v5756_v48 = vmul.f32 %v6898_v9, %v9180_v2 }
 0x440   : > { %v6899_v21 = vpop.f32.mrb[34].mxu1  ;;  %v5754_v32 = vmul.f32 %v9180_v2, %v5704_v58 }
 0x441   : > { %v5707_v36 = vpop.f32.mrb[35].mxu1  ;;  %v5757_v56 = vmul.f32 %v6899_v21, %v9180_v2  ;;  %v5779_v37 = vadd.f32 %v9185_v16, %v5756_v48 }
 0x442   : > { %5802 = vxpose.xlu0.b32.cont [6/16] (narrow) %v5786_v12, 8  ;;  %v5755_v63 = vmul.f32 %v9180_v2, %v5707_v36  ;;  %v5777_v1 = vadd.f32 %v9185_v16, %v5754_v32 }
 0x443   : > { %v5795_v28 = vmax.f32 %v5779_v37, 0.0  ;;  %v5780_v0 = vadd.f32 %v9185_v16, %v5757_v56 }
 0x444   : > { %v5793_v60 = vmax.f32 %v5777_v1, 0.0  ;;  %v5778_v45 = vadd.f32 %v9185_v16, %v5755_v63 }
 0x445   : > { %v5796_v17 = vmax.f32 %v5780_v0, 0.0 }
 0x446   : > { %5803 = vxpose.xlu0.b32.cont [7/16] (narrow) %v5787_v54, 8  ;;  %v5794_v50 = vmax.f32 %v5778_v45, 0.0 }
 0x44a   : > { %5804 = vxpose.xlu0.b32.cont [8/16] (narrow) %v5788_v57, 8 }
 0x44e   : > { %5805 = vxpose.xlu0.b32.cont [9/16] (narrow) %v5789_v23, 8 }
 0x452   : > { %5806 = vxpose.xlu0.b32.cont [10/16] (narrow) %v5790_v15, 8 }
 0x456   : > { %5807 = vxpose.xlu0.b32.cont [11/16] (narrow) %v5791_v19, 8 }
 0x45a   : > { %5808 = vxpose.xlu0.b32.cont [12/16] (narrow) %v5792_v5, 8 }
 0x45e   : > { %5809 = vxpose.xlu0.b32.cont [13/16] (narrow) %v5793_v60, 8 }
 0x462   : > { %5810 = vxpose.xlu0.b32.cont [14/16] (narrow) %v5794_v50, 8 }
 0x466   : > { %5811 = vxpose.xlu0.b32.cont [15/16] (narrow) %v5795_v28, 8 }
 0x46a   : > { %5812 = vxpose.xlu0.b32.end [16/16] (narrow) %v5796_v17, 8 }
 0x4ae   : > { %v5813_v2 = vpop.trf.xlu0 }
 0x4af   : > { %5829 = vst [vmem:[%s285_s9] sm:$0xff] %v5813_v2 }
 0x4b0   : > { %7341 = shalt.err (!%p7338_p9)
}
 0x4b1   : > { %s7342_s22 = scalar_lea.hbm %s9226_s10, 128  ;;  %s7346_s20 = scalar_lea.hbm %s9290_s7, 512 }
 0x4b2   : > { %p7343_p10 = scmp.ne.s32.totalorder %s9226_s10, %s7342_s22  ;;  %p7347_p13 = scmp.lt.u32.totalorder %s9226_s10, %s9290_s7 }
 0x4b3   : > { %p7348_p0 = scmp.lt.u32.totalorder %s7346_s20, %s7342_s22  ;;  %p7350_p2 = scmp.lt.u32.totalorder %s7342_s22, %s9226_s10 }
 0x4b4   : > { %p7344_p11 = pnand %p7343_p10, %p7519_p3 }
 0x4b5   : > { %p7349_p1 = por %p7348_p0, %p7347_p13 }
 0x4b6   : > { %p7345_p12 = pneg %p7344_p11 }
 0x4b7   : > { %p7351_p4 = por %p7350_p2, %p7349_p1 }
 0x4b9   : > { %p7352_p5 = pnand %p7351_p4, %p7345_p12 }
 0x4bb   : > { %7355 = shalt.err (!%p7352_p5)
}
 0x4bc   : > { %7207 = dma.vmem_to_hbm [thread:$0]  (%p7519_p3), %s9228_s17, 128, %s9226_s10, %s5831_s0  }
 0x4bd PF: > { %p7213_p6 = scmp.ge.s32.totalorder %s7422_s8, 2  ;;  %s5858_s28 = sand.u32 1, %s7394_s24  }
 0x4be   : > { %s5859_s27 = scalar_lea.sflag [#allocation4], %s5858_s28 }
 0x4bf   : > { %p7210_p7 = pnand %p7213_p6, %p7528_p8 }
 0x4c1   : > { %7389 = dma.done.wait (!%p7210_p7), %s5859_s27, 128  }
 0x4c2   : > { %7391 = vsyncadd (!%p7210_p7), %s5859_s27, 4294967168  ;;  %s20_s8 = sadd.s32 1, %s7422_s8   ;;  %s9378_s24 = smov %s7398_s25 }
 0x4c3   : > { %p17_p9 = scmp.ge.s32.totalorder %s20_s8, 6   ;;  %s9379_s25 = smov %s7402_s26 }
 0x4c4   : > { %s9380_s26 = smov %s7537_s19  ;;  %s9381_s27 = smov %s7414_s29 }
 0x4c5   : > { %s9382_s28 = smov %s7418_s30  ;;  %s9383_s29 = smov %s9386_s11 }
 0x4c6   : > { %s9384_s30 = smov %s9390_s12  ;;  %19 = sbr.rel (!%p17_p9) target bundleno = 7 (0x7), region = 97 }
 0x4cd   :  { %5864 = vsyncpa [#allocation4], 1 }
 0x4ce   :  { %5866 = vsyncpa [#allocation4 + $0x1], 1 }

</bundles_post_ra>
